<compile_context>
chip_gen: v7x
topology: tpu7x:2x2x1
jax: 0.10.0
libtpu: 0.0.40
codegen_flags: <defaults>
</compile_context>

<pallas_src>
import functools

import jax
import jax.numpy as jnp
from jax.experimental import pallas as pl
from jax.experimental.pallas import tpu as pltpu


# -----------------------------------------------------------------------------
# Fused BasicBlock kernel (one grid step = one image of the batch)
# -----------------------------------------------------------------------------
def _basic_block_kernel(x_ref, w1_ref, w2_ref, wsc_ref,
                        s1_ref, b1_ref, s2_ref, b2_ref, ssc_ref, bsc_ref,
                        o_ref,
                        xpad_ref, h1pad_ref, acc_ref, sc_ref,
                        *, H, W, Cin, Cp):
    """
    x_ref   : (1, H, W, Cin)       bf16  un-padded NHWC input image
    w1_ref  : (9, Cin, Cp)         bf16  conv1 weights, one (Cin, Cp) slab / tap
    w2_ref  : (9, Cp, Cp)          bf16  conv2 weights (channels zero-padded)
    wsc_ref : (Cin, Cp)            bf16  1x1 projection-shortcut weights
    s*/b*   : (1, Cp)              f32   folded BatchNorm scale / bias
    o_ref   : (1, H*W, Cp)         f32   lane-dense output (padded channels = 0)
    xpad_ref  : (H+2, W+2, Cin) f32 VMEM  zero-padded input (halo built here)
    h1pad_ref : (H+2, W+2, Cp)  f32 VMEM  zero-padded conv1 activation
    acc_ref   : (H*W, Cp)       f32 VMEM  conv accumulator
    sc_ref    : (H*W, Cp)       f32 VMEM  shortcut branch
    """
    HW = H * W
    f32 = jnp.float32
    bf16 = jnp.bfloat16

    # ---- stage the zero-padded input in VMEM (no jnp.pad / HBM round trip) ---
    xpad_ref[...] = jnp.zeros_like(xpad_ref)
    xf = x_ref[0].astype(f32)                       # (H, W, Cin)
    xpad_ref[1:H + 1, 1:W + 1, :] = xf

    def conv3x3_accumulate(src_ref, w_ref, C):
        """acc_ref <- 3x3 / stride-1 conv of the padded src_ref with w_ref."""
        acc_ref[...] = jnp.zeros_like(acc_ref)
        for kh in range(3):
            for kw in range(3):
                patch = src_ref[kh:kh + H, kw:kw + W, :].reshape(HW, C)
                acc_ref[...] += jnp.dot(patch.astype(bf16),
                                        w_ref[kh * 3 + kw],
                                        preferred_element_type=f32)

    # ---- conv1 (3x3) + BN1 + ReLU, kept (padded) in VMEM ---------------------
    conv3x3_accumulate(xpad_ref, w1_ref, Cin)
    h1 = jnp.maximum(acc_ref[...] * s1_ref[...] + b1_ref[...], 0.0)   # (HW, Cp)
    h1pad_ref[...] = jnp.zeros_like(h1pad_ref)
    h1pad_ref[1:H + 1, 1:W + 1, :] = h1.reshape(H, W, Cp)

    # ---- projection shortcut: 1x1 conv + BN, kept in VMEM --------------------
    x_flat = xf.reshape(HW, Cin).astype(bf16)
    sc_ref[...] = (jnp.dot(x_flat, wsc_ref[...], preferred_element_type=f32)
                   * ssc_ref[...] + bsc_ref[...])

    # ---- conv2 (3x3, K = Cp = 128) + BN2 + residual add + ReLU ---------------
    conv3x3_accumulate(h1pad_ref, w2_ref, Cp)
    out = jnp.maximum(acc_ref[...] * s2_ref[...] + b2_ref[...] + sc_ref[...], 0.0)

    # ---- lane-dense store: last dim Cp = 128 -> unmasked full-lane vst -------
    o_ref[0] = out


# -----------------------------------------------------------------------------
# Wrapper
# -----------------------------------------------------------------------------
def fold_bn(gamma, beta, mean, var, eps=1e-5):
    scale = gamma / jnp.sqrt(var + eps)
    bias = beta - mean * scale
    return scale, bias


def _pad_last(a, target):
    pad = target - a.shape[-1]
    if pad == 0:
        return a
    widths = [(0, 0)] * (a.ndim - 1) + [(0, pad)]
    return jnp.pad(a, widths)


def basic_block_forward(x_nchw, params):
    N, Cin, H, W = x_nchw.shape
    Cout = params["w1"].shape[-1]
    Cp = pl.cdiv(Cout, 128) * 128          # lane-padded output-channel width

    # NCHW (PyTorch) -> NHWC for the kernel; MXU operands in bf16.
    x = jnp.transpose(x_nchw, (0, 2, 3, 1)).astype(jnp.bfloat16)

    # Weights laid out as (tap, in_channels, Cp) with output channels padded
    # to the 128-lane width (padding is tiny, weight arrays are VMEM-resident).
    w1 = _pad_last(params["w1"].reshape(9, Cin, Cout), Cp).astype(jnp.bfloat16)
    w2 = params["w2"].reshape(9, Cout, Cout)
    w2 = jnp.pad(w2, ((0, 0), (0, Cp - Cout), (0, Cp - Cout))).astype(jnp.bfloat16)
    wsc = _pad_last(params["w_sc"], Cp).astype(jnp.bfloat16)

    s1, b1 = fold_bn(*params["bn1"])
    s2, b2 = fold_bn(*params["bn2"])
    ssc, bsc = fold_bn(*params["bn_sc"])
    pad_vec = lambda v: _pad_last(v.reshape(1, Cout), Cp)

    kern = functools.partial(_basic_block_kernel, H=H, W=W, Cin=Cin, Cp=Cp)
    out = pl.pallas_call(
        kern,
        out_shape=jax.ShapeDtypeStruct((N, H * W, Cp), jnp.float32),
        grid_spec=pltpu.PrefetchScalarGridSpec(
            num_scalar_prefetch=0,
            grid=(N,),
            in_specs=[
                pl.BlockSpec((1, H, W, Cin), lambda n: (n, 0, 0, 0)),
                # constant index_maps: weights / BN affines stay VMEM-resident
                pl.BlockSpec((9, Cin, Cp), lambda n: (0, 0, 0)),
                pl.BlockSpec((9, Cp, Cp), lambda n: (0, 0, 0)),
                pl.BlockSpec((Cin, Cp), lambda n: (0, 0)),
            ] + [pl.BlockSpec((1, Cp), lambda n: (0, 0))] * 6,
            out_specs=pl.BlockSpec((1, H * W, Cp), lambda n: (n, 0, 0)),
            scratch_shapes=[
                pltpu.VMEM((H + 2, W + 2, Cin), jnp.float32),   # padded x
                pltpu.VMEM((H + 2, W + 2, Cp), jnp.float32),    # padded conv1 act
                pltpu.VMEM((H * W, Cp), jnp.float32),           # conv accumulator
                pltpu.VMEM((H * W, Cp), jnp.float32),           # shortcut branch
            ],
        ),
        compiler_params=pltpu.CompilerParams(
            dimension_semantics=("parallel",)),
    )(x, w1, w2, wsc,
      pad_vec(s1), pad_vec(b1), pad_vec(s2), pad_vec(b2),
      pad_vec(ssc), pad_vec(bsc))

    # Strip channel padding, un-flatten spatial dim, back to NCHW.
    out = out[:, :, :Cout].reshape(N, H, W, Cout)
    return jnp.transpose(out, (0, 3, 1, 2))


# -----------------------------------------------------------------------------
# Pure-JAX reference (lax.conv) for validation
# -----------------------------------------------------------------------------
def reference_forward(x_nchw, params, *, match_kernel_precision=True):
    """match_kernel_precision=True casts the conv operands to bf16 exactly like
    the kernel does (f32 accumulation / epilogue); False is the pure-f32 path
    of the original PyTorch module."""
    if match_kernel_precision:
        cast = lambda a: a.astype(jnp.bfloat16)
    else:
        cast = lambda a: a
    x = jnp.transpose(x_nchw, (0, 2, 3, 1)).astype(jnp.float32)
    dn = ("NHWC", "HWIO", "NHWC")

    def conv(inp, w):
        return jax.lax.conv_general_dilated(
            cast(inp), cast(w), (1, 1), "SAME", dimension_numbers=dn,
            preferred_element_type=jnp.float32)

    s1, b1 = fold_bn(*params["bn1"])
    s2, b2 = fold_bn(*params["bn2"])
    ssc, bsc = fold_bn(*params["bn_sc"])

    h1 = jnp.maximum(conv(x, params["w1"]) * s1 + b1, 0.0)
    out = conv(h1, params["w2"]) * s2 + b2
    w_sc = params["w_sc"].reshape(1, 1, *params["w_sc"].shape)
    sc = conv(x, w_sc) * ssc + bsc
    out = jnp.maximum(out + sc, 0.0)
    return jnp.transpose(out, (0, 3, 1, 2))


if __name__ == "__main__":
    # batch=2, in_planes=4, planes=8, spatial=16, stride=1
    # in_planes != planes -> projection (1x1 conv + BN) shortcut is exercised.
    N, Cin, H, W = 2, 4, 16, 16
    Cout = 8

    key = jax.random.PRNGKey(0)
    ks = jax.random.split(key, 8)

    def bn_params(k):
        kg, kb, km, kv = jax.random.split(k, 4)
        gamma = 1.0 + 0.1 * jax.random.normal(kg, (Cout,), jnp.float32)
        beta = 0.1 * jax.random.normal(kb, (Cout,), jnp.float32)
        mean = 0.1 * jax.random.normal(km, (Cout,), jnp.float32)
        var = jnp.abs(jax.random.normal(kv, (Cout,), jnp.float32)) + 0.5
        return (gamma, beta, mean, var)

    params = {
        # HWIO conv weights (layout choice; PyTorch OIHW would just be permuted)
        "w1": 0.1 * jax.random.normal(ks[0], (3, 3, Cin, Cout), jnp.float32),
        "w2": 0.1 * jax.random.normal(ks[1], (3, 3, Cout, Cout), jnp.float32),
        "w_sc": 0.1 * jax.random.normal(ks[2], (Cin, Cout), jnp.float32),
        "bn1": bn_params(ks[3]),
        "bn2": bn_params(ks[4]),
        "bn_sc": bn_params(ks[5]),
    }

    x = jax.random.normal(ks[6], (N, Cin, H, W), jnp.float32)

    out = jax.block_until_ready(basic_block_forward(x, params))
    assert out.shape == (N, Cout, H, W)

    # Tight check against a precision-matched (bf16-operand) reference.
    ref_matched = jax.block_until_ready(
        reference_forward(x, params, match_kernel_precision=True))
    assert jnp.allclose(out, ref_matched, atol=2e-2, rtol=2e-2), \
        "mismatch vs precision-matched reference"

    # Loose check against the pure-f32 reference (module semantics).
    ref_f32 = jax.block_until_ready(
        reference_forward(x, params, match_kernel_precision=False))
    assert jnp.allclose(out, ref_f32, atol=5e-2, rtol=5e-2), \
        "mismatch vs f32 reference"

    print("KERNEL_OK")
</pallas_src>

<mosaic_0001>
module attributes {stable_mosaic.version = 11 : i64} {
  func.func @_basic_block_kernel(%arg0: i32, %arg1: memref<1x16x16x4xbf16, #tpu.memory_space<vmem>>, %arg2: memref<9x4x128xbf16, #tpu.memory_space<vmem>>, %arg3: memref<9x128x128xbf16, #tpu.memory_space<vmem>>, %arg4: memref<4x128xbf16, #tpu.memory_space<vmem>>, %arg5: memref<1x128xf32, #tpu.memory_space<vmem>>, %arg6: memref<1x128xf32, #tpu.memory_space<vmem>>, %arg7: memref<1x128xf32, #tpu.memory_space<vmem>>, %arg8: memref<1x128xf32, #tpu.memory_space<vmem>>, %arg9: memref<1x128xf32, #tpu.memory_space<vmem>>, %arg10: memref<1x128xf32, #tpu.memory_space<vmem>>, %arg11: memref<1x256x128xf32, #tpu.memory_space<vmem>>, %arg12: memref<18x18x4xf32, #tpu.memory_space<vmem>>, %arg13: memref<18x18x128xf32, #tpu.memory_space<vmem>>, %arg14: memref<256x128xf32, #tpu.memory_space<vmem>>, %arg15: memref<256x128xf32, #tpu.memory_space<vmem>>) attributes {dimension_semantics = [#tpu.dimension_semantics<parallel>], iteration_bounds = array<i64: 2>, scalar_prefetch = 0 : i64, scratch_operands = 4 : i64, tpu.core_type = #tpu.core_type<tc>, window_params = [{transform_indices = @transform_0, window_bounds = array<i64: 1, 16, 16, 4>}, {pipeline_mode = #tpu.pipeline_mode<synchronous>, transform_indices = @transform_1, window_bounds = array<i64: 9, 4, 128>}, {pipeline_mode = #tpu.pipeline_mode<synchronous>, transform_indices = @transform_2, window_bounds = array<i64: 9, 128, 128>}, {pipeline_mode = #tpu.pipeline_mode<synchronous>, transform_indices = @transform_3, window_bounds = array<i64: 4, 128>}, {pipeline_mode = #tpu.pipeline_mode<synchronous>, transform_indices = @transform_4, window_bounds = array<i64: 1, 128>}, {pipeline_mode = #tpu.pipeline_mode<synchronous>, transform_indices = @transform_5, window_bounds = array<i64: 1, 128>}, {pipeline_mode = #tpu.pipeline_mode<synchronous>, transform_indices = @transform_6, window_bounds = array<i64: 1, 128>}, {pipeline_mode = #tpu.pipeline_mode<synchronous>, transform_indices = @transform_7, window_bounds = array<i64: 1, 128>}, {pipeline_mode = #tpu.pipeline_mode<synchronous>, transform_indices = @transform_8, window_bounds = array<i64: 1, 128>}, {pipeline_mode = #tpu.pipeline_mode<synchronous>, transform_indices = @transform_9, window_bounds = array<i64: 1, 128>}, {transform_indices = @transform_10, window_bounds = array<i64: 1, 256, 128>}]} {
    %cst = arith.constant 0.000000e+00 : f32
    %0 = vector.broadcast %cst : f32 to vector<18x18x4xf32>
    %c0 = arith.constant 0 : index
    %c0_0 = arith.constant 0 : index
    %c0_1 = arith.constant 0 : index
    %1 = vector.load %arg12[%c0, %c0_0, %c0_1] : memref<18x18x4xf32, #tpu.memory_space<vmem>>, vector<18x18x4xf32>
    tpu.vector_store %arg12[%c0, %c0_0, %c0_1], %0 {strides = array<i32>} : memref<18x18x4xf32, #tpu.memory_space<vmem>>, vector<18x18x4xf32>,
    %c0_2 = arith.constant 0 : index
    %c0_3 = arith.constant 0 : index
    %c0_4 = arith.constant 0 : index
    %c0_5 = arith.constant 0 : index
    %2 = vector.load %arg1[%c0_2, %c0_3, %c0_4, %c0_5] : memref<1x16x16x4xbf16, #tpu.memory_space<vmem>>, vector<1x16x16x4xbf16>
    %3 = vector.shape_cast %2 : vector<1x16x16x4xbf16> to vector<16x16x4xbf16>
    %4 = arith.extf %3 : vector<16x16x4xbf16> to vector<16x16x4xf32>
    %c1 = arith.constant 1 : index
    %c1_6 = arith.constant 1 : index
    %c0_7 = arith.constant 0 : index
    %5 = vector.load %arg12[%c1, %c1_6, %c0_7] : memref<18x18x4xf32, #tpu.memory_space<vmem>>, vector<16x16x4xf32>
    tpu.vector_store %arg12[%c1, %c1_6, %c0_7], %4 {strides = array<i32>} : memref<18x18x4xf32, #tpu.memory_space<vmem>>, vector<16x16x4xf32>,
    %cst_8 = arith.constant 0.000000e+00 : f32
    %6 = vector.broadcast %cst_8 : f32 to vector<256x128xf32>
    %c0_9 = arith.constant 0 : index
    %c0_10 = arith.constant 0 : index
    %7 = vector.load %arg14[%c0_9, %c0_10] : memref<256x128xf32, #tpu.memory_space<vmem>>, vector<256x128xf32>
    tpu.vector_store %arg14[%c0_9, %c0_10], %6 {strides = array<i32>} : memref<256x128xf32, #tpu.memory_space<vmem>>, vector<256x128xf32>,
    %c0_11 = arith.constant 0 : index
    %c0_12 = arith.constant 0 : index
    %c0_13 = arith.constant 0 : index
    %8 = vector.load %arg12[%c0_11, %c0_12, %c0_13] : memref<18x18x4xf32, #tpu.memory_space<vmem>>, vector<16x16x4xf32>
    %9 = vector.shape_cast %8 : vector<16x16x4xf32> to vector<256x4xf32>
    %c0_14 = arith.constant 0 : index
    %c0_15 = arith.constant 0 : index
    %10 = vector.load %arg14[%c0_14, %c0_15] : memref<256x128xf32, #tpu.memory_space<vmem>>, vector<256x128xf32>
    %11 = arith.truncf %9 : vector<256x4xf32> to vector<256x4xbf16>
    %c0_16 = arith.constant 0 : index
    %c0_17 = arith.constant 0 : index
    %c0_18 = arith.constant 0 : index
    %12 = vector.load %arg2[%c0_16, %c0_17, %c0_18] : memref<9x4x128xbf16, #tpu.memory_space<vmem>>, vector<1x4x128xbf16>
    %13 = vector.shape_cast %12 : vector<1x4x128xbf16> to vector<4x128xbf16>
    %cst_19 = arith.constant dense<0.000000e+00> : vector<256x128xf32>
    %14 = tpu.matmul %11, %13, %cst_19 {dimension_numbers = #tpu.dot_dimension_numbers<[1], [0], [0], [1], [0, 0, 1, 1], [], []>} : vector<256x4xbf16>, vector<4x128xbf16>, vector<256x128xf32> -> vector<256x128xf32>
    %15 = arith.addf %10, %14 : vector<256x128xf32>
    %c0_20 = arith.constant 0 : index
    %c0_21 = arith.constant 0 : index
    %16 = vector.load %arg14[%c0_20, %c0_21] : memref<256x128xf32, #tpu.memory_space<vmem>>, vector<256x128xf32>
    tpu.vector_store %arg14[%c0_20, %c0_21], %15 {strides = array<i32>} : memref<256x128xf32, #tpu.memory_space<vmem>>, vector<256x128xf32>,
    %c0_22 = arith.constant 0 : index
    %c1_23 = arith.constant 1 : index
    %c0_24 = arith.constant 0 : index
    %17 = vector.load %arg12[%c0_22, %c1_23, %c0_24] : memref<18x18x4xf32, #tpu.memory_space<vmem>>, vector<16x16x4xf32>
    %18 = vector.shape_cast %17 : vector<16x16x4xf32> to vector<256x4xf32>
    %c0_25 = arith.constant 0 : index
    %c0_26 = arith.constant 0 : index
    %19 = vector.load %arg14[%c0_25, %c0_26] : memref<256x128xf32, #tpu.memory_space<vmem>>, vector<256x128xf32>
    %20 = arith.truncf %18 : vector<256x4xf32> to vector<256x4xbf16>
    %c1_27 = arith.constant 1 : index
    %c0_28 = arith.constant 0 : index
    %c0_29 = arith.constant 0 : index
    %21 = vector.load %arg2[%c1_27, %c0_28, %c0_29] : memref<9x4x128xbf16, #tpu.memory_space<vmem>>, vector<1x4x128xbf16>
    %22 = vector.shape_cast %21 : vector<1x4x128xbf16> to vector<4x128xbf16>
    %cst_30 = arith.constant dense<0.000000e+00> : vector<256x128xf32>
    %23 = tpu.matmul %20, %22, %cst_30 {dimension_numbers = #tpu.dot_dimension_numbers<[1], [0], [0], [1], [0, 0, 1, 1], [], []>} : vector<256x4xbf16>, vector<4x128xbf16>, vector<256x128xf32> -> vector<256x128xf32>
    %24 = arith.addf %19, %23 : vector<256x128xf32>
    %c0_31 = arith.constant 0 : index
    %c0_32 = arith.constant 0 : index
    %25 = vector.load %arg14[%c0_31, %c0_32] : memref<256x128xf32, #tpu.memory_space<vmem>>, vector<256x128xf32>
    tpu.vector_store %arg14[%c0_31, %c0_32], %24 {strides = array<i32>} : memref<256x128xf32, #tpu.memory_space<vmem>>, vector<256x128xf32>,
    %c0_33 = arith.constant 0 : index
    %c2 = arith.constant 2 : index
    %c0_34 = arith.constant 0 : index
    %26 = vector.load %arg12[%c0_33, %c2, %c0_34] : memref<18x18x4xf32, #tpu.memory_space<vmem>>, vector<16x16x4xf32>
    %27 = vector.shape_cast %26 : vector<16x16x4xf32> to vector<256x4xf32>
    %c0_35 = arith.constant 0 : index
    %c0_36 = arith.constant 0 : index
    %28 = vector.load %arg14[%c0_35, %c0_36] : memref<256x128xf32, #tpu.memory_space<vmem>>, vector<256x128xf32>
    %29 = arith.truncf %27 : vector<256x4xf32> to vector<256x4xbf16>
    %c2_37 = arith.constant 2 : index
    %c0_38 = arith.constant 0 : index
    %c0_39 = arith.constant 0 : index
    %30 = vector.load %arg2[%c2_37, %c0_38, %c0_39] : memref<9x4x128xbf16, #tpu.memory_space<vmem>>, vector<1x4x128xbf16>
    %31 = vector.shape_cast %30 : vector<1x4x128xbf16> to vector<4x128xbf16>
    %cst_40 = arith.constant dense<0.000000e+00> : vector<256x128xf32>
    %32 = tpu.matmul %29, %31, %cst_40 {dimension_numbers = #tpu.dot_dimension_numbers<[1], [0], [0], [1], [0, 0, 1, 1], [], []>} : vector<256x4xbf16>, vector<4x128xbf16>, vector<256x128xf32> -> vector<256x128xf32>
    %33 = arith.addf %28, %32 : vector<256x128xf32>
    %c0_41 = arith.constant 0 : index
    %c0_42 = arith.constant 0 : index
    %34 = vector.load %arg14[%c0_41, %c0_42] : memref<256x128xf32, #tpu.memory_space<vmem>>, vector<256x128xf32>
    tpu.vector_store %arg14[%c0_41, %c0_42], %33 {strides = array<i32>} : memref<256x128xf32, #tpu.memory_space<vmem>>, vector<256x128xf32>,
    %c1_43 = arith.constant 1 : index
    %c0_44 = arith.constant 0 : index
    %c0_45 = arith.constant 0 : index
    %35 = vector.load %arg12[%c1_43, %c0_44, %c0_45] : memref<18x18x4xf32, #tpu.memory_space<vmem>>, vector<16x16x4xf32>
    %36 = vector.shape_cast %35 : vector<16x16x4xf32> to vector<256x4xf32>
    %c0_46 = arith.constant 0 : index
    %c0_47 = arith.constant 0 : index
    %37 = vector.load %arg14[%c0_46, %c0_47] : memref<256x128xf32, #tpu.memory_space<vmem>>, vector<256x128xf32>
    %38 = arith.truncf %36 : vector<256x4xf32> to vector<256x4xbf16>
    %c3 = arith.constant 3 : index
    %c0_48 = arith.constant 0 : index
    %c0_49 = arith.constant 0 : index
    %39 = vector.load %arg2[%c3, %c0_48, %c0_49] : memref<9x4x128xbf16, #tpu.memory_space<vmem>>, vector<1x4x128xbf16>
    %40 = vector.shape_cast %39 : vector<1x4x128xbf16> to vector<4x128xbf16>
    %cst_50 = arith.constant dense<0.000000e+00> : vector<256x128xf32>
    %41 = tpu.matmul %38, %40, %cst_50 {dimension_numbers = #tpu.dot_dimension_numbers<[1], [0], [0], [1], [0, 0, 1, 1], [], []>} : vector<256x4xbf16>, vector<4x128xbf16>, vector<256x128xf32> -> vector<256x128xf32>
    %42 = arith.addf %37, %41 : vector<256x128xf32>
    %c0_51 = arith.constant 0 : index
    %c0_52 = arith.constant 0 : index
    %43 = vector.load %arg14[%c0_51, %c0_52] : memref<256x128xf32, #tpu.memory_space<vmem>>, vector<256x128xf32>
    tpu.vector_store %arg14[%c0_51, %c0_52], %42 {strides = array<i32>} : memref<256x128xf32, #tpu.memory_space<vmem>>, vector<256x128xf32>,
    %c1_53 = arith.constant 1 : index
    %c1_54 = arith.constant 1 : index
    %c0_55 = arith.constant 0 : index
    %44 = vector.load %arg12[%c1_53, %c1_54, %c0_55] : memref<18x18x4xf32, #tpu.memory_space<vmem>>, vector<16x16x4xf32>
    %45 = vector.shape_cast %44 : vector<16x16x4xf32> to vector<256x4xf32>
    %c0_56 = arith.constant 0 : index
    %c0_57 = arith.constant 0 : index
    %46 = vector.load %arg14[%c0_56, %c0_57] : memref<256x128xf32, #tpu.memory_space<vmem>>, vector<256x128xf32>
    %47 = arith.truncf %45 : vector<256x4xf32> to vector<256x4xbf16>
    %c4 = arith.constant 4 : index
    %c0_58 = arith.constant 0 : index
    %c0_59 = arith.constant 0 : index
    %48 = vector.load %arg2[%c4, %c0_58, %c0_59] : memref<9x4x128xbf16, #tpu.memory_space<vmem>>, vector<1x4x128xbf16>
    %49 = vector.shape_cast %48 : vector<1x4x128xbf16> to vector<4x128xbf16>
    %cst_60 = arith.constant dense<0.000000e+00> : vector<256x128xf32>
    %50 = tpu.matmul %47, %49, %cst_60 {dimension_numbers = #tpu.dot_dimension_numbers<[1], [0], [0], [1], [0, 0, 1, 1], [], []>} : vector<256x4xbf16>, vector<4x128xbf16>, vector<256x128xf32> -> vector<256x128xf32>
    %51 = arith.addf %46, %50 : vector<256x128xf32>
    %c0_61 = arith.constant 0 : index
    %c0_62 = arith.constant 0 : index
    %52 = vector.load %arg14[%c0_61, %c0_62] : memref<256x128xf32, #tpu.memory_space<vmem>>, vector<256x128xf32>
    tpu.vector_store %arg14[%c0_61, %c0_62], %51 {strides = array<i32>} : memref<256x128xf32, #tpu.memory_space<vmem>>, vector<256x128xf32>,
    %c1_63 = arith.constant 1 : index
    %c2_64 = arith.constant 2 : index
    %c0_65 = arith.constant 0 : index
    %53 = vector.load %arg12[%c1_63, %c2_64, %c0_65] : memref<18x18x4xf32, #tpu.memory_space<vmem>>, vector<16x16x4xf32>
    %54 = vector.shape_cast %53 : vector<16x16x4xf32> to vector<256x4xf32>
    %c0_66 = arith.constant 0 : index
    %c0_67 = arith.constant 0 : index
    %55 = vector.load %arg14[%c0_66, %c0_67] : memref<256x128xf32, #tpu.memory_space<vmem>>, vector<256x128xf32>
    %56 = arith.truncf %54 : vector<256x4xf32> to vector<256x4xbf16>
    %c5 = arith.constant 5 : index
    %c0_68 = arith.constant 0 : index
    %c0_69 = arith.constant 0 : index
    %57 = vector.load %arg2[%c5, %c0_68, %c0_69] : memref<9x4x128xbf16, #tpu.memory_space<vmem>>, vector<1x4x128xbf16>
    %58 = vector.shape_cast %57 : vector<1x4x128xbf16> to vector<4x128xbf16>
    %cst_70 = arith.constant dense<0.000000e+00> : vector<256x128xf32>
    %59 = tpu.matmul %56, %58, %cst_70 {dimension_numbers = #tpu.dot_dimension_numbers<[1], [0], [0], [1], [0, 0, 1, 1], [], []>} : vector<256x4xbf16>, vector<4x128xbf16>, vector<256x128xf32> -> vector<256x128xf32>
    %60 = arith.addf %55, %59 : vector<256x128xf32>
    %c0_71 = arith.constant 0 : index
    %c0_72 = arith.constant 0 : index
    %61 = vector.load %arg14[%c0_71, %c0_72] : memref<256x128xf32, #tpu.memory_space<vmem>>, vector<256x128xf32>
    tpu.vector_store %arg14[%c0_71, %c0_72], %60 {strides = array<i32>} : memref<256x128xf32, #tpu.memory_space<vmem>>, vector<256x128xf32>,
    %c2_73 = arith.constant 2 : index
    %c0_74 = arith.constant 0 : index
    %c0_75 = arith.constant 0 : index
    %62 = vector.load %arg12[%c2_73, %c0_74, %c0_75] : memref<18x18x4xf32, #tpu.memory_space<vmem>>, vector<16x16x4xf32>
    %63 = vector.shape_cast %62 : vector<16x16x4xf32> to vector<256x4xf32>
    %c0_76 = arith.constant 0 : index
    %c0_77 = arith.constant 0 : index
    %64 = vector.load %arg14[%c0_76, %c0_77] : memref<256x128xf32, #tpu.memory_space<vmem>>, vector<256x128xf32>
    %65 = arith.truncf %63 : vector<256x4xf32> to vector<256x4xbf16>
    %c6 = arith.constant 6 : index
    %c0_78 = arith.constant 0 : index
    %c0_79 = arith.constant 0 : index
    %66 = vector.load %arg2[%c6, %c0_78, %c0_79] : memref<9x4x128xbf16, #tpu.memory_space<vmem>>, vector<1x4x128xbf16>
    %67 = vector.shape_cast %66 : vector<1x4x128xbf16> to vector<4x128xbf16>
    %cst_80 = arith.constant dense<0.000000e+00> : vector<256x128xf32>
    %68 = tpu.matmul %65, %67, %cst_80 {dimension_numbers = #tpu.dot_dimension_numbers<[1], [0], [0], [1], [0, 0, 1, 1], [], []>} : vector<256x4xbf16>, vector<4x128xbf16>, vector<256x128xf32> -> vector<256x128xf32>
    %69 = arith.addf %64, %68 : vector<256x128xf32>
    %c0_81 = arith.constant 0 : index
    %c0_82 = arith.constant 0 : index
    %70 = vector.load %arg14[%c0_81, %c0_82] : memref<256x128xf32, #tpu.memory_space<vmem>>, vector<256x128xf32>
    tpu.vector_store %arg14[%c0_81, %c0_82], %69 {strides = array<i32>} : memref<256x128xf32, #tpu.memory_space<vmem>>, vector<256x128xf32>,
    %c2_83 = arith.constant 2 : index
    %c1_84 = arith.constant 1 : index
    %c0_85 = arith.constant 0 : index
    %71 = vector.load %arg12[%c2_83, %c1_84, %c0_85] : memref<18x18x4xf32, #tpu.memory_space<vmem>>, vector<16x16x4xf32>
    %72 = vector.shape_cast %71 : vector<16x16x4xf32> to vector<256x4xf32>
    %c0_86 = arith.constant 0 : index
    %c0_87 = arith.constant 0 : index
    %73 = vector.load %arg14[%c0_86, %c0_87] : memref<256x128xf32, #tpu.memory_space<vmem>>, vector<256x128xf32>
    %74 = arith.truncf %72 : vector<256x4xf32> to vector<256x4xbf16>
    %c7 = arith.constant 7 : index
    %c0_88 = arith.constant 0 : index
    %c0_89 = arith.constant 0 : index
    %75 = vector.load %arg2[%c7, %c0_88, %c0_89] : memref<9x4x128xbf16, #tpu.memory_space<vmem>>, vector<1x4x128xbf16>
    %76 = vector.shape_cast %75 : vector<1x4x128xbf16> to vector<4x128xbf16>
    %cst_90 = arith.constant dense<0.000000e+00> : vector<256x128xf32>
    %77 = tpu.matmul %74, %76, %cst_90 {dimension_numbers = #tpu.dot_dimension_numbers<[1], [0], [0], [1], [0, 0, 1, 1], [], []>} : vector<256x4xbf16>, vector<4x128xbf16>, vector<256x128xf32> -> vector<256x128xf32>
    %78 = arith.addf %73, %77 : vector<256x128xf32>
    %c0_91 = arith.constant 0 : index
    %c0_92 = arith.constant 0 : index
    %79 = vector.load %arg14[%c0_91, %c0_92] : memref<256x128xf32, #tpu.memory_space<vmem>>, vector<256x128xf32>
    tpu.vector_store %arg14[%c0_91, %c0_92], %78 {strides = array<i32>} : memref<256x128xf32, #tpu.memory_space<vmem>>, vector<256x128xf32>,
    %c2_93 = arith.constant 2 : index
    %c2_94 = arith.constant 2 : index
    %c0_95 = arith.constant 0 : index
    %80 = vector.load %arg12[%c2_93, %c2_94, %c0_95] : memref<18x18x4xf32, #tpu.memory_space<vmem>>, vector<16x16x4xf32>
    %81 = vector.shape_cast %80 : vector<16x16x4xf32> to vector<256x4xf32>
    %c0_96 = arith.constant 0 : index
    %c0_97 = arith.constant 0 : index
    %82 = vector.load %arg14[%c0_96, %c0_97] : memref<256x128xf32, #tpu.memory_space<vmem>>, vector<256x128xf32>
    %83 = arith.truncf %81 : vector<256x4xf32> to vector<256x4xbf16>
    %c8 = arith.constant 8 : index
    %c0_98 = arith.constant 0 : index
    %c0_99 = arith.constant 0 : index
    %84 = vector.load %arg2[%c8, %c0_98, %c0_99] : memref<9x4x128xbf16, #tpu.memory_space<vmem>>, vector<1x4x128xbf16>
    %85 = vector.shape_cast %84 : vector<1x4x128xbf16> to vector<4x128xbf16>
    %cst_100 = arith.constant dense<0.000000e+00> : vector<256x128xf32>
    %86 = tpu.matmul %83, %85, %cst_100 {dimension_numbers = #tpu.dot_dimension_numbers<[1], [0], [0], [1], [0, 0, 1, 1], [], []>} : vector<256x4xbf16>, vector<4x128xbf16>, vector<256x128xf32> -> vector<256x128xf32>
    %87 = arith.addf %82, %86 : vector<256x128xf32>
    %c0_101 = arith.constant 0 : index
    %c0_102 = arith.constant 0 : index
    %88 = vector.load %arg14[%c0_101, %c0_102] : memref<256x128xf32, #tpu.memory_space<vmem>>, vector<256x128xf32>
    tpu.vector_store %arg14[%c0_101, %c0_102], %87 {strides = array<i32>} : memref<256x128xf32, #tpu.memory_space<vmem>>, vector<256x128xf32>,
    %c0_103 = arith.constant 0 : index
    %c0_104 = arith.constant 0 : index
    %89 = vector.load %arg14[%c0_103, %c0_104] : memref<256x128xf32, #tpu.memory_space<vmem>>, vector<256x128xf32>
    %c0_105 = arith.constant 0 : index
    %c0_106 = arith.constant 0 : index
    %90 = vector.load %arg5[%c0_105, %c0_106] : memref<1x128xf32, #tpu.memory_space<vmem>>, vector<1x128xf32>
    %91 = vector.broadcast %90 : vector<1x128xf32> to vector<256x128xf32>
    %92 = arith.mulf %89, %91 : vector<256x128xf32>
    %c0_107 = arith.constant 0 : index
    %c0_108 = arith.constant 0 : index
    %93 = vector.load %arg6[%c0_107, %c0_108] : memref<1x128xf32, #tpu.memory_space<vmem>>, vector<1x128xf32>
    %94 = vector.broadcast %93 : vector<1x128xf32> to vector<256x128xf32>
    %95 = arith.addf %92, %94 : vector<256x128xf32>
    %cst_109 = arith.constant 0.000000e+00 : f32
    %96 = vector.broadcast %cst_109 : f32 to vector<256x128xf32>
    %97 = arith.maximumf %95, %96 : vector<256x128xf32>
    %cst_110 = arith.constant 0.000000e+00 : f32
    %98 = vector.broadcast %cst_110 : f32 to vector<18x18x128xf32>
    %c0_111 = arith.constant 0 : index
    %c0_112 = arith.constant 0 : index
    %c0_113 = arith.constant 0 : index
    %99 = vector.load %arg13[%c0_111, %c0_112, %c0_113] : memref<18x18x128xf32, #tpu.memory_space<vmem>>, vector<18x18x128xf32>
    tpu.vector_store %arg13[%c0_111, %c0_112, %c0_113], %98 {strides = array<i32>} : memref<18x18x128xf32, #tpu.memory_space<vmem>>, vector<18x18x128xf32>,
    %100 = vector.shape_cast %97 : vector<256x128xf32> to vector<16x16x128xf32>
    %c1_114 = arith.constant 1 : index
    %c1_115 = arith.constant 1 : index
    %c0_116 = arith.constant 0 : index
    %101 = vector.load %arg13[%c1_114, %c1_115, %c0_116] : memref<18x18x128xf32, #tpu.memory_space<vmem>>, vector<16x16x128xf32>
    tpu.vector_store %arg13[%c1_114, %c1_115, %c0_116], %100 {strides = array<i32>} : memref<18x18x128xf32, #tpu.memory_space<vmem>>, vector<16x16x128xf32>,
    %102 = vector.shape_cast %4 : vector<16x16x4xf32> to vector<256x4xf32>
    %103 = arith.truncf %102 : vector<256x4xf32> to vector<256x4xbf16>
    %c0_117 = arith.constant 0 : index
    %c0_118 = arith.constant 0 : index
    %104 = vector.load %arg4[%c0_117, %c0_118] : memref<4x128xbf16, #tpu.memory_space<vmem>>, vector<4x128xbf16>
    %cst_119 = arith.constant dense<0.000000e+00> : vector<256x128xf32>
    %105 = tpu.matmul %103, %104, %cst_119 {dimension_numbers = #tpu.dot_dimension_numbers<[1], [0], [0], [1], [0, 0, 1, 1], [], []>} : vector<256x4xbf16>, vector<4x128xbf16>, vector<256x128xf32> -> vector<256x128xf32>
    %c0_120 = arith.constant 0 : index
    %c0_121 = arith.constant 0 : index
    %106 = vector.load %arg9[%c0_120, %c0_121] : memref<1x128xf32, #tpu.memory_space<vmem>>, vector<1x128xf32>
    %107 = vector.broadcast %106 : vector<1x128xf32> to vector<256x128xf32>
    %108 = arith.mulf %105, %107 : vector<256x128xf32>
    %c0_122 = arith.constant 0 : index
    %c0_123 = arith.constant 0 : index
    %109 = vector.load %arg10[%c0_122, %c0_123] : memref<1x128xf32, #tpu.memory_space<vmem>>, vector<1x128xf32>
    %110 = vector.broadcast %109 : vector<1x128xf32> to vector<256x128xf32>
    %111 = arith.addf %108, %110 : vector<256x128xf32>
    %c0_124 = arith.constant 0 : index
    %c0_125 = arith.constant 0 : index
    %112 = vector.load %arg15[%c0_124, %c0_125] : memref<256x128xf32, #tpu.memory_space<vmem>>, vector<256x128xf32>
    tpu.vector_store %arg15[%c0_124, %c0_125], %111 {strides = array<i32>} : memref<256x128xf32, #tpu.memory_space<vmem>>, vector<256x128xf32>,
    %cst_126 = arith.constant 0.000000e+00 : f32
    %113 = vector.broadcast %cst_126 : f32 to vector<256x128xf32>
    %c0_127 = arith.constant 0 : index
    %c0_128 = arith.constant 0 : index
    %114 = vector.load %arg14[%c0_127, %c0_128] : memref<256x128xf32, #tpu.memory_space<vmem>>, vector<256x128xf32>
    tpu.vector_store %arg14[%c0_127, %c0_128], %113 {strides = array<i32>} : memref<256x128xf32, #tpu.memory_space<vmem>>, vector<256x128xf32>,
    %c0_129 = arith.constant 0 : index
    %c0_130 = arith.constant 0 : index
    %c0_131 = arith.constant 0 : index
    %115 = vector.load %arg13[%c0_129, %c0_130, %c0_131] : memref<18x18x128xf32, #tpu.memory_space<vmem>>, vector<16x16x128xf32>
    %116 = vector.shape_cast %115 : vector<16x16x128xf32> to vector<256x128xf32>
    %c0_132 = arith.constant 0 : index
    %c0_133 = arith.constant 0 : index
    %117 = vector.load %arg14[%c0_132, %c0_133] : memref<256x128xf32, #tpu.memory_space<vmem>>, vector<256x128xf32>
    %118 = arith.truncf %116 : vector<256x128xf32> to vector<256x128xbf16>
    %c0_134 = arith.constant 0 : index
    %c0_135 = arith.constant 0 : index
    %c0_136 = arith.constant 0 : index
    %119 = vector.load %arg3[%c0_134, %c0_135, %c0_136] : memref<9x128x128xbf16, #tpu.memory_space<vmem>>, vector<1x128x128xbf16>
    %120 = vector.shape_cast %119 : vector<1x128x128xbf16> to vector<128x128xbf16>
    %cst_137 = arith.constant dense<0.000000e+00> : vector<256x128xf32>
    %121 = tpu.matmul %118, %120, %cst_137 {dimension_numbers = #tpu.dot_dimension_numbers<[1], [0], [0], [1], [0, 0, 1, 1], [], []>} : vector<256x128xbf16>, vector<128x128xbf16>, vector<256x128xf32> -> vector<256x128xf32>
    %122 = arith.addf %117, %121 : vector<256x128xf32>
    %c0_138 = arith.constant 0 : index
    %c0_139 = arith.constant 0 : index
    %123 = vector.load %arg14[%c0_138, %c0_139] : memref<256x128xf32, #tpu.memory_space<vmem>>, vector<256x128xf32>
    tpu.vector_store %arg14[%c0_138, %c0_139], %122 {strides = array<i32>} : memref<256x128xf32, #tpu.memory_space<vmem>>, vector<256x128xf32>,
    %c0_140 = arith.constant 0 : index
    %c1_141 = arith.constant 1 : index
    %c0_142 = arith.constant 0 : index
    %124 = vector.load %arg13[%c0_140, %c1_141, %c0_142] : memref<18x18x128xf32, #tpu.memory_space<vmem>>, vector<16x16x128xf32>
    %125 = vector.shape_cast %124 : vector<16x16x128xf32> to vector<256x128xf32>
    %c0_143 = arith.constant 0 : index
    %c0_144 = arith.constant 0 : index
    %126 = vector.load %arg14[%c0_143, %c0_144] : memref<256x128xf32, #tpu.memory_space<vmem>>, vector<256x128xf32>
    %127 = arith.truncf %125 : vector<256x128xf32> to vector<256x128xbf16>
    %c1_145 = arith.constant 1 : index
    %c0_146 = arith.constant 0 : index
    %c0_147 = arith.constant 0 : index
    %128 = vector.load %arg3[%c1_145, %c0_146, %c0_147] : memref<9x128x128xbf16, #tpu.memory_space<vmem>>, vector<1x128x128xbf16>
    %129 = vector.shape_cast %128 : vector<1x128x128xbf16> to vector<128x128xbf16>
    %cst_148 = arith.constant dense<0.000000e+00> : vector<256x128xf32>
    %130 = tpu.matmul %127, %129, %cst_148 {dimension_numbers = #tpu.dot_dimension_numbers<[1], [0], [0], [1], [0, 0, 1, 1], [], []>} : vector<256x128xbf16>, vector<128x128xbf16>, vector<256x128xf32> -> vector<256x128xf32>
    %131 = arith.addf %126, %130 : vector<256x128xf32>
    %c0_149 = arith.constant 0 : index
    %c0_150 = arith.constant 0 : index
    %132 = vector.load %arg14[%c0_149, %c0_150] : memref<256x128xf32, #tpu.memory_space<vmem>>, vector<256x128xf32>
    tpu.vector_store %arg14[%c0_149, %c0_150], %131 {strides = array<i32>} : memref<256x128xf32, #tpu.memory_space<vmem>>, vector<256x128xf32>,
    %c0_151 = arith.constant 0 : index
    %c2_152 = arith.constant 2 : index
    %c0_153 = arith.constant 0 : index
    %133 = vector.load %arg13[%c0_151, %c2_152, %c0_153] : memref<18x18x128xf32, #tpu.memory_space<vmem>>, vector<16x16x128xf32>
    %134 = vector.shape_cast %133 : vector<16x16x128xf32> to vector<256x128xf32>
    %c0_154 = arith.constant 0 : index
    %c0_155 = arith.constant 0 : index
    %135 = vector.load %arg14[%c0_154, %c0_155] : memref<256x128xf32, #tpu.memory_space<vmem>>, vector<256x128xf32>
    %136 = arith.truncf %134 : vector<256x128xf32> to vector<256x128xbf16>
    %c2_156 = arith.constant 2 : index
    %c0_157 = arith.constant 0 : index
    %c0_158 = arith.constant 0 : index
    %137 = vector.load %arg3[%c2_156, %c0_157, %c0_158] : memref<9x128x128xbf16, #tpu.memory_space<vmem>>, vector<1x128x128xbf16>
    %138 = vector.shape_cast %137 : vector<1x128x128xbf16> to vector<128x128xbf16>
    %cst_159 = arith.constant dense<0.000000e+00> : vector<256x128xf32>
    %139 = tpu.matmul %136, %138, %cst_159 {dimension_numbers = #tpu.dot_dimension_numbers<[1], [0], [0], [1], [0, 0, 1, 1], [], []>} : vector<256x128xbf16>, vector<128x128xbf16>, vector<256x128xf32> -> vector<256x128xf32>
    %140 = arith.addf %135, %139 : vector<256x128xf32>
    %c0_160 = arith.constant 0 : index
    %c0_161 = arith.constant 0 : index
    %141 = vector.load %arg14[%c0_160, %c0_161] : memref<256x128xf32, #tpu.memory_space<vmem>>, vector<256x128xf32>
    tpu.vector_store %arg14[%c0_160, %c0_161], %140 {strides = array<i32>} : memref<256x128xf32, #tpu.memory_space<vmem>>, vector<256x128xf32>,
    %c1_162 = arith.constant 1 : index
    %c0_163 = arith.constant 0 : index
    %c0_164 = arith.constant 0 : index
    %142 = vector.load %arg13[%c1_162, %c0_163, %c0_164] : memref<18x18x128xf32, #tpu.memory_space<vmem>>, vector<16x16x128xf32>
    %143 = vector.shape_cast %142 : vector<16x16x128xf32> to vector<256x128xf32>
    %c0_165 = arith.constant 0 : index
    %c0_166 = arith.constant 0 : index
    %144 = vector.load %arg14[%c0_165, %c0_166] : memref<256x128xf32, #tpu.memory_space<vmem>>, vector<256x128xf32>
    %145 = arith.truncf %143 : vector<256x128xf32> to vector<256x128xbf16>
    %c3_167 = arith.constant 3 : index
    %c0_168 = arith.constant 0 : index
    %c0_169 = arith.constant 0 : index
    %146 = vector.load %arg3[%c3_167, %c0_168, %c0_169] : memref<9x128x128xbf16, #tpu.memory_space<vmem>>, vector<1x128x128xbf16>
    %147 = vector.shape_cast %146 : vector<1x128x128xbf16> to vector<128x128xbf16>
    %cst_170 = arith.constant dense<0.000000e+00> : vector<256x128xf32>
    %148 = tpu.matmul %145, %147, %cst_170 {dimension_numbers = #tpu.dot_dimension_numbers<[1], [0], [0], [1], [0, 0, 1, 1], [], []>} : vector<256x128xbf16>, vector<128x128xbf16>, vector<256x128xf32> -> vector<256x128xf32>
    %149 = arith.addf %144, %148 : vector<256x128xf32>
    %c0_171 = arith.constant 0 : index
    %c0_172 = arith.constant 0 : index
    %150 = vector.load %arg14[%c0_171, %c0_172] : memref<256x128xf32, #tpu.memory_space<vmem>>, vector<256x128xf32>
    tpu.vector_store %arg14[%c0_171, %c0_172], %149 {strides = array<i32>} : memref<256x128xf32, #tpu.memory_space<vmem>>, vector<256x128xf32>,
    %c1_173 = arith.constant 1 : index
    %c1_174 = arith.constant 1 : index
    %c0_175 = arith.constant 0 : index
    %151 = vector.load %arg13[%c1_173, %c1_174, %c0_175] : memref<18x18x128xf32, #tpu.memory_space<vmem>>, vector<16x16x128xf32>
    %152 = vector.shape_cast %151 : vector<16x16x128xf32> to vector<256x128xf32>
    %c0_176 = arith.constant 0 : index
    %c0_177 = arith.constant 0 : index
    %153 = vector.load %arg14[%c0_176, %c0_177] : memref<256x128xf32, #tpu.memory_space<vmem>>, vector<256x128xf32>
    %154 = arith.truncf %152 : vector<256x128xf32> to vector<256x128xbf16>
    %c4_178 = arith.constant 4 : index
    %c0_179 = arith.constant 0 : index
    %c0_180 = arith.constant 0 : index
    %155 = vector.load %arg3[%c4_178, %c0_179, %c0_180] : memref<9x128x128xbf16, #tpu.memory_space<vmem>>, vector<1x128x128xbf16>
    %156 = vector.shape_cast %155 : vector<1x128x128xbf16> to vector<128x128xbf16>
    %cst_181 = arith.constant dense<0.000000e+00> : vector<256x128xf32>
    %157 = tpu.matmul %154, %156, %cst_181 {dimension_numbers = #tpu.dot_dimension_numbers<[1], [0], [0], [1], [0, 0, 1, 1], [], []>} : vector<256x128xbf16>, vector<128x128xbf16>, vector<256x128xf32> -> vector<256x128xf32>
    %158 = arith.addf %153, %157 : vector<256x128xf32>
    %c0_182 = arith.constant 0 : index
    %c0_183 = arith.constant 0 : index
    %159 = vector.load %arg14[%c0_182, %c0_183] : memref<256x128xf32, #tpu.memory_space<vmem>>, vector<256x128xf32>
    tpu.vector_store %arg14[%c0_182, %c0_183], %158 {strides = array<i32>} : memref<256x128xf32, #tpu.memory_space<vmem>>, vector<256x128xf32>,
    %c1_184 = arith.constant 1 : index
    %c2_185 = arith.constant 2 : index
    %c0_186 = arith.constant 0 : index
    %160 = vector.load %arg13[%c1_184, %c2_185, %c0_186] : memref<18x18x128xf32, #tpu.memory_space<vmem>>, vector<16x16x128xf32>
    %161 = vector.shape_cast %160 : vector<16x16x128xf32> to vector<256x128xf32>
    %c0_187 = arith.constant 0 : index
    %c0_188 = arith.constant 0 : index
    %162 = vector.load %arg14[%c0_187, %c0_188] : memref<256x128xf32, #tpu.memory_space<vmem>>, vector<256x128xf32>
    %163 = arith.truncf %161 : vector<256x128xf32> to vector<256x128xbf16>
    %c5_189 = arith.constant 5 : index
    %c0_190 = arith.constant 0 : index
    %c0_191 = arith.constant 0 : index
    %164 = vector.load %arg3[%c5_189, %c0_190, %c0_191] : memref<9x128x128xbf16, #tpu.memory_space<vmem>>, vector<1x128x128xbf16>
    %165 = vector.shape_cast %164 : vector<1x128x128xbf16> to vector<128x128xbf16>
    %cst_192 = arith.constant dense<0.000000e+00> : vector<256x128xf32>
    %166 = tpu.matmul %163, %165, %cst_192 {dimension_numbers = #tpu.dot_dimension_numbers<[1], [0], [0], [1], [0, 0, 1, 1], [], []>} : vector<256x128xbf16>, vector<128x128xbf16>, vector<256x128xf32> -> vector<256x128xf32>
    %167 = arith.addf %162, %166 : vector<256x128xf32>
    %c0_193 = arith.constant 0 : index
    %c0_194 = arith.constant 0 : index
    %168 = vector.load %arg14[%c0_193, %c0_194] : memref<256x128xf32, #tpu.memory_space<vmem>>, vector<256x128xf32>
    tpu.vector_store %arg14[%c0_193, %c0_194], %167 {strides = array<i32>} : memref<256x128xf32, #tpu.memory_space<vmem>>, vector<256x128xf32>,
    %c2_195 = arith.constant 2 : index
    %c0_196 = arith.constant 0 : index
    %c0_197 = arith.constant 0 : index
    %169 = vector.load %arg13[%c2_195, %c0_196, %c0_197] : memref<18x18x128xf32, #tpu.memory_space<vmem>>, vector<16x16x128xf32>
    %170 = vector.shape_cast %169 : vector<16x16x128xf32> to vector<256x128xf32>
    %c0_198 = arith.constant 0 : index
    %c0_199 = arith.constant 0 : index
    %171 = vector.load %arg14[%c0_198, %c0_199] : memref<256x128xf32, #tpu.memory_space<vmem>>, vector<256x128xf32>
    %172 = arith.truncf %170 : vector<256x128xf32> to vector<256x128xbf16>
    %c6_200 = arith.constant 6 : index
    %c0_201 = arith.constant 0 : index
    %c0_202 = arith.constant 0 : index
    %173 = vector.load %arg3[%c6_200, %c0_201, %c0_202] : memref<9x128x128xbf16, #tpu.memory_space<vmem>>, vector<1x128x128xbf16>
    %174 = vector.shape_cast %173 : vector<1x128x128xbf16> to vector<128x128xbf16>
    %cst_203 = arith.constant dense<0.000000e+00> : vector<256x128xf32>
    %175 = tpu.matmul %172, %174, %cst_203 {dimension_numbers = #tpu.dot_dimension_numbers<[1], [0], [0], [1], [0, 0, 1, 1], [], []>} : vector<256x128xbf16>, vector<128x128xbf16>, vector<256x128xf32> -> vector<256x128xf32>
    %176 = arith.addf %171, %175 : vector<256x128xf32>
    %c0_204 = arith.constant 0 : index
    %c0_205 = arith.constant 0 : index
    %177 = vector.load %arg14[%c0_204, %c0_205] : memref<256x128xf32, #tpu.memory_space<vmem>>, vector<256x128xf32>
    tpu.vector_store %arg14[%c0_204, %c0_205], %176 {strides = array<i32>} : memref<256x128xf32, #tpu.memory_space<vmem>>, vector<256x128xf32>,
    %c2_206 = arith.constant 2 : index
    %c1_207 = arith.constant 1 : index
    %c0_208 = arith.constant 0 : index
    %178 = vector.load %arg13[%c2_206, %c1_207, %c0_208] : memref<18x18x128xf32, #tpu.memory_space<vmem>>, vector<16x16x128xf32>
    %179 = vector.shape_cast %178 : vector<16x16x128xf32> to vector<256x128xf32>
    %c0_209 = arith.constant 0 : index
    %c0_210 = arith.constant 0 : index
    %180 = vector.load %arg14[%c0_209, %c0_210] : memref<256x128xf32, #tpu.memory_space<vmem>>, vector<256x128xf32>
    %181 = arith.truncf %179 : vector<256x128xf32> to vector<256x128xbf16>
    %c7_211 = arith.constant 7 : index
    %c0_212 = arith.constant 0 : index
    %c0_213 = arith.constant 0 : index
    %182 = vector.load %arg3[%c7_211, %c0_212, %c0_213] : memref<9x128x128xbf16, #tpu.memory_space<vmem>>, vector<1x128x128xbf16>
    %183 = vector.shape_cast %182 : vector<1x128x128xbf16> to vector<128x128xbf16>
    %cst_214 = arith.constant dense<0.000000e+00> : vector<256x128xf32>
    %184 = tpu.matmul %181, %183, %cst_214 {dimension_numbers = #tpu.dot_dimension_numbers<[1], [0], [0], [1], [0, 0, 1, 1], [], []>} : vector<256x128xbf16>, vector<128x128xbf16>, vector<256x128xf32> -> vector<256x128xf32>
    %185 = arith.addf %180, %184 : vector<256x128xf32>
    %c0_215 = arith.constant 0 : index
    %c0_216 = arith.constant 0 : index
    %186 = vector.load %arg14[%c0_215, %c0_216] : memref<256x128xf32, #tpu.memory_space<vmem>>, vector<256x128xf32>
    tpu.vector_store %arg14[%c0_215, %c0_216], %185 {strides = array<i32>} : memref<256x128xf32, #tpu.memory_space<vmem>>, vector<256x128xf32>,
    %c2_217 = arith.constant 2 : index
    %c2_218 = arith.constant 2 : index
    %c0_219 = arith.constant 0 : index
    %187 = vector.load %arg13[%c2_217, %c2_218, %c0_219] : memref<18x18x128xf32, #tpu.memory_space<vmem>>, vector<16x16x128xf32>
    %188 = vector.shape_cast %187 : vector<16x16x128xf32> to vector<256x128xf32>
    %c0_220 = arith.constant 0 : index
    %c0_221 = arith.constant 0 : index
    %189 = vector.load %arg14[%c0_220, %c0_221] : memref<256x128xf32, #tpu.memory_space<vmem>>, vector<256x128xf32>
    %190 = arith.truncf %188 : vector<256x128xf32> to vector<256x128xbf16>
    %c8_222 = arith.constant 8 : index
    %c0_223 = arith.constant 0 : index
    %c0_224 = arith.constant 0 : index
    %191 = vector.load %arg3[%c8_222, %c0_223, %c0_224] : memref<9x128x128xbf16, #tpu.memory_space<vmem>>, vector<1x128x128xbf16>
    %192 = vector.shape_cast %191 : vector<1x128x128xbf16> to vector<128x128xbf16>
    %cst_225 = arith.constant dense<0.000000e+00> : vector<256x128xf32>
    %193 = tpu.matmul %190, %192, %cst_225 {dimension_numbers = #tpu.dot_dimension_numbers<[1], [0], [0], [1], [0, 0, 1, 1], [], []>} : vector<256x128xbf16>, vector<128x128xbf16>, vector<256x128xf32> -> vector<256x128xf32>
    %194 = arith.addf %189, %193 : vector<256x128xf32>
    %c0_226 = arith.constant 0 : index
    %c0_227 = arith.constant 0 : index
    %195 = vector.load %arg14[%c0_226, %c0_227] : memref<256x128xf32, #tpu.memory_space<vmem>>, vector<256x128xf32>
    tpu.vector_store %arg14[%c0_226, %c0_227], %194 {strides = array<i32>} : memref<256x128xf32, #tpu.memory_space<vmem>>, vector<256x128xf32>,
    %c0_228 = arith.constant 0 : index
    %c0_229 = arith.constant 0 : index
    %196 = vector.load %arg14[%c0_228, %c0_229] : memref<256x128xf32, #tpu.memory_space<vmem>>, vector<256x128xf32>
    %c0_230 = arith.constant 0 : index
    %c0_231 = arith.constant 0 : index
    %197 = vector.load %arg7[%c0_230, %c0_231] : memref<1x128xf32, #tpu.memory_space<vmem>>, vector<1x128xf32>
    %198 = vector.broadcast %197 : vector<1x128xf32> to vector<256x128xf32>
    %199 = arith.mulf %196, %198 : vector<256x128xf32>
    %c0_232 = arith.constant 0 : index
    %c0_233 = arith.constant 0 : index
    %200 = vector.load %arg8[%c0_232, %c0_233] : memref<1x128xf32, #tpu.memory_space<vmem>>, vector<1x128xf32>
    %201 = vector.broadcast %200 : vector<1x128xf32> to vector<256x128xf32>
    %202 = arith.addf %199, %201 : vector<256x128xf32>
    %c0_234 = arith.constant 0 : index
    %c0_235 = arith.constant 0 : index
    %203 = vector.load %arg15[%c0_234, %c0_235] : memref<256x128xf32, #tpu.memory_space<vmem>>, vector<256x128xf32>
    %204 = arith.addf %202, %203 : vector<256x128xf32>
    %cst_236 = arith.constant 0.000000e+00 : f32
    %205 = vector.broadcast %cst_236 : f32 to vector<256x128xf32>
    %206 = arith.maximumf %204, %205 : vector<256x128xf32>
    %c0_237 = arith.constant 0 : index
    %c0_238 = arith.constant 0 : index
    %c0_239 = arith.constant 0 : index
    %207 = vector.load %arg11[%c0_237, %c0_238, %c0_239] : memref<1x256x128xf32, #tpu.memory_space<vmem>>, vector<1x256x128xf32>
    %208 = vector.shape_cast %207 : vector<1x256x128xf32> to vector<256x128xf32>
    %209 = vector.shape_cast %206 : vector<256x128xf32> to vector<1x256x128xf32>
    tpu.vector_store %arg11[%c0_237, %c0_238, %c0_239], %209 {strides = array<i32>} : memref<1x256x128xf32, #tpu.memory_space<vmem>>, vector<1x256x128xf32>,
    return
  }
  func.func @transform_0(%arg0: i32) -> (i32, i32, i32, i32) {
    %c0_i32 = arith.constant 0 : i32
    %c0_i32_0 = arith.constant 0 : i32
    %c0_i32_1 = arith.constant 0 : i32
    %c0_i32_2 = arith.constant 0 : i32
    return %arg0, %c0_i32, %c0_i32_0, %c0_i32_1 : i32, i32, i32, i32
  }
  func.func @transform_1(%arg0: i32) -> (i32, i32, i32) {
    %c0_i32 = arith.constant 0 : i32
    %c0_i32_0 = arith.constant 0 : i32
    %c0_i32_1 = arith.constant 0 : i32
    %c0_i32_2 = arith.constant 0 : i32
    return %c0_i32, %c0_i32_0, %c0_i32_1 : i32, i32, i32
  }
  func.func @transform_2(%arg0: i32) -> (i32, i32, i32) {
    %c0_i32 = arith.constant 0 : i32
    %c0_i32_0 = arith.constant 0 : i32
    %c0_i32_1 = arith.constant 0 : i32
    %c0_i32_2 = arith.constant 0 : i32
    return %c0_i32, %c0_i32_0, %c0_i32_1 : i32, i32, i32
  }
  func.func @transform_3(%arg0: i32) -> (i32, i32) {
    %c0_i32 = arith.constant 0 : i32
    %c0_i32_0 = arith.constant 0 : i32
    %c0_i32_1 = arith.constant 0 : i32
    return %c0_i32, %c0_i32_0 : i32, i32
  }
  func.func @transform_4(%arg0: i32) -> (i32, i32) {
    %c0_i32 = arith.constant 0 : i32
    %c0_i32_0 = arith.constant 0 : i32
    %c0_i32_1 = arith.constant 0 : i32
    return %c0_i32, %c0_i32_0 : i32, i32
  }
  func.func @transform_5(%arg0: i32) -> (i32, i32) {
    %c0_i32 = arith.constant 0 : i32
    %c0_i32_0 = arith.constant 0 : i32
    %c0_i32_1 = arith.constant 0 : i32
    return %c0_i32, %c0_i32_0 : i32, i32
  }
  func.func @transform_6(%arg0: i32) -> (i32, i32) {
    %c0_i32 = arith.constant 0 : i32
    %c0_i32_0 = arith.constant 0 : i32
    %c0_i32_1 = arith.constant 0 : i32
    return %c0_i32, %c0_i32_0 : i32, i32
  }
  func.func @transform_7(%arg0: i32) -> (i32, i32) {
    %c0_i32 = arith.constant 0 : i32
    %c0_i32_0 = arith.constant 0 : i32
    %c0_i32_1 = arith.constant 0 : i32
    return %c0_i32, %c0_i32_0 : i32, i32
  }
  func.func @transform_8(%arg0: i32) -> (i32, i32) {
    %c0_i32 = arith.constant 0 : i32
    %c0_i32_0 = arith.constant 0 : i32
    %c0_i32_1 = arith.constant 0 : i32
    return %c0_i32, %c0_i32_0 : i32, i32
  }
  func.func @transform_9(%arg0: i32) -> (i32, i32) {
    %c0_i32 = arith.constant 0 : i32
    %c0_i32_0 = arith.constant 0 : i32
    %c0_i32_1 = arith.constant 0 : i32
    return %c0_i32, %c0_i32_0 : i32, i32
  }
  func.func @transform_10(%arg0: i32) -> (i32, i32, i32) {
    %c0_i32 = arith.constant 0 : i32
    %c0_i32_0 = arith.constant 0 : i32
    %c0_i32_1 = arith.constant 0 : i32
    return %arg0, %c0_i32, %c0_i32_0 : i32, i32, i32
  }
}

</mosaic_0001>

<bundles_post_ra>
// kernel: tpu_custom_call.1
= control target key start
LH: loop header
LB: loop body
LE: loop exit
PB: predicated region body
PF: predicated region fallthrough
CT: control target
= control target key end

     0   :  { %15 = vsyncpa [#allocation7], 0  ;;  %s11733_s0 = inlined_call_operand.vmem [shape: bf16[2,16,16,4], index: 0, kind: input, shape index: {}]   ;;  %s11734_s1 = inlined_call_operand.vmem [shape: bf16[9,4,128], index: 1, kind: input, shape index: {}]   ;;  %s11735_s2 = inlined_call_operand.hbm [shape: bf16[9,128,128], index: 2, kind: input, shape index: {}]   ;;  %s11736_s3 = inlined_call_operand.vmem [shape: bf16[4,128], index: 3, kind: input, shape index: {}]   ;;  %s11737_s4 = inlined_call_operand.vmem [shape: f32[1,128], index: 4, kind: input, shape index: {}]   ;;  %s11738_s5 = inlined_call_operand.vmem [shape: f32[1,128], index: 5, kind: input, shape index: {}]   ;;  %s11739_s6 = inlined_call_operand.vmem [shape: f32[1,128], index: 6, kind: input, shape index: {}]   ;;  %s11740_s7 = inlined_call_operand.vmem [shape: f32[1,128], index: 7, kind: input, shape index: {}]   ;;  %s11741_s8 = inlined_call_operand.vmem [shape: f32[1,128], index: 8, kind: input, shape index: {}]   ;;  %s11742_s9 = inlined_call_operand.vmem [shape: f32[1,128], index: 9, kind: input, shape index: {}]   ;;  %s11743_s10 = inlined_call_operand.hbm [shape: f32[2,256,128], index: 10, kind: output, shape index: {}]  }
   0x1   :  { %16 = vsyncpa [#allocation8], 0 }
   0x2   :  { %18 = vsyncpa [#allocation8 + $0x1], 0  ;;  %s10313_s13 = smov 0   ;;  %s10315_s14 = smov 0  }
   0x3   :  { %s10317_s15 = smov 0   ;;  %s10319_s16 = smov 0  }
   0x4 LB: > { %s10334_s17 = sadd.s32 4294967295, %s10249_s16   ;;  %s8038_s18 = sadd.s32 4294967294, %s10249_s16   ;;  %s10249_s16 = sphi %s10319_s16, %s11759_s16   ;;  %s10245_s15 = sphi %s10317_s15, %s11758_s15   ;;  %s10241_s14 = sphi %s10315_s14, %s11757_s14   ;;  %s10237_s13 = sphi %s10313_s13, %s11756_s13  }
   0x5   : > { %s10338_s19 = sadd.s32 1, %s10249_s16   ;;  %s246_s20 = sadd.s32 1, %s10245_s15 }
   0x6   : > { %s243_s21 = ssub.s32 %s10249_s16, %s10338_s19  ;;  %p256_p0 = scmp.ne.s32.totalorder %s10245_s15, %s10241_s14 }
   0x7   : > { %p244_p1 = scmp.eq.s32.totalorder %s243_s21, 0  ;;  %p257_p2 = scmp.eq.s32.totalorder %s10334_s17, 1 }
   0x8   : > { %p262_p3 = scmp.ne.s32.totalorder %s10241_s14, %s10237_s13  ;;  %p263_p4 = scmp.eq.s32.totalorder %s8038_s18, 1 }
   0x9   : > { %s10349_s22 = scalar_select %p244_p1, %s10245_s15, %s246_s20  }
   0xa   : > { %p10351_p5 = por %p257_p2, %p256_p0  ;;  %p10355_p6 = por %p263_p4, %p262_p3 }
   0xb   : > { %p8039_p7 = scmp.ge.s32.totalorder %s10249_s16, 1  ;;  %p270_p8 = scmp.lt.s32.totalorder %s10249_s16, 3 }
   0xc   : > { %s11747_s23 = scalar_select %p10351_p5, 1, 0 }
   0xd   : > { %s11748_s24 = scalar_select %p10355_p6, 1, 0 }
   0xe   : > { %p11744_p9 = scmp.eq.s32.totalorder %s10334_s17, 0  ;;  %p10362_p10 = pnand %p8039_p7, %p270_p8 }
   0xf   : > { %s10251_s26 = smov [#allocation6]   ;;  %s10155_s11 = scalar_lea.hbm %s11735_s2, 9216 }
  0x10   : > { %s11749_s25 = scalar_select %p10362_p10, 1, 0 }
  0x11   : > { %s285_s27 = sshll.u32 %s10251_s26, 4  ;;  %p10005_p11 = pneg %p10362_p10  ;;  %s286_s27 = int_to_ptr.vmem [resolvable:$true] %s285_s27 }
  0x12   : > { %p10156_p13 = scmp.ne.s32.totalorder %s11735_s2, %s10155_s11  ;;  %p10162_p3 = scmp.lt.u32.totalorder %s10155_s11, %s11735_s2 }
  0x13   : > { %p10370_p12 = pnand %p11744_p9, %p10005_p11 }
  0x15   : > { %p10157_p0 = pneg %p10370_p12 }
  0x17   : > { %p10158_p1 = pnand %p10157_p0, %p10156_p13 }
  0x19   : > { %p10159_p2 = pneg %p10158_p1 }
  0x1b   : > { %p10164_p4 = pnand %p10162_p3, %p10159_p2 }
  0x1d   : > { %10167 = shalt.err (!%p10164_p4)
}
  0x1e   : > { %s10168_s26 = scalar_lea.vmem %s286_s27, 9216  ;;  %p10176_p9 = scmp.lt.s32.totalorder %s286_s27, %s286_s27 }
  0x1f   : > { %p10169_p7 = scmp.ne.s32.totalorder %s286_s27, %s10168_s26  ;;  %p10177_p6 = scmp.lt.s32.totalorder %s10168_s26, %s10168_s26 }
  0x21   : > { %p10171_p8 = pnand %p10169_p7, %p10157_p0  ;;  %p10178_p5 = por %p10177_p6, %p10176_p9 }
  0x23   : > { %p10172_p11 = pneg %p10171_p8 }
  0x25   : > { %p10179_p10 = pnand %p10178_p5, %p10172_p11 }
  0x27   : > { %10182 = shalt.err (!%p10179_p10)
}
  0x28   : > { %s10252_s29 = smov 64   ;;  %s10253_s30 = smov 4  }
  0x29   : > { %10008 = dma.hbm_to_vmem [thread:$0]  (!%p10370_p12), %s11735_s2, 9216, %s286_s27, [#allocation7], %s10252_s29, %s10252_s29, %s10253_s30  }
  0x2a   : > { %p11751_p13 = scmp.ne.s32.totalorder %s11749_s25, 0 }
  0x2b   : > { %p11752_p1 = scmp.eq.s32.totalorder (!%p11751_p13), %s10334_s17, 0 }
  0x2c   : > { %330 = sbr.rel (%p11751_p13) target bundleno = 1667 (0x683), region = 60 }
  0x33   : > { %10228 = dma.done.wait (%p11752_p1), [#allocation7], 9216   ;;  %p11753_p0 = pmov %p11752_p1 }
  0x34   : > { %vm374_vm0 = vcmask 31744   ;;  %p368_p5 = scmp.lt.s32.totalorder %s10334_s17, 1  ;;  %v10254_v0 = vmov 0.0   ;;  %vm377_vm1 = vcmask 25600   ;;  %vm688_vm2 = vcmask 1041408   ;;  %s365_s11 = sand.u32 1, %s10241_s14  }
  0x35   : > { %10230 = vsyncadd (%p11753_p0), [#allocation7], 4294958080  ;;  %375 = vst.msk [vmem:[#allocation2] sm:$0xff] %vm374_vm0, %v10254_v0  ;;  %v639_v1 = vld [vmem:[%s11734_s1] sm:$0x3]  ;;  %s8044_s29 = sshll.u32 %s365_s11, 8 }
  0x36   : > { %376 = vst.msk [vmem:[#allocation2 + $0x8] sm:$0xff] %vm374_vm0, %v10254_v0  ;;  %379 = vst.msk [vmem:[#allocation2 + $0x18] sm:$0xff] %vm374_vm0, %v10254_v0  ;;  %s369_s25 = scalar_select %p368_p5, %s10334_s17, 1  ;;  %v10573_v2 = vld [vmem:[%s11734_s1 + $0x2] sm:$0x3]  ;;  %9988 = vmatprep.subr.msk.bf16.mxu0 %vm688_vm2, %v639_v1  ;;  %v690_v4 = vsel %vm688_vm2, %v639_v1, 0 }
  0x37   : > { %380 = vst.msk [vmem:[#allocation2 + $0x20] sm:$0xff] %vm374_vm0, %v10254_v0  ;;  %382 = vst.msk [vmem:[#allocation2 + $0x30] sm:$0xff] %vm374_vm0, %v10254_v0  ;;  %8703 = vmatpush3.bf16.msra.mxu0 %v690_v4  ;;  %v1048_v55 = vsel %vm688_vm2, %v10573_v2, 0  ;;  %v10650_v59 = vld [vmem:[%s11734_s1 + $0x4] sm:$0x3]  ;;  %s11515_s30 = scalar_lea.vmem [#allocation9], %s8044_s29 }
  0x38   : > { %383 = vst.msk [vmem:[#allocation2 + $0x38] sm:$0xff] %vm374_vm0, %v10254_v0  ;;  %385 = vst.msk [vmem:[#allocation2 + $0x48] sm:$0xff] %vm374_vm0, %v10254_v0  ;;  %s8314_s27 = sshll.u32 %s369_s25, 7  ;;  %9989 = vmatprep.subr.msk.bf16.mxu0 %vm688_vm2, %v10573_v2  ;;  %s7964_s12 = sshll.u32 %s11515_s30, 4  ;;  %s11685_s12 = int_to_ptr.vmem [resolvable:$true] %s7964_s12 }
  0x39   : > { %386 = vst.msk [vmem:[#allocation2 + $0x50] sm:$0xff] %vm374_vm0, %v10254_v0  ;;  %388 = vst.msk [vmem:[#allocation2 + $0x60] sm:$0xff] %vm374_vm0, %v10254_v0  ;;  %s10565_s20 = scalar_lea.vmem %s11733_s0, %s8314_s27  ;;  %s10183_s28 = scalar_lea.vmem %s11685_s12, 4096 }
  0x3a   : > { %389 = vst.msk [vmem:[#allocation2 + $0x68] sm:$0xff] %vm374_vm0, %v10254_v0  ;;  %391 = vst.msk [vmem:[#allocation2 + $0x78] sm:$0xff] %vm374_vm0, %v10254_v0  ;;  %v430_v3 = vld [vmem:[%s10565_s20] sm:$0xff]   ;;  %v432_v9 = vld [vmem:[%s10565_s20 + $0x8] sm:$0xff]   ;;  %p10184_p6 = scmp.ne.s32.totalorder %s11685_s12, %s10183_s28  ;;  %p11754_p9 = scmp.ne.s32.totalorder %s11747_s23, 0 }
  0x3b   : > { %392 = vst.msk [vmem:[#allocation2 + $0x80] sm:$0xff] %vm374_vm0, %v10254_v0  ;;  %394 = vst.msk [vmem:[#allocation2 + $0x90] sm:$0xff] %vm374_vm0, %v10254_v0  ;;  %v462_v7 = vunpack.c.l.bf16 %v430_v3  ;;  %v463_v8 = vunpack.c.h.bf16 %v430_v3  ;;  %v464_v11 = vunpack.c.l.bf16 %v432_v9  ;;  %v465_v12 = vunpack.c.h.bf16 %v432_v9  ;;  %v434_v13 = vld [vmem:[%s10565_s20 + $0x10] sm:$0xff]   ;;  %v436_v14 = vld [vmem:[%s10565_s20 + $0x18] sm:$0xff]   ;;  %s10255_s21 = smov [#allocation9]  }
  0x3c   : > { %395 = vst.msk [vmem:[#allocation2 + $0x98] sm:$0xff] %vm374_vm0, %v10254_v0  ;;  %397 = vst.msk [vmem:[#allocation2 + $0xa8] sm:$0xff] %vm374_vm0, %v10254_v0  ;;  %v559_v5 = vld [vmem:[#allocation2] sm:$0xff]  ;;  %v466_v16 = vunpack.c.l.bf16 %v434_v13  ;;  %v467_v17 = vunpack.c.h.bf16 %v434_v13  ;;  %v468_v18 = vunpack.c.l.bf16 %v436_v14  ;;  %v469_v19 = vunpack.c.h.bf16 %v436_v14  ;;  %v440_v20 = vld [vmem:[%s10565_s20 + $0x28] sm:$0xff]   ;;  %p10185_p10 = pnand %p10184_p6, %p11754_p9  ;;  %s10187_s26 = sshll.u32 %s10255_s21, 4  ;;  %s10188_s26 = int_to_ptr.vmem [resolvable:$false] %s10187_s26 }
  0x3d   : > { %398 = vst.msk [vmem:[#allocation2 + $0xb0] sm:$0xff] %vm374_vm0, %v10254_v0  ;;  %400 = vst.msk [vmem:[#allocation2 + $0xc0] sm:$0xff] %vm374_vm0, %v10254_v0  ;;  %v560_v6 = vld [vmem:[#allocation2 + $0x8] sm:$0xff]  ;;  %v438_v15 = vld [vmem:[%s10565_s20 + $0x20] sm:$0xff]   ;;  %v472_v25 = vunpack.c.l.bf16 %v440_v20  ;;  %v473_v26 = vunpack.c.h.bf16 %v440_v20  ;;  %s10189_s29 = scalar_lea.vmem %s10188_s26, 8192  ;;  %p10190_p2 = scmp.lt.s32.totalorder %s11685_s12, %s10188_s26 }
  0x3e   : > { %401 = vst.msk [vmem:[#allocation2 + $0xc8] sm:$0xff] %vm374_vm0, %v10254_v0  ;;  %403 = vst.msk [vmem:[#allocation2 + $0xd8] sm:$0xff] %vm374_vm0, %v10254_v0  ;;  %v623_v10 = vpack.c.bf16 %v560_v6, %v559_v5  ;;  %v442_v21 = vld [vmem:[%s10565_s20 + $0x30] sm:$0xff]   ;;  %v444_v22 = vld [vmem:[%s10565_s20 + $0x38] sm:$0xff]   ;;  %v470_v23 = vunpack.c.l.bf16 %v438_v15  ;;  %v471_v24 = vunpack.c.h.bf16 %v438_v15  ;;  %p10186_p12 = pneg %p10185_p10  ;;  %p10191_p3 = scmp.lt.s32.totalorder %s10189_s29, %s10183_s28 }
  0x3f   : > { %404 = vst.msk [vmem:[#allocation2 + $0xe0] sm:$0xff] %vm374_vm0, %v10254_v0  ;;  %406 = vst.msk [vmem:[#allocation2 + $0xf0] sm:$0xff] %vm374_vm0, %v10254_v0  ;;  %v10593_v27 = vld [vmem:[%s10565_s20 + $0x40] sm:$0xff]   ;;  %v10596_v28 = vld [vmem:[%s10565_s20 + $0x48] sm:$0xff]   ;;  %v474_v30 = vunpack.c.l.bf16 %v442_v21  ;;  %v475_v31 = vunpack.c.h.bf16 %v442_v21  ;;  %v476_v32 = vunpack.c.l.bf16 %v444_v22  ;;  %v477_v33 = vunpack.c.h.bf16 %v444_v22 }
  0x40   : > { %407 = vst.msk [vmem:[#allocation2 + $0xf8] sm:$0xff] %vm374_vm0, %v10254_v0  ;;  %409 = vst.msk [vmem:[#allocation2 + $0x108] sm:$0xff] %vm374_vm0, %v10254_v0  ;;  %8704 = vmatprep.mubr.msk.bf16.mxu0 %vm374_vm0, %v623_v10  ;;  %v10599_v29 = vld [vmem:[%s10565_s20 + $0x50] sm:$0xff]   ;;  %v10606_v34 = vld [vmem:[%s10565_s20 + $0x58] sm:$0xff]   ;;  %v478_v37 = vunpack.c.l.bf16 %v10593_v27  ;;  %v479_v38 = vunpack.c.h.bf16 %v10593_v27  ;;  %v480_v39 = vunpack.c.l.bf16 %v10596_v28  ;;  %v481_v40 = vunpack.c.h.bf16 %v10596_v28  ;;  %9026 = vmatprep.mubr.msk.bf16.mxu1 %vm374_vm0, %v10593_v27  ;;  %p10192_p4 = por %p10191_p3, %p10190_p2 }
  0x41   : > { %410 = vst.msk [vmem:[#allocation2 + $0x110] sm:$0xff] %vm374_vm0, %v10254_v0  ;;  %412 = vst.msk [vmem:[#allocation2 + $0x120] sm:$0xff] %vm374_vm0, %v10254_v0  ;;  %v454_v35 = vld [vmem:[%s10565_s20 + $0x60] sm:$0xff]   ;;  %v456_v36 = vld [vmem:[%s10565_s20 + $0x68] sm:$0xff]   ;;  %v482_v42 = vunpack.c.l.bf16 %v10599_v29  ;;  %v483_v43 = vunpack.c.h.bf16 %v10599_v29  ;;  %v484_v44 = vunpack.c.l.bf16 %v10606_v34  ;;  %v485_v45 = vunpack.c.h.bf16 %v10606_v34 }
  0x42   : > { %413 = vst.msk [vmem:[#allocation2 + $0x128] sm:$0xff] %vm374_vm0, %v10254_v0  ;;  %415 = vst.msk [vmem:[#allocation2 + $0x138] sm:$0xff] %vm374_vm0, %v10254_v0  ;;  %v458_v41 = vld [vmem:[%s10565_s20 + $0x70] sm:$0xff]   ;;  %v486_v46 = vunpack.c.l.bf16 %v454_v35  ;;  %v487_v47 = vunpack.c.h.bf16 %v454_v35  ;;  %v488_v48 = vunpack.c.l.bf16 %v456_v36  ;;  %v489_v49 = vunpack.c.h.bf16 %v456_v36  ;;  %v917_v36 = vld [vmem:[#allocation2 + $0x1] sm:$0xff]  ;;  %p10193_p7 = pnand %p10192_p4, %p10186_p12 }
  0x43   : > { %416 = vst.msk [vmem:[#allocation2 + $0x140] sm:$0xff] %vm374_vm0, %v10254_v0  ;;  %418 = vst.msk [vmem:[#allocation2 + $0x150] sm:$0xff] %vm374_vm0, %v10254_v0  ;;  %v490_v50 = vunpack.c.l.bf16 %v458_v41  ;;  %v491_v51 = vunpack.c.h.bf16 %v458_v41  ;;  %v10057_v27 = vld [vmem:[#allocation6 + $0x18] sm:$0xff]  }
  0x44   : > { %419 = vst.msk [vmem:[#allocation2 + $0x158] sm:$0xff] %vm374_vm0, %v10254_v0  ;;  %421 = vst.msk [vmem:[#allocation2 + $0x168] sm:$0xff] %vm374_vm0, %v10254_v0 }
  0x45   : > { %422 = vst.msk [vmem:[#allocation2 + $0x170] sm:$0xff] %vm374_vm0, %v10254_v0  ;;  %424 = vst.msk [vmem:[#allocation2 + $0x180] sm:$0xff] %vm374_vm0, %v10254_v0 }
  0x46   : > { %425 = vst.msk [vmem:[#allocation2 + $0x188] sm:$0xff] %vm374_vm0, %v10254_v0  ;;  %427 = vst.msk [vmem:[#allocation2 + $0x198] sm:$0xff] %vm374_vm0, %v10254_v0 }
  0x47   : > { %428 = vst.msk [vmem:[#allocation2 + $0x1a0] sm:$0xff] %vm374_vm0, %v10254_v0  ;;  %3924 = vst [vmem:[#allocation3] sm:$0xff] %v10254_v0 }
  0x48   : > { %3925 = vst [vmem:[#allocation3 + $0x8] sm:$0xff] %v10254_v0  ;;  %3926 = vst [vmem:[#allocation3 + $0x10] sm:$0x3] %v10254_v0 }
  0x49   : > { %3927 = vst [vmem:[#allocation3 + $0x18] sm:$0xff] %v10254_v0  ;;  %3928 = vst [vmem:[#allocation3 + $0x20] sm:$0xff] %v10254_v0 }
  0x4a   : > { %3929 = vst [vmem:[#allocation3 + $0x28] sm:$0x3] %v10254_v0  ;;  %3930 = vst [vmem:[#allocation3 + $0x30] sm:$0xff] %v10254_v0 }
  0x4b   : > { %3931 = vst [vmem:[#allocation3 + $0x38] sm:$0xff] %v10254_v0  ;;  %3932 = vst [vmem:[#allocation3 + $0x40] sm:$0x3] %v10254_v0 }
  0x4c   : > { %3933 = vst [vmem:[#allocation3 + $0x48] sm:$0xff] %v10254_v0  ;;  %3934 = vst [vmem:[#allocation3 + $0x50] sm:$0xff] %v10254_v0 }
  0x4d   : > { %3935 = vst [vmem:[#allocation3 + $0x58] sm:$0x3] %v10254_v0  ;;  %3936 = vst [vmem:[#allocation3 + $0x60] sm:$0xff] %v10254_v0 }
  0x4e   : > { %3937 = vst [vmem:[#allocation3 + $0x68] sm:$0xff] %v10254_v0  ;;  %3938 = vst [vmem:[#allocation3 + $0x70] sm:$0x3] %v10254_v0 }
  0x4f   : > { %3939 = vst [vmem:[#allocation3 + $0x78] sm:$0xff] %v10254_v0  ;;  %3940 = vst [vmem:[#allocation3 + $0x80] sm:$0xff] %v10254_v0 }
  0x50   : > { %3941 = vst [vmem:[#allocation3 + $0x88] sm:$0x3] %v10254_v0  ;;  %3942 = vst [vmem:[#allocation3 + $0x90] sm:$0xff] %v10254_v0 }
  0x51   : > { %3943 = vst [vmem:[#allocation3 + $0x98] sm:$0xff] %v10254_v0  ;;  %3944 = vst [vmem:[#allocation3 + $0xa0] sm:$0x3] %v10254_v0 }
  0x52   : > { %3945 = vst [vmem:[#allocation3 + $0xa8] sm:$0xff] %v10254_v0  ;;  %3946 = vst [vmem:[#allocation3 + $0xb0] sm:$0xff] %v10254_v0 }
  0x53   : > { %3947 = vst [vmem:[#allocation3 + $0xb8] sm:$0x3] %v10254_v0  ;;  %3948 = vst [vmem:[#allocation3 + $0xc0] sm:$0xff] %v10254_v0 }
  0x54   : > { %3949 = vst [vmem:[#allocation3 + $0xc8] sm:$0xff] %v10254_v0  ;;  %3950 = vst [vmem:[#allocation3 + $0xd0] sm:$0x3] %v10254_v0 }
  0x55   : > { %3951 = vst [vmem:[#allocation3 + $0xd8] sm:$0xff] %v10254_v0  ;;  %3952 = vst [vmem:[#allocation3 + $0xe0] sm:$0xff] %v10254_v0 }
  0x56   : > { %3953 = vst [vmem:[#allocation3 + $0xe8] sm:$0x3] %v10254_v0  ;;  %3954 = vst [vmem:[#allocation3 + $0xf0] sm:$0xff] %v10254_v0 }
  0x57   : > { %3955 = vst [vmem:[#allocation3 + $0xf8] sm:$0xff] %v10254_v0  ;;  %3956 = vst [vmem:[#allocation3 + $0x100] sm:$0x3] %v10254_v0 }
  0x58   : > { %3957 = vst [vmem:[#allocation3 + $0x108] sm:$0xff] %v10254_v0  ;;  %3958 = vst [vmem:[#allocation3 + $0x110] sm:$0xff] %v10254_v0 }
  0x59   : > { %3959 = vst [vmem:[#allocation3 + $0x118] sm:$0x3] %v10254_v0  ;;  %3960 = vst [vmem:[#allocation3 + $0x120] sm:$0xff] %v10254_v0 }
  0x5a   : > { %3961 = vst [vmem:[#allocation3 + $0x128] sm:$0xff] %v10254_v0  ;;  %3962 = vst [vmem:[#allocation3 + $0x130] sm:$0x3] %v10254_v0 }
  0x5b   : > { %3963 = vst [vmem:[#allocation3 + $0x138] sm:$0xff] %v10254_v0  ;;  %3964 = vst [vmem:[#allocation3 + $0x140] sm:$0xff] %v10254_v0 }
  0x5c   : > { %3965 = vst [vmem:[#allocation3 + $0x148] sm:$0x3] %v10254_v0  ;;  %3966 = vst [vmem:[#allocation3 + $0x150] sm:$0xff] %v10254_v0 }
  0x5d   : > { %3967 = vst [vmem:[#allocation3 + $0x158] sm:$0xff] %v10254_v0  ;;  %3968 = vst [vmem:[#allocation3 + $0x160] sm:$0x3] %v10254_v0 }
  0x5e   : > { %3969 = vst [vmem:[#allocation3 + $0x168] sm:$0xff] %v10254_v0  ;;  %3970 = vst [vmem:[#allocation3 + $0x170] sm:$0xff] %v10254_v0 }
  0x5f   : > { %3971 = vst [vmem:[#allocation3 + $0x178] sm:$0x3] %v10254_v0  ;;  %3972 = vst [vmem:[#allocation3 + $0x180] sm:$0xff] %v10254_v0 }
  0x60   : > { %3973 = vst [vmem:[#allocation3 + $0x188] sm:$0xff] %v10254_v0  ;;  %3974 = vst [vmem:[#allocation3 + $0x190] sm:$0x3] %v10254_v0 }
  0x61   : > { %3975 = vst [vmem:[#allocation3 + $0x198] sm:$0xff] %v10254_v0  ;;  %3976 = vst [vmem:[#allocation3 + $0x1a0] sm:$0xff] %v10254_v0 }
  0x62   : > { %3977 = vst [vmem:[#allocation3 + $0x1a8] sm:$0x3] %v10254_v0  ;;  %381 = vst.msk [vmem:[#allocation2 + $0x28] sm:$0x3] %vm377_vm1, %v10254_v0 }
  0x63   : > { %378 = vst.msk [vmem:[#allocation2 + $0x10] sm:$0x3] %vm377_vm1, %v10254_v0  ;;  %384 = vst.msk [vmem:[#allocation2 + $0x40] sm:$0x3] %vm377_vm1, %v10254_v0 }
  0x64   : > { %387 = vst.msk [vmem:[#allocation2 + $0x58] sm:$0x3] %vm377_vm1, %v10254_v0  ;;  %390 = vst.msk [vmem:[#allocation2 + $0x70] sm:$0x3] %vm377_vm1, %v10254_v0 }
  0x65   : > { %393 = vst.msk [vmem:[#allocation2 + $0x88] sm:$0x3] %vm377_vm1, %v10254_v0  ;;  %396 = vst.msk [vmem:[#allocation2 + $0xa0] sm:$0x3] %vm377_vm1, %v10254_v0 }
  0x66   : > { %399 = vst.msk [vmem:[#allocation2 + $0xb8] sm:$0x3] %vm377_vm1, %v10254_v0  ;;  %402 = vst.msk [vmem:[#allocation2 + $0xd0] sm:$0x3] %vm377_vm1, %v10254_v0 }
  0x67   : > { %405 = vst.msk [vmem:[#allocation2 + $0xe8] sm:$0x3] %vm377_vm1, %v10254_v0  ;;  %408 = vst.msk [vmem:[#allocation2 + $0x100] sm:$0x3] %vm377_vm1, %v10254_v0 }
  0x68   : > { %411 = vst.msk [vmem:[#allocation2 + $0x118] sm:$0x3] %vm377_vm1, %v10254_v0  ;;  %414 = vst.msk [vmem:[#allocation2 + $0x130] sm:$0x3] %vm377_vm1, %v10254_v0 }
  0x69   : > { %417 = vst.msk [vmem:[#allocation2 + $0x148] sm:$0x3] %vm377_vm1, %v10254_v0  ;;  %420 = vst.msk [vmem:[#allocation2 + $0x160] sm:$0x3] %vm377_vm1, %v10254_v0 }
  0x6a   : > { %423 = vst.msk [vmem:[#allocation2 + $0x178] sm:$0x3] %vm377_vm1, %v10254_v0  ;;  %426 = vst.msk [vmem:[#allocation2 + $0x190] sm:$0x3] %vm377_vm1, %v10254_v0 }
  0x6b   : > { %429 = vst.msk [vmem:[#allocation2 + $0x1a8] sm:$0x3] %vm377_vm1, %v10254_v0 }
  0x6c   : > { %495 = vst.msk [vmem:[#allocation2 + $0x19] sm:$0xff] %vm374_vm0, %v462_v7  ;;  %496 = vst.msk [vmem:[#allocation2 + $0x21] sm:$0xff] %vm374_vm0, %v463_v8 }
  0x6d   : > { %497 = vst.msk [vmem:[#allocation2 + $0x31] sm:$0xff] %vm374_vm0, %v464_v11  ;;  %498 = vst.msk [vmem:[#allocation2 + $0x39] sm:$0xff] %vm374_vm0, %v465_v12 }
  0x6e   : > { %499 = vst.msk [vmem:[#allocation2 + $0x49] sm:$0xff] %vm374_vm0, %v466_v16  ;;  %500 = vst.msk [vmem:[#allocation2 + $0x51] sm:$0xff] %vm374_vm0, %v467_v17 }
  0x6f   : > { %501 = vst.msk [vmem:[#allocation2 + $0x61] sm:$0xff] %vm374_vm0, %v468_v18  ;;  %502 = vst.msk [vmem:[#allocation2 + $0x69] sm:$0xff] %vm374_vm0, %v469_v19 }
  0x70   : > { %503 = vst.msk [vmem:[#allocation2 + $0x79] sm:$0xff] %vm374_vm0, %v470_v23  ;;  %504 = vst.msk [vmem:[#allocation2 + $0x81] sm:$0xff] %vm374_vm0, %v471_v24 }
  0x71   : > { %505 = vst.msk [vmem:[#allocation2 + $0x91] sm:$0xff] %vm374_vm0, %v472_v25  ;;  %506 = vst.msk [vmem:[#allocation2 + $0x99] sm:$0xff] %vm374_vm0, %v473_v26 }
  0x72   : > { %507 = vst.msk [vmem:[#allocation2 + $0xa9] sm:$0xff] %vm374_vm0, %v474_v30  ;;  %508 = vst.msk [vmem:[#allocation2 + $0xb1] sm:$0xff] %vm374_vm0, %v475_v31 }
  0x73   : > { %509 = vst.msk [vmem:[#allocation2 + $0xc1] sm:$0xff] %vm374_vm0, %v476_v32  ;;  %510 = vst.msk [vmem:[#allocation2 + $0xc9] sm:$0xff] %vm374_vm0, %v477_v33  ;;  %v561_v52 = vld [vmem:[#allocation2 + $0x18] sm:$0xff]  ;;  %v562_v53 = vld [vmem:[#allocation2 + $0x20] sm:$0xff] }
  0x74   : > { %511 = vst.msk [vmem:[#allocation2 + $0xd9] sm:$0xff] %vm374_vm0, %v478_v37  ;;  %512 = vst.msk [vmem:[#allocation2 + $0xe1] sm:$0xff] %vm374_vm0, %v479_v38  ;;  %v10639_v54 = vpack.c.bf16 %v562_v53, %v561_v52  ;;  %v563_v56 = vld [vmem:[#allocation2 + $0x30] sm:$0xff]  ;;  %v564_v57 = vld [vmem:[#allocation2 + $0x38] sm:$0xff] }
  0x75   : > { %513 = vst.msk [vmem:[#allocation2 + $0xf1] sm:$0xff] %vm374_vm0, %v480_v39  ;;  %514 = vst.msk [vmem:[#allocation2 + $0xf9] sm:$0xff] %vm374_vm0, %v481_v40  ;;  %v10645_v58 = vpack.c.bf16 %v564_v57, %v563_v56  ;;  %v565_v60 = vld [vmem:[#allocation2 + $0x48] sm:$0xff]  ;;  %v566_v61 = vld [vmem:[#allocation2 + $0x50] sm:$0xff] }
  0x76   : > { %515 = vst.msk [vmem:[#allocation2 + $0x109] sm:$0xff] %vm374_vm0, %v482_v42  ;;  %516 = vst.msk [vmem:[#allocation2 + $0x111] sm:$0xff] %vm374_vm0, %v483_v43  ;;  %8705 = vmatmul.mubr.msk.bf16.vlgmr.msra.gmra.mrb[0].mxu0 %vm374_vm0, %v10639_v54  ;;  %v567_v62 = vld [vmem:[#allocation2 + $0x60] sm:$0xff]  ;;  %v568_v63 = vld [vmem:[#allocation2 + $0x68] sm:$0xff]  ;;  %v10658_v0 = vpack.c.bf16 %v566_v61, %v565_v60 }
  0x77   : > { %517 = vst.msk [vmem:[#allocation2 + $0x121] sm:$0xff] %vm374_vm0, %v484_v44  ;;  %518 = vst.msk [vmem:[#allocation2 + $0x129] sm:$0xff] %vm374_vm0, %v485_v45  ;;  %8737 = vmatpush3.bf16.msra.mxu0 %v1048_v55  ;;  %8708 = vmatprep.mubr.msk.bf16.mxu0 %vm374_vm0, %v10645_v58  ;;  %v10660_v1 = vpack.c.bf16 %v568_v63, %v567_v62  ;;  %v569_v2 = vld [vmem:[#allocation2 + $0x78] sm:$0xff]  ;;  %v570_v3 = vld [vmem:[#allocation2 + $0x80] sm:$0xff]  ;;  %v1406_v45 = vsel %vm688_vm2, %v10650_v59, 0 }
  0x78   : > { %519 = vst.msk [vmem:[#allocation2 + $0x139] sm:$0xff] %vm374_vm0, %v486_v46  ;;  %520 = vst.msk [vmem:[#allocation2 + $0x141] sm:$0xff] %vm374_vm0, %v487_v47  ;;  %9990 = vmatprep.subr.msk.bf16.mxu0 %vm688_vm2, %v10650_v59  ;;  %v571_v4 = vld [vmem:[#allocation2 + $0x90] sm:$0xff]  ;;  %v572_v5 = vld [vmem:[#allocation2 + $0x98] sm:$0xff]  ;;  %v10666_v6 = vpack.c.bf16 %v570_v3, %v569_v2 }
  0x79   : > { %521 = vst.msk [vmem:[#allocation2 + $0x151] sm:$0xff] %vm374_vm0, %v488_v48  ;;  %522 = vst.msk [vmem:[#allocation2 + $0x159] sm:$0xff] %vm374_vm0, %v489_v49  ;;  %v10668_v7 = vpack.c.bf16 %v572_v5, %v571_v4  ;;  %v573_v8 = vld [vmem:[#allocation2 + $0xa8] sm:$0xff]  ;;  %v574_v9 = vld [vmem:[#allocation2 + $0xb0] sm:$0xff] }
  0x7a   : > { %523 = vst.msk [vmem:[#allocation2 + $0x169] sm:$0xff] %vm374_vm0, %v490_v50  ;;  %524 = vst.msk [vmem:[#allocation2 + $0x171] sm:$0xff] %vm374_vm0, %v491_v51  ;;  %v575_v10 = vld [vmem:[#allocation2 + $0xc0] sm:$0xff]  ;;  %v576_v11 = vld [vmem:[#allocation2 + $0xc8] sm:$0xff]  ;;  %v10674_v12 = vpack.c.bf16 %v574_v9, %v573_v8 }
  0x7b   : > { %v10676_v13 = vpack.c.bf16 %v576_v11, %v575_v10  ;;  %v577_v14 = vld [vmem:[#allocation2 + $0xd8] sm:$0xff]  ;;  %v578_v15 = vld [vmem:[#allocation2 + $0xe0] sm:$0xff]  ;;  %v918_v37 = vld [vmem:[#allocation2 + $0x9] sm:$0xff] }
  0x7c   : > { %v579_v16 = vld [vmem:[#allocation2 + $0xf0] sm:$0xff]  ;;  %v580_v17 = vld [vmem:[#allocation2 + $0xf8] sm:$0xff]  ;;  %v10682_v18 = vpack.c.bf16 %v578_v15, %v577_v14  ;;  %v981_v41 = vpack.c.bf16 %v918_v37, %v917_v36  ;;  %v920_v43 = vld [vmem:[#allocation2 + $0x21] sm:$0xff] }
  0x7d   : > { %v10684_v19 = vpack.c.bf16 %v580_v17, %v579_v16  ;;  %v581_v20 = vld [vmem:[#allocation2 + $0x108] sm:$0xff]  ;;  %v582_v21 = vld [vmem:[#allocation2 + $0x110] sm:$0xff]  ;;  %v919_v42 = vld [vmem:[#allocation2 + $0x19] sm:$0xff] }
  0x7e   : > { %8709 = vmatmul.mubr.msk.bf16.gmra.mrb[4].mxu0 %vm374_vm0, %v10658_v0  ;;  %v583_v22 = vld [vmem:[#allocation2 + $0x120] sm:$0xff]  ;;  %v584_v23 = vld [vmem:[#allocation2 + $0x128] sm:$0xff]  ;;  %v10690_v24 = vpack.c.bf16 %v582_v21, %v581_v20  ;;  %v921_v44 = vld [vmem:[#allocation2 + $0x31] sm:$0xff]  ;;  %v10713_v47 = vpack.c.bf16 %v920_v43, %v919_v42 }
  0x7f   : > { %8712 = vmatprep.mubr.msk.bf16.mxu0 %vm374_vm0, %v10660_v1  ;;  %v10692_v25 = vpack.c.bf16 %v584_v23, %v583_v22  ;;  %v585_v26 = vld [vmem:[#allocation2 + $0x138] sm:$0xff]  ;;  %v586_v30 = vld [vmem:[#allocation2 + $0x140] sm:$0xff]  ;;  %v923_v50 = vld [vmem:[#allocation2 + $0x49] sm:$0xff] }
  0x80   : > { %v587_v31 = vld [vmem:[#allocation2 + $0x150] sm:$0xff]  ;;  %v588_v32 = vld [vmem:[#allocation2 + $0x158] sm:$0xff]  ;;  %v10698_v33 = vpack.c.bf16 %v586_v30, %v585_v26  ;;  %v10720_v49 = vld [vmem:[%s11734_s1 + $0x6] sm:$0x3] }
  0x81   : > { %v10700_v35 = vpack.c.bf16 %v588_v32, %v587_v31  ;;  %v589_v38 = vld [vmem:[#allocation2 + $0x168] sm:$0xff]  ;;  %v590_v39 = vld [vmem:[#allocation2 + $0x170] sm:$0xff]  ;;  %v922_v46 = vld [vmem:[#allocation2 + $0x39] sm:$0xff] }
  0x82   : > { %v10706_v40 = vpack.c.bf16 %v590_v39, %v589_v38  ;;  %v10715_v48 = vpack.c.bf16 %v922_v46, %v921_v44  ;;  %v924_v51 = vld [vmem:[#allocation2 + $0x51] sm:$0xff]  ;;  %v925_v52 = vld [vmem:[#allocation2 + $0x61] sm:$0xff]  ;;  %v926_v53 = vld [vmem:[#allocation2 + $0x69] sm:$0xff] }
  0x83   : > { %v10728_v55 = vpack.c.bf16 %v924_v51, %v923_v50  ;;  %v10730_v56 = vpack.c.bf16 %v926_v53, %v925_v52  ;;  %v927_v57 = vld [vmem:[#allocation2 + $0x79] sm:$0xff]  ;;  %v928_v59 = vld [vmem:[#allocation2 + $0x81] sm:$0xff]  ;;  %v929_v60 = vld [vmem:[#allocation2 + $0x91] sm:$0xff] }
  0x84   : > { %v930_v61 = vld [vmem:[#allocation2 + $0x99] sm:$0xff]  ;;  %v10736_v62 = vpack.c.bf16 %v928_v59, %v927_v57  ;;  %v931_v2 = vld [vmem:[#allocation2 + $0xa9] sm:$0xff]  ;;  %v932_v3 = vld [vmem:[#allocation2 + $0xb1] sm:$0xff] }
  0x85   : > { %v10738_v63 = vpack.c.bf16 %v930_v61, %v929_v60  ;;  %v933_v4 = vld [vmem:[#allocation2 + $0xc1] sm:$0xff]  ;;  %v934_v5 = vld [vmem:[#allocation2 + $0xc9] sm:$0xff]  ;;  %v10744_v8 = vpack.c.bf16 %v932_v3, %v931_v2  ;;  %v935_v10 = vld [vmem:[#allocation2 + $0xd9] sm:$0xff]  ;;  %v1764_v3 = vsel %vm688_vm2, %v10720_v49, 0 }
  0x86   : > { %8713 = vmatmul.mubr.msk.bf16.gmra.mrb[8].mxu0 %vm374_vm0, %v10666_v6  ;;  %v10746_v9 = vpack.c.bf16 %v934_v5, %v933_v4  ;;  %v936_v11 = vld [vmem:[#allocation2 + $0xe1] sm:$0xff]  ;;  %v937_v14 = vld [vmem:[#allocation2 + $0xf1] sm:$0xff]  ;;  %v938_v15 = vld [vmem:[#allocation2 + $0xf9] sm:$0xff] }
  0x87   : > { %8716 = vmatprep.mubr.msk.bf16.mxu0 %vm374_vm0, %v10668_v7  ;;  %v10752_v16 = vpack.c.bf16 %v936_v11, %v935_v10  ;;  %v10754_v17 = vpack.c.bf16 %v938_v15, %v937_v14  ;;  %v939_v20 = vld [vmem:[#allocation2 + $0x109] sm:$0xff]  ;;  %v940_v21 = vld [vmem:[#allocation2 + $0x111] sm:$0xff]  ;;  %v941_v22 = vld [vmem:[#allocation2 + $0x121] sm:$0xff] }
  0x88   : > { %v942_v23 = vld [vmem:[#allocation2 + $0x129] sm:$0xff]  ;;  %v10760_v26 = vpack.c.bf16 %v940_v21, %v939_v20  ;;  %v943_v31 = vld [vmem:[#allocation2 + $0x139] sm:$0xff]  ;;  %v944_v32 = vld [vmem:[#allocation2 + $0x141] sm:$0xff] }
  0x89   : > { %v10762_v30 = vpack.c.bf16 %v942_v23, %v941_v22  ;;  %v945_v36 = vld [vmem:[#allocation2 + $0x151] sm:$0xff]  ;;  %v946_v37 = vld [vmem:[#allocation2 + $0x159] sm:$0xff]  ;;  %v10771_v39 = vpack.c.bf16 %v944_v32, %v943_v31  ;;  %v947_v44 = vld [vmem:[#allocation2 + $0x169] sm:$0xff] }
  0x8a   : > { %v10769_v38 = vld [vmem:[%s10565_s20 + $0x78] sm:$0xff]   ;;  %v10775_v43 = vpack.c.bf16 %v946_v37, %v945_v36  ;;  %v1275_v46 = vld [vmem:[#allocation2 + $0x2] sm:$0xff]  ;;  %v1276_v50 = vld [vmem:[#allocation2 + $0xa] sm:$0xff] }
  0x8b   : > { %v493_v42 = vunpack.c.h.bf16 %v10769_v38  ;;  %v1339_v52 = vpack.c.bf16 %v1276_v50, %v1275_v46  ;;  %v1277_v53 = vld [vmem:[#allocation2 + $0x1a] sm:$0xff]  ;;  %v1278_v57 = vld [vmem:[#allocation2 + $0x22] sm:$0xff]  ;;  %v1279_v59 = vld [vmem:[#allocation2 + $0x32] sm:$0xff] }
  0x8c   : > { %v1280_v60 = vld [vmem:[#allocation2 + $0x3a] sm:$0xff]  ;;  %v10788_v61 = vpack.c.bf16 %v1278_v57, %v1277_v53  ;;  %v8114_v4 = vld [vmem:[%s11734_s1 + $0x8] sm:$0x3]  ;;  %v1281_v5 = vld [vmem:[#allocation2 + $0x4a] sm:$0xff] }
  0x8d   : > { %526 = vst.msk [vmem:[#allocation2 + $0x189] sm:$0xff] %vm374_vm0, %v493_v42  ;;  %v10790_v2 = vpack.c.bf16 %v1280_v60, %v1279_v59  ;;  %v1282_v10 = vld [vmem:[#allocation2 + $0x52] sm:$0xff]  ;;  %v1283_v11 = vld [vmem:[#allocation2 + $0x62] sm:$0xff]  ;;  %v1284_v14 = vld [vmem:[#allocation2 + $0x6a] sm:$0xff] }
  0x8e   : > { %8717 = vmatmul.mubr.msk.bf16.gmra.mrb[12].mxu0 %vm374_vm0, %v10674_v12  ;;  %v10802_v15 = vpack.c.bf16 %v1282_v10, %v1281_v5  ;;  %v1285_v20 = vld [vmem:[#allocation2 + $0x7a] sm:$0xff]  ;;  %v1286_v21 = vld [vmem:[#allocation2 + $0x82] sm:$0xff]  ;;  %v1287_v22 = vld [vmem:[#allocation2 + $0x92] sm:$0xff] }
  0x8f   : > { %8720 = vmatprep.mubr.msk.bf16.mxu0 %vm374_vm0, %v10676_v13  ;;  %v1288_v23 = vld [vmem:[#allocation2 + $0x9a] sm:$0xff]  ;;  %v10810_v31 = vpack.c.bf16 %v1286_v21, %v1285_v20  ;;  %v1289_v36 = vld [vmem:[#allocation2 + $0xaa] sm:$0xff]  ;;  %v1290_v37 = vld [vmem:[#allocation2 + $0xb2] sm:$0xff] }
  0x90   : > { %v10812_v32 = vpack.c.bf16 %v1288_v23, %v1287_v22  ;;  %v1292_v42 = vld [vmem:[#allocation2 + $0xca] sm:$0xff]  ;;  %v1293_v46 = vld [vmem:[#allocation2 + $0xda] sm:$0xff]  ;;  %v1294_v50 = vld [vmem:[#allocation2 + $0xe2] sm:$0xff] }
  0x91   : > { %v1296_v53 = vld [vmem:[#allocation2 + $0xfa] sm:$0xff]  ;;  %v10826_v57 = vpack.c.bf16 %v1294_v50, %v1293_v46  ;;  %v1297_v60 = vld [vmem:[#allocation2 + $0x10a] sm:$0xff]  ;;  %v1299_v5 = vld [vmem:[#allocation2 + $0x122] sm:$0xff]  ;;  %v2122_v50 = vsel %vm688_vm2, %v8114_v4, 0 }
  0x92   : > { %v1300_v10 = vld [vmem:[#allocation2 + $0x12a] sm:$0xff]  ;;  %v1301_v20 = vld [vmem:[#allocation2 + $0x13a] sm:$0xff]  ;;  %v1302_v21 = vld [vmem:[#allocation2 + $0x142] sm:$0xff] }
  0x93   : > { %v1303_v22 = vld [vmem:[#allocation2 + $0x152] sm:$0xff]  ;;  %v1304_v23 = vld [vmem:[#allocation2 + $0x15a] sm:$0xff] }
  0x96   : > { %8721 = vmatmul.mubr.msk.bf16.gmra.mrb[16].mxu0 %vm374_vm0, %v10682_v18 }
  0x97   : > { %8724 = vmatprep.mubr.msk.bf16.mxu0 %vm374_vm0, %v10684_v19 }
  0x9e   : > { %8725 = vmatmul.mubr.msk.bf16.gmra.mrb[20].mxu0 %vm374_vm0, %v10690_v24 }
  0x9f   : > { %8728 = vmatprep.mubr.msk.bf16.mxu0 %vm374_vm0, %v10692_v25 }
  0xa6   : > { %8729 = vmatmul.mubr.msk.bf16.gmra.mrb[24].mxu0 %vm374_vm0, %v10698_v33 }
  0xa7   : > { %8732 = vmatprep.mubr.msk.bf16.mxu0 %vm374_vm0, %v10700_v35 }
  0xae   : > { %8733 = vmatmul.mubr.msk.bf16.gmra.mrb[28].mxu0 %vm374_vm0, %v10706_v40 }
  0xaf   : > { %8738 = vmatprep.mubr.msk.bf16.mxu0 %vm374_vm0, %v981_v41  ;;  %v492_v41 = vunpack.c.l.bf16 %v10769_v38 }
  0xb1   : > { %525 = vst.msk [vmem:[#allocation2 + $0x181] sm:$0xff] %vm374_vm0, %v492_v41  ;;  %v1291_v41 = vld [vmem:[#allocation2 + $0xc2] sm:$0xff] }
  0xb6   : > { %8739 = vmatmul.mubr.msk.bf16.vlgmr.msra.gmra.mrb[0].mxu0 %vm374_vm0, %v10713_v47 }
  0xb7   : > { %8771 = vmatpush3.bf16.msra.mxu0 %v1406_v45  ;;  %8742 = vmatprep.mubr.msk.bf16.mxu0 %vm374_vm0, %v10715_v48  ;;  %v948_v45 = vld [vmem:[#allocation2 + $0x171] sm:$0xff] }
  0xb8   : > { %9991 = vmatprep.subr.msk.bf16.mxu0 %vm688_vm2, %v10720_v49  ;;  %v10783_v51 = vpack.c.bf16 %v948_v45, %v947_v44  ;;  %v10804_v49 = vpack.c.bf16 %v1284_v14, %v1283_v11  ;;  %v10818_v44 = vpack.c.bf16 %v1290_v37, %v1289_v36  ;;  %v10820_v45 = vpack.c.bf16 %v1292_v42, %v1291_v41  ;;  %v1305_v41 = vld [vmem:[#allocation2 + $0x16a] sm:$0xff]  ;;  %v1306_v42 = vld [vmem:[#allocation2 + $0x172] sm:$0xff] }
  0xb9   : > { %v10836_v14 = vpack.c.bf16 %v1300_v10, %v1299_v5  ;;  %v10842_v36 = vpack.c.bf16 %v1302_v21, %v1301_v20  ;;  %v10844_v37 = vpack.c.bf16 %v1304_v23, %v1303_v22  ;;  %v10850_v46 = vpack.c.bf16 %v1306_v42, %v1305_v41  ;;  %v2022_v5 = vld [vmem:[#allocation2 + $0x189] sm:$0xff] }
  0xba   : > { %v8165_v21 = vld [vmem:[%s11734_s1 + $0xe] sm:$0x3]  ;;  %v8182_v42 = vld [vmem:[%s11734_s1 + $0x10] sm:$0x3] }
  0xbb   : > { %v2380_v22 = vld [vmem:[#allocation2 + $0x18a] sm:$0xff]  ;;  %v3197_v41 = vsel %vm688_vm2, %v8165_v21, 0 }
  0xbe   : > { %8743 = vmatmul.mubr.msk.bf16.gmra.mrb[4].mxu0 %vm374_vm0, %v10728_v55 }
  0xbf   : > { %8746 = vmatprep.mubr.msk.bf16.mxu0 %vm374_vm0, %v10730_v56 }
  0xc6   : > { %8747 = vmatmul.mubr.msk.bf16.gmra.mrb[8].mxu0 %vm374_vm0, %v10736_v62 }
  0xc7   : > { %8750 = vmatprep.mubr.msk.bf16.mxu0 %vm374_vm0, %v10738_v63 }
  0xce   : > { %8751 = vmatmul.mubr.msk.bf16.gmra.mrb[12].mxu0 %vm374_vm0, %v10744_v8 }
  0xcf   : > { %8754 = vmatprep.mubr.msk.bf16.mxu0 %vm374_vm0, %v10746_v9 }
  0xd6   : > { %8755 = vmatmul.mubr.msk.bf16.gmra.mrb[16].mxu0 %vm374_vm0, %v10752_v16 }
  0xd7   : > { %8758 = vmatprep.mubr.msk.bf16.mxu0 %vm374_vm0, %v10754_v17 }
  0xde   : > { %8759 = vmatmul.mubr.msk.bf16.gmra.mrb[20].mxu0 %vm374_vm0, %v10760_v26 }
  0xdf   : > { %8762 = vmatprep.mubr.msk.bf16.mxu0 %vm374_vm0, %v10762_v30 }
  0xe6   : > { %8763 = vmatmul.mubr.msk.bf16.gmra.mrb[24].mxu0 %vm374_vm0, %v10771_v39 }
  0xe7   : > { %8766 = vmatprep.mubr.msk.bf16.mxu0 %vm374_vm0, %v10775_v43 }
  0xee   : > { %8767 = vmatmul.mubr.msk.bf16.gmra.mrb[28].mxu0 %vm374_vm0, %v10783_v51 }
  0xef   : > { %8772 = vmatprep.mubr.msk.bf16.mxu0 %vm374_vm0, %v1339_v52  ;;  %v1295_v52 = vld [vmem:[#allocation2 + $0xf2] sm:$0xff] }
  0xf0   : > { %v10828_v59 = vpack.c.bf16 %v1296_v53, %v1295_v52  ;;  %v8131_v52 = vld [vmem:[%s11734_s1 + $0xa] sm:$0x3] }
  0xf6   : > { %8773 = vmatmul.mubr.msk.bf16.vlgmr.msra.gmra.mrb[0].mxu0 %vm374_vm0, %v10788_v61 }
  0xf7   : > { %8805 = vmatpush3.bf16.msra.mxu0 %v1764_v3  ;;  %8776 = vmatprep.mubr.msk.bf16.mxu0 %vm374_vm0, %v10790_v2  ;;  %v1298_v3 = vld [vmem:[#allocation2 + $0x112] sm:$0xff] }
  0xf8   : > { %9992 = vmatprep.subr.msk.bf16.mxu0 %vm688_vm2, %v8114_v4  ;;  %v10834_v11 = vpack.c.bf16 %v1298_v3, %v1297_v60  ;;  %v1664_v4 = vld [vmem:[#allocation2 + $0x188] sm:$0xff]  ;;  %v2480_v60 = vsel %vm688_vm2, %v8131_v52, 0 }
  0xf9   : > { %v8148_v3 = vld [vmem:[%s11734_s1 + $0xc] sm:$0x3] }
  0xfa   : > { %v2839_v20 = vsel %vm688_vm2, %v8148_v3, 0 }
  0xfe   : > { %8777 = vmatmul.mubr.msk.bf16.gmra.mrb[4].mxu0 %vm374_vm0, %v10802_v15 }
  0xff   : > { %8780 = vmatprep.mubr.msk.bf16.mxu0 %vm374_vm0, %v10804_v49 }
 0x106   : > { %8781 = vmatmul.mubr.msk.bf16.gmra.mrb[8].mxu0 %vm374_vm0, %v10810_v31 }
 0x107   : > { %8784 = vmatprep.mubr.msk.bf16.mxu0 %vm374_vm0, %v10812_v32 }
 0x10e   : > { %8785 = vmatmul.mubr.msk.bf16.gmra.mrb[12].mxu0 %vm374_vm0, %v10818_v44 }
 0x10f   : > { %8788 = vmatprep.mubr.msk.bf16.mxu0 %vm374_vm0, %v10820_v45 }
 0x116   : > { %8789 = vmatmul.mubr.msk.bf16.gmra.mrb[16].mxu0 %vm374_vm0, %v10826_v57 }
 0x117   : > { %8792 = vmatprep.mubr.msk.bf16.mxu0 %vm374_vm0, %v10828_v59 }
 0x11e   : > { %8793 = vmatmul.mubr.msk.bf16.gmra.mrb[20].mxu0 %vm374_vm0, %v10834_v11 }
 0x11f   : > { %8796 = vmatprep.mubr.msk.bf16.mxu0 %vm374_vm0, %v10836_v14 }
 0x126   : > { %8797 = vmatmul.mubr.msk.bf16.gmra.mrb[24].mxu0 %vm374_vm0, %v10842_v36 }
 0x127   : > { %8800 = vmatprep.mubr.msk.bf16.mxu0 %vm374_vm0, %v10844_v37 }
 0x12e   : > { %8801 = vmatmul.mubr.msk.bf16.gmra.mrb[28].mxu0 %vm374_vm0, %v10850_v46 }
 0x12f   : > { %8806 = vmatprep.mubr.msk.bf16.mxu0 %vm374_vm0, %v10639_v54  ;;  %v1663_v54 = vld [vmem:[#allocation2 + $0x180] sm:$0xff] }
 0x130   : > { %v10889_v53 = vpack.c.bf16 %v1664_v4, %v1663_v54 }
 0x136   : > { %8807 = vmatmul.mubr.msk.bf16.vlgmr.msra.gmra.mrb[0].mxu0 %vm374_vm0, %v10645_v58 }
 0x137   : > { %8839 = vmatpush3.bf16.msra.mxu0 %v2122_v50  ;;  %8810 = vmatprep.mubr.msk.bf16.mxu0 %vm374_vm0, %v10658_v0 }
 0x138   : > { %9993 = vmatprep.subr.msk.bf16.mxu0 %vm688_vm2, %v8131_v52 }
 0x13e   : > { %8811 = vmatmul.mubr.msk.bf16.gmra.mrb[4].mxu0 %vm374_vm0, %v10660_v1 }
 0x13f   : > { %8814 = vmatprep.mubr.msk.bf16.mxu0 %vm374_vm0, %v10666_v6 }
 0x146   : > { %8815 = vmatmul.mubr.msk.bf16.gmra.mrb[8].mxu0 %vm374_vm0, %v10668_v7 }
 0x147   : > { %8818 = vmatprep.mubr.msk.bf16.mxu0 %vm374_vm0, %v10674_v12 }
 0x14e   : > { %8819 = vmatmul.mubr.msk.bf16.gmra.mrb[12].mxu0 %vm374_vm0, %v10676_v13 }
 0x14f   : > { %8822 = vmatprep.mubr.msk.bf16.mxu0 %vm374_vm0, %v10682_v18 }
 0x156   : > { %8823 = vmatmul.mubr.msk.bf16.gmra.mrb[16].mxu0 %vm374_vm0, %v10684_v19 }
 0x157   : > { %8826 = vmatprep.mubr.msk.bf16.mxu0 %vm374_vm0, %v10690_v24 }
 0x15e   : > { %8827 = vmatmul.mubr.msk.bf16.gmra.mrb[20].mxu0 %vm374_vm0, %v10692_v25 }
 0x15f   : > { %8830 = vmatprep.mubr.msk.bf16.mxu0 %vm374_vm0, %v10698_v33 }
 0x166   : > { %8831 = vmatmul.mubr.msk.bf16.gmra.mrb[24].mxu0 %vm374_vm0, %v10700_v35 }
 0x167   : > { %8834 = vmatprep.mubr.msk.bf16.mxu0 %vm374_vm0, %v10706_v40 }
 0x16e   : > { %8835 = vmatmul.mubr.msk.bf16.gmra.mrb[28].mxu0 %vm374_vm0, %v10889_v53 }
 0x16f   : > { %8840 = vmatprep.mubr.msk.bf16.mxu0 %vm374_vm0, %v10713_v47  ;;  %v2021_v47 = vld [vmem:[#allocation2 + $0x181] sm:$0xff] }
 0x170   : > { %v10928_v10 = vpack.c.bf16 %v2022_v5, %v2021_v47 }
 0x176   : > { %8841 = vmatmul.mubr.msk.bf16.vlgmr.msra.gmra.mrb[0].mxu0 %vm374_vm0, %v10715_v48 }
 0x177   : > { %8873 = vmatpush3.bf16.msra.mxu0 %v2480_v60  ;;  %8844 = vmatprep.mubr.msk.bf16.mxu0 %vm374_vm0, %v10728_v55 }
 0x178   : > { %9994 = vmatprep.subr.msk.bf16.mxu0 %vm688_vm2, %v8148_v3 }
 0x17e   : > { %8845 = vmatmul.mubr.msk.bf16.gmra.mrb[4].mxu0 %vm374_vm0, %v10730_v56 }
 0x17f   : > { %8848 = vmatprep.mubr.msk.bf16.mxu0 %vm374_vm0, %v10736_v62 }
 0x186   : > { %8849 = vmatmul.mubr.msk.bf16.gmra.mrb[8].mxu0 %vm374_vm0, %v10738_v63 }
 0x187   : > { %8852 = vmatprep.mubr.msk.bf16.mxu0 %vm374_vm0, %v10744_v8 }
 0x18e   : > { %8853 = vmatmul.mubr.msk.bf16.gmra.mrb[12].mxu0 %vm374_vm0, %v10746_v9 }
 0x18f   : > { %8856 = vmatprep.mubr.msk.bf16.mxu0 %vm374_vm0, %v10752_v16 }
 0x196   : > { %8857 = vmatmul.mubr.msk.bf16.gmra.mrb[16].mxu0 %vm374_vm0, %v10754_v17 }
 0x197   : > { %8860 = vmatprep.mubr.msk.bf16.mxu0 %vm374_vm0, %v10760_v26 }
 0x19e   : > { %8861 = vmatmul.mubr.msk.bf16.gmra.mrb[20].mxu0 %vm374_vm0, %v10762_v30 }
 0x19f   : > { %8864 = vmatprep.mubr.msk.bf16.mxu0 %vm374_vm0, %v10771_v39 }
 0x1a6   : > { %8865 = vmatmul.mubr.msk.bf16.gmra.mrb[24].mxu0 %vm374_vm0, %v10775_v43 }
 0x1a7   : > { %8868 = vmatprep.mubr.msk.bf16.mxu0 %vm374_vm0, %v10783_v51 }
 0x1ae   : > { %8869 = vmatmul.mubr.msk.bf16.gmra.mrb[28].mxu0 %vm374_vm0, %v10928_v10 }
 0x1af   : > { %8874 = vmatprep.mubr.msk.bf16.mxu0 %vm374_vm0, %v10788_v61  ;;  %v2379_v61 = vld [vmem:[#allocation2 + $0x182] sm:$0xff] }
 0x1b0   : > { %v10967_v23 = vpack.c.bf16 %v2380_v22, %v2379_v61 }
 0x1b6   : > { %8875 = vmatmul.mubr.msk.bf16.vlgmr.msra.gmra.mrb[0].mxu0 %vm374_vm0, %v10790_v2 }
 0x1b7   : > { %8907 = vmatpush3.bf16.msra.mxu0 %v2839_v20  ;;  %8878 = vmatprep.mubr.msk.bf16.mxu0 %vm374_vm0, %v10802_v15 }
 0x1b8   : > { %9995 = vmatprep.subr.msk.bf16.mxu0 %vm688_vm2, %v8165_v21 }
 0x1be   : > { %8879 = vmatmul.mubr.msk.bf16.gmra.mrb[4].mxu0 %vm374_vm0, %v10804_v49 }
 0x1bf   : > { %8882 = vmatprep.mubr.msk.bf16.mxu0 %vm374_vm0, %v10810_v31 }
 0x1c6   : > { %8883 = vmatmul.mubr.msk.bf16.gmra.mrb[8].mxu0 %vm374_vm0, %v10812_v32 }
 0x1c7   : > { %8886 = vmatprep.mubr.msk.bf16.mxu0 %vm374_vm0, %v10818_v44 }
 0x1ce   : > { %8887 = vmatmul.mubr.msk.bf16.gmra.mrb[12].mxu0 %vm374_vm0, %v10820_v45 }
 0x1cf   : > { %8890 = vmatprep.mubr.msk.bf16.mxu0 %vm374_vm0, %v10826_v57 }
 0x1d6   : > { %8891 = vmatmul.mubr.msk.bf16.gmra.mrb[16].mxu0 %vm374_vm0, %v10828_v59 }
 0x1d7   : > { %8894 = vmatprep.mubr.msk.bf16.mxu0 %vm374_vm0, %v10834_v11 }
 0x1de   : > { %8895 = vmatmul.mubr.msk.bf16.gmra.mrb[20].mxu0 %vm374_vm0, %v10836_v14 }
 0x1df   : > { %8898 = vmatprep.mubr.msk.bf16.mxu0 %vm374_vm0, %v10842_v36 }
 0x1e6   : > { %8899 = vmatmul.mubr.msk.bf16.gmra.mrb[24].mxu0 %vm374_vm0, %v10844_v37 }
 0x1e7   : > { %8902 = vmatprep.mubr.msk.bf16.mxu0 %vm374_vm0, %v10850_v46 }
 0x1ee   : > { %8903 = vmatmul.mubr.msk.bf16.gmra.mrb[28].mxu0 %vm374_vm0, %v10967_v23 }
 0x1ef   : > { %8908 = vmatprep.mubr.msk.bf16.mxu0 %vm374_vm0, %v10645_v58  ;;  %v2738_v58 = vld [vmem:[#allocation2 + $0x198] sm:$0xff] }
 0x1f6   : > { %8909 = vmatmul.mubr.msk.bf16.vlgmr.msra.gmra.mrb[0].mxu0 %vm374_vm0, %v10658_v0  ;;  %v2739_v0 = vld [vmem:[#allocation2 + $0x1a0] sm:$0xff] }
 0x1f7   : > { %8941 = vmatpush3.bf16.msra.mxu0 %v3197_v41  ;;  %8912 = vmatprep.mubr.msk.bf16.mxu0 %vm374_vm0, %v10660_v1  ;;  %v2787_v1 = vpack.c.bf16 %v2739_v0, %v2738_v58 }
 0x1f8   : > { %9996 = vmatprep.subr.msk.bf16.mxu0 %vm688_vm2, %v8182_v42 }
 0x1fe   : > { %8913 = vmatmul.mubr.msk.bf16.gmra.mrb[4].mxu0 %vm374_vm0, %v10666_v6  ;;  %v4027_v6 = vld [vmem:[%s11736_s3] sm:$0x3] }
 0x1ff   : > { %8916 = vmatprep.mubr.msk.bf16.mxu0 %vm374_vm0, %v10668_v7  ;;  %v10054_v7 = vld [vmem:[#allocation6] sm:$0xff]   ;;  %9998 = vmatprep.subr.msk.bf16.mxu1 %vm688_vm2, %v4027_v6 }
 0x206   : > { %8917 = vmatmul.mubr.msk.bf16.gmra.mrb[8].mxu0 %vm374_vm0, %v10674_v12  ;;  %v4077_v12 = vsel %vm688_vm2, %v4027_v6, 0 }
 0x207   : > { %8920 = vmatprep.mubr.msk.bf16.mxu0 %vm374_vm0, %v10676_v13  ;;  %9475 = vmatpush3.bf16.msra.mxu1 %v4077_v12  ;;  %v10055_v13 = vld [vmem:[#allocation6 + $0x8] sm:$0xff]  }
 0x208   : > { %9042 = vmatprep.subr.bf16.mxu1 %v10054_v7 }
 0x20a   : > { %9027 = vmatmul.mubr.msk.bf16.vlgmr.msra.gmra.mrb[0].mxu1 %vm374_vm0, %v10596_v28  ;;  %v3096_v28 = vld [vmem:[#allocation2 + $0x199] sm:$0xff] }
 0x20b   : > { %9043 = vmatpush3.bf16.msra.mxu1 %v10054_v7  ;;  %9030 = vmatprep.mubr.msk.bf16.mxu1 %vm374_vm0, %v10599_v29  ;;  %v3097_v29 = vld [vmem:[#allocation2 + $0x1a1] sm:$0xff] }
 0x20c   : > { %9044 = vmatprep.subr.bf16.mxu1 %v10055_v13 }
 0x20e   : > { %8921 = vmatmul.mubr.msk.bf16.gmra.mrb[12].mxu0 %vm374_vm0, %v10682_v18  ;;  %v3555_v18 = vsel %vm688_vm2, %v8182_v42, 0 }
 0x20f   : > { %8924 = vmatprep.mubr.msk.bf16.mxu0 %vm374_vm0, %v10684_v19  ;;  %v10056_v19 = vld [vmem:[#allocation6 + $0x10] sm:$0xff]   ;;  %9045 = vmatpush3.bf16.msra.mxu1 %v10055_v13 }
 0x210   : > { %9046 = vmatprep.subr.bf16.mxu1 %v10056_v19 }
 0x212   : > { %9031 = vmatmul.mubr.msk.bf16.gmra.mrb[4].mxu1 %vm374_vm0, %v10606_v34  ;;  %v3145_v34 = vpack.c.bf16 %v3097_v29, %v3096_v28 }
 0x213   : > { %9047 = vmatpush3.bf16.msra.mxu1 %v10056_v19 }
 0x214   : > { %9048 = vmatprep.subr.bf16.mxu1 %v10057_v27 }
 0x216   : > { %8925 = vmatmul.mubr.msk.bf16.gmra.mrb[16].mxu0 %vm374_vm0, %v10690_v24  ;;  %v3454_v24 = vld [vmem:[#allocation2 + $0x19a] sm:$0xff] }
 0x217   : > { %8928 = vmatprep.mubr.msk.bf16.mxu0 %vm374_vm0, %v10692_v25  ;;  %9049 = vmatpush3.bf16.msra.mxu1 %v10057_v27  ;;  %v3455_v25 = vld [vmem:[#allocation2 + $0x1a2] sm:$0xff] }
 0x218   : > { %v10063_v27 = vld [vmem:[#allocation6 + $0x48] sm:$0xff]  }
 0x21e   : > { %8929 = vmatmul.mubr.msk.bf16.gmra.mrb[20].mxu0 %vm374_vm0, %v10698_v33  ;;  %v3503_v33 = vpack.c.bf16 %v3455_v25, %v3454_v24 }
 0x21f   : > { %8932 = vmatprep.mubr.msk.bf16.mxu0 %vm374_vm0, %v10700_v35  ;;  %v10142_v35 = vld [vmem:[%s10565_s20 + $0x60] sm:$0xff]  }
 0x220   : > { %9034 = vmatprep.mubr.msk.bf16.mxu1 %vm374_vm0, %v10142_v35 }
 0x226   : > { %8933 = vmatmul.mubr.msk.bf16.gmra.mrb[24].mxu0 %vm374_vm0, %v10706_v40  ;;  %v10143_v40 = vld [vmem:[%s10565_s20 + $0x68] sm:$0xff]  }
 0x227   : > { %8936 = vmatprep.mubr.msk.bf16.mxu0 %vm374_vm0, %v10889_v53  ;;  %9035 = vmatmul.mubr.msk.bf16.gmra.mrb[8].mxu1 %vm374_vm0, %v10143_v40 }
 0x22e   : > { %8937 = vmatmul.mubr.msk.bf16.gmra.mrb[28].mxu0 %vm374_vm0, %v2787_v1 }
 0x22f   : > { %8942 = vmatprep.mubr.msk.bf16.mxu0 %vm374_vm0, %v10715_v48  ;;  %v10058_v48 = vld [vmem:[#allocation6 + $0x20] sm:$0xff]  }
 0x230   : > { %9050 = vmatprep.subr.bf16.mxu1 %v10058_v48 }
 0x231   : > { %9051 = vmatpush3.bf16.msra.mxu1 %v10058_v48 }
 0x236   : > { %8943 = vmatmul.mubr.msk.bf16.vlgmr.msra.gmra.mrb[0].mxu0 %vm374_vm0, %v10728_v55  ;;  %v10059_v55 = vld [vmem:[#allocation6 + $0x28] sm:$0xff]  }
 0x237   : > { %8975 = vmatpush3.bf16.msra.mxu0 %v3555_v18  ;;  %8946 = vmatprep.mubr.msk.bf16.mxu0 %vm374_vm0, %v10730_v56  ;;  %v10144_v56 = vld [vmem:[%s10565_s20 + $0x70] sm:$0xff]  }
 0x238   : > { %9997 = vmatprep.subr.msk.bf16.mxu0 %vm688_vm2, %v4027_v6  ;;  %9052 = vmatprep.subr.bf16.mxu1 %v10059_v55 }
 0x239   : > { %9038 = vmatprep.mubr.msk.bf16.mxu1 %vm374_vm0, %v10144_v56  ;;  %9053 = vmatpush3.bf16.msra.mxu1 %v10059_v55 }
 0x23a   : > { %9039 = vmatmul.mubr.msk.bf16.gmra.mrb[12].mxu1 %vm374_vm0, %v10769_v38 }
 0x23e   : > { %8947 = vmatmul.mubr.msk.bf16.gmra.mrb[4].mxu0 %vm374_vm0, %v10736_v62  ;;  %v10060_v62 = vld [vmem:[#allocation6 + $0x30] sm:$0xff]  }
 0x23f   : > { %8950 = vmatprep.mubr.msk.bf16.mxu0 %vm374_vm0, %v10738_v63  ;;  %9054 = vmatprep.subr.bf16.mxu1 %v10060_v62  ;;  %v10061_v63 = vld [vmem:[#allocation6 + $0x38] sm:$0xff]  }
 0x240   : > { %9055 = vmatpush3.bf16.msra.mxu1 %v10060_v62  ;;  %v10064_v62 = vld [vmem:[#allocation6 + $0x50] sm:$0xff]  }
 0x241   : > { %9056 = vmatprep.subr.bf16.mxu1 %v10061_v63 }
 0x244   : > { %9057 = vmatpush3.bf16.msra.mxu1 %v10061_v63 }
 0x246   : > { %8951 = vmatmul.mubr.msk.bf16.gmra.mrb[8].mxu0 %vm374_vm0, %v10744_v8  ;;  %v10145_v8 = vld [vmem:[#allocation3] sm:$0xff] }
 0x247   : > { %8954 = vmatprep.mubr.msk.bf16.mxu0 %vm374_vm0, %v10746_v9  ;;  %v4446_v9 = vpack.c.bf16 %v10145_v8, %v10145_v8 }
 0x249   : > { %9058 = vmatprep.mubr.bf16.mxu1 %v4446_v9 }
 0x24e   : > { %8955 = vmatmul.mubr.msk.bf16.gmra.mrb[12].mxu0 %vm374_vm0, %v10752_v16  ;;  %v11092_v16 = vld [vmem:[#allocation6 + $0x40] sm:$0xff]  }
 0x24f   : > { %8958 = vmatprep.mubr.msk.bf16.mxu0 %vm374_vm0, %v10754_v17  ;;  %9090 = vmatprep.subr.bf16.mxu1 %v11092_v16  ;;  %v11098_v17 = vld [vmem:[%s11737_s4] ss:$0 sm:$0xff] }
 0x256   : > { %8959 = vmatmul.mubr.msk.bf16.gmra.mrb[16].mxu0 %vm374_vm0, %v10760_v26 }
 0x257   : > { %8962 = vmatprep.mubr.msk.bf16.mxu0 %vm374_vm0, %v10762_v30  ;;  %v11103_v30 = vld [vmem:[%s11738_s5] ss:$0 sm:$0xff] }
 0x25e   : > { %8963 = vmatmul.mubr.msk.bf16.gmra.mrb[20].mxu0 %vm374_vm0, %v10771_v39 }
 0x25f   : > { %8966 = vmatprep.mubr.msk.bf16.mxu0 %vm374_vm0, %v10775_v43 }
 0x266   : > { %8967 = vmatmul.mubr.msk.bf16.gmra.mrb[24].mxu0 %vm374_vm0, %v10783_v51 }
 0x267   : > { %8970 = vmatprep.mubr.msk.bf16.mxu0 %vm374_vm0, %v10928_v10 }
 0x26e   : > { %8971 = vmatmul.mubr.msk.bf16.gmra.mrb[28].mxu0 %vm374_vm0, %v3145_v34 }
 0x26f   : > { %8976 = vmatprep.mubr.msk.bf16.mxu0 %vm374_vm0, %v10790_v2 }
 0x276   : > { %8977 = vmatmul.mubr.msk.bf16.vlgmr.msra.gmra.mrb[0].mxu0 %vm374_vm0, %v10802_v15 }
 0x277   : > { %8980 = vmatprep.mubr.msk.bf16.mxu0 %vm374_vm0, %v10804_v49  ;;  %9009 = vmatpush3.bf16.msra.mxu0 %v4077_v12 }
 0x27e   : > { %8981 = vmatmul.mubr.msk.bf16.gmra.mrb[4].mxu0 %vm374_vm0, %v10810_v31 }
 0x27f   : > { %8984 = vmatprep.mubr.msk.bf16.mxu0 %vm374_vm0, %v10812_v32 }
 0x286   : > { %8985 = vmatmul.mubr.msk.bf16.gmra.mrb[8].mxu0 %vm374_vm0, %v10818_v44 }
 0x287   : > { %8988 = vmatprep.mubr.msk.bf16.mxu0 %vm374_vm0, %v10820_v45 }
 0x28e   : > { %8989 = vmatmul.mubr.msk.bf16.gmra.mrb[12].mxu0 %vm374_vm0, %v10826_v57 }
 0x28f   : > { %8992 = vmatprep.mubr.msk.bf16.mxu0 %vm374_vm0, %v10828_v59 }
 0x296   : > { %8993 = vmatmul.mubr.msk.bf16.gmra.mrb[16].mxu0 %vm374_vm0, %v10834_v11 }
 0x297   : > { %8996 = vmatprep.mubr.msk.bf16.mxu0 %vm374_vm0, %v10836_v14 }
 0x29e   : > { %8997 = vmatmul.mubr.msk.bf16.gmra.mrb[20].mxu0 %vm374_vm0, %v10842_v36 }
 0x29f   : > { %9000 = vmatprep.mubr.msk.bf16.mxu0 %vm374_vm0, %v10844_v37 }
 0x2a6   : > { %9001 = vmatmul.mubr.msk.bf16.gmra.mrb[24].mxu0 %vm374_vm0, %v10850_v46 }
 0x2a7   : > { %9004 = vmatprep.mubr.msk.bf16.mxu0 %vm374_vm0, %v10967_v23 }
 0x2ae   : > { %9005 = vmatmul.mubr.msk.bf16.gmra.mrb[28].mxu0 %vm374_vm0, %v3503_v33 }
 0x349   : > { %v8978_v26 = vpop.f32.mrb[0].mxu0 }
 0x34a   : > { %v3823_v38 = vmul.f32 %v8978_v26, %v11098_v17  ;;  %v3591_v39 = vpop.f32.mrb[1].mxu0 }
 0x34b   : > { %v3821_v43 = vmul.f32 %v11098_v17, %v3591_v39  ;;  %v8979_v51 = vpop.f32.mrb[2].mxu0 }
 0x34c   : > { %v3862_v2 = vadd.f32 %v11103_v30, %v3823_v38  ;;  %v3824_v15 = vmul.f32 %v8979_v51, %v11098_v17  ;;  %v3594_v49 = vpop.f32.mrb[3].mxu0 }
 0x34d   : > { %v3860_v31 = vadd.f32 %v11103_v30, %v3821_v43  ;;  %v3822_v32 = vmul.f32 %v11098_v17, %v3594_v49 }
 0x34e   : > { %v3894_v44 = vmax.f32 %v3862_v2, 0.0  ;;  %v3863_v45 = vadd.f32 %v11103_v30, %v3824_v15 }
 0x34f   : > { %v3892_v57 = vmax.f32 %v3860_v31, 0.0  ;;  %v3861_v59 = vadd.f32 %v11103_v30, %v3822_v32  ;;  %v10065_v32 = vld [vmem:[#allocation6 + $0x58] sm:$0xff]  }
 0x350   : > { %3981 = vst [vmem:[#allocation3 + $0x31] sm:$0xff] %v3894_v44  ;;  %v3895_v11 = vmax.f32 %v3863_v45, 0.0 }
 0x351   : > { %3979 = vst [vmem:[#allocation3 + $0x19] sm:$0xff] %v3892_v57  ;;  %v3893_v14 = vmax.f32 %v3861_v59, 0.0  ;;  %v8982_v36 = vpop.f32.mrb[4].mxu0 }
 0x352   : > { %3982 = vst [vmem:[#allocation3 + $0x39] sm:$0xff] %v3895_v11  ;;  %v3827_v37 = vmul.f32 %v8982_v36, %v11098_v17  ;;  %v3607_v46 = vpop.f32.mrb[5].mxu0  ;;  %v11114_v50 = vpack.c.bf16 %v3895_v11, %v3894_v44 }
 0x353   : > { %3980 = vst [vmem:[#allocation3 + $0x21] sm:$0xff] %v3893_v14  ;;  %v3825_v52 = vmul.f32 %v11098_v17, %v3607_v46  ;;  %v8983_v54 = vpop.f32.mrb[6].mxu0  ;;  %v11117_v4 = vpack.c.bf16 %v3893_v14, %v3892_v57 }
 0x354   : > { %v3866_v53 = vadd.f32 %v11103_v30, %v3827_v37  ;;  %v3828_v60 = vmul.f32 %v8983_v54, %v11098_v17  ;;  %v3610_v3 = vpop.f32.mrb[7].mxu0 }
 0x355   : > { %v3864_v47 = vadd.f32 %v11103_v30, %v3825_v52  ;;  %v3826_v5 = vmul.f32 %v11098_v17, %v3610_v3 }
 0x356   : > { %v3898_v10 = vmax.f32 %v3866_v53, 0.0  ;;  %v3867_v20 = vadd.f32 %v11103_v30, %v3828_v60  ;;  %v10066_v53 = vld [vmem:[#allocation6 + $0x60] sm:$0xff]  }
 0x357   : > { %v3896_v21 = vmax.f32 %v3864_v47, 0.0  ;;  %v3865_v61 = vadd.f32 %v11103_v30, %v3826_v5  ;;  %v4386_v19 = vld [vmem:[#allocation3 + $0x30] sm:$0xff] }
 0x358   : > { %3985 = vst [vmem:[#allocation3 + $0x61] sm:$0xff] %v3898_v10  ;;  %v3899_v22 = vmax.f32 %v3867_v20, 0.0  ;;  %v4384_v1 = vld [vmem:[#allocation3 + $0x18] sm:$0xff] }
 0x359   : > { %3983 = vst [vmem:[#allocation3 + $0x49] sm:$0xff] %v3896_v21  ;;  %v3897_v23 = vmax.f32 %v3865_v61, 0.0  ;;  %v8986_v41 = vpop.f32.mrb[8].mxu0  ;;  %v4387_v42 = vld [vmem:[#allocation3 + $0x38] sm:$0xff] }
 0x35a   : > { %3986 = vst [vmem:[#allocation3 + $0x69] sm:$0xff] %v3899_v22  ;;  %v3831_v58 = vmul.f32 %v8986_v41, %v11098_v17  ;;  %v3623_v0 = vpop.f32.mrb[9].mxu0  ;;  %v4385_v6 = vld [vmem:[#allocation3 + $0x20] sm:$0xff]  ;;  %v11126_v7 = vpack.c.bf16 %v3899_v22, %v3898_v10  ;;  %v11135_v25 = vpack.c.bf16 %v4387_v42, %v4386_v19 }
 0x35b   : > { %3984 = vst [vmem:[#allocation3 + $0x51] sm:$0xff] %v3897_v23  ;;  %v3829_v12 = vmul.f32 %v11098_v17, %v3623_v0  ;;  %v8987_v13 = vpop.f32.mrb[10].mxu0  ;;  %v11129_v18 = vpack.c.bf16 %v4385_v6, %v4384_v1  ;;  %v11131_v28 = vpack.c.bf16 %v3897_v23, %v3896_v21  ;;  %v10067_v0 = vld [vmem:[#allocation6 + $0x68] sm:$0xff]  }
 0x35c   : > { %v3870_v29 = vadd.f32 %v11103_v30, %v3831_v58  ;;  %v3832_v34 = vmul.f32 %v8987_v13, %v11098_v17  ;;  %v3626_v24 = vpop.f32.mrb[11].mxu0 }
 0x35d   : > { %v3868_v33 = vadd.f32 %v11103_v30, %v3829_v12  ;;  %v3830_v35 = vmul.f32 %v11098_v17, %v3626_v24  ;;  %9059 = vmatmul.mubr.bf16.vlgmr.msra.gmra.mrb[16].mxu1 %v11129_v18 }
 0x35e   : > { %v3902_v40 = vmax.f32 %v3870_v29, 0.0  ;;  %v3871_v48 = vadd.f32 %v11103_v30, %v3832_v34  ;;  %9091 = vmatpush3.bf16.msra.mxu1 %v11092_v16  ;;  %9062 = vmatprep.mubr.bf16.mxu1 %v11135_v25 }
 0x35f   : > { %v3900_v55 = vmax.f32 %v3868_v33, 0.0  ;;  %v3869_v56 = vadd.f32 %v11103_v30, %v3830_v35  ;;  %9092 = vmatprep.subr.bf16.mxu1 %v10063_v27  ;;  %v4390_v31 = vld [vmem:[#allocation3 + $0x60] sm:$0xff] }
 0x360   : > { %3989 = vst [vmem:[#allocation3 + $0x91] sm:$0xff] %v3902_v40  ;;  %v3903_v63 = vmax.f32 %v3871_v48, 0.0  ;;  %v4388_v43 = vld [vmem:[#allocation3 + $0x48] sm:$0xff] }
 0x361   : > { %3987 = vst [vmem:[#allocation3 + $0x79] sm:$0xff] %v3900_v55  ;;  %v3901_v8 = vmax.f32 %v3869_v56, 0.0  ;;  %v8990_v9 = vpop.f32.mrb[12].mxu0  ;;  %v4391_v26 = vld [vmem:[#allocation3 + $0x68] sm:$0xff] }
 0x362   : > { %3990 = vst [vmem:[#allocation3 + $0x99] sm:$0xff] %v3903_v63  ;;  %v3835_v38 = vmul.f32 %v8990_v9, %v11098_v17  ;;  %v3639_v39 = vpop.f32.mrb[13].mxu0  ;;  %v4389_v51 = vld [vmem:[#allocation3 + $0x50] sm:$0xff]  ;;  %9093 = vmatpush3.bf16.msra.mxu1 %v10063_v27  ;;  %v11145_v16 = vpack.c.bf16 %v3903_v63, %v3902_v40  ;;  %v11154_v11 = vpack.c.bf16 %v4391_v26, %v4390_v31  ;;  %v10068_v40 = vld [vmem:[#allocation6 + $0x70] sm:$0xff]  }
 0x363   : > { %3988 = vst [vmem:[#allocation3 + $0x81] sm:$0xff] %v3901_v8  ;;  %v3833_v2 = vmul.f32 %v11098_v17, %v3639_v39  ;;  %v8991_v15 = vpop.f32.mrb[14].mxu0  ;;  %v11148_v49 = vpack.c.bf16 %v4389_v51, %v4388_v43  ;;  %9094 = vmatprep.subr.bf16.mxu1 %v10064_v62  ;;  %v11150_v44 = vpack.c.bf16 %v3901_v8, %v3900_v55 }
 0x364   : > { %v3874_v45 = vadd.f32 %v11103_v30, %v3835_v38  ;;  %v3836_v57 = vmul.f32 %v8991_v15, %v11098_v17  ;;  %v3642_v59 = vpop.f32.mrb[15].mxu0  ;;  %v10069_v15 = vld [vmem:[#allocation6 + $0x78] sm:$0xff]  }
 0x365   : > { %v3872_v14 = vadd.f32 %v11103_v30, %v3833_v2  ;;  %v3834_v36 = vmul.f32 %v11098_v17, %v3642_v59  ;;  %9063 = vmatmul.mubr.bf16.gmra.mrb[20].mxu1 %v11148_v49 }
 0x366   : > { %v3906_v37 = vmax.f32 %v3874_v45, 0.0  ;;  %v3875_v46 = vadd.f32 %v11103_v30, %v3836_v57  ;;  %9066 = vmatprep.mubr.bf16.mxu1 %v11154_v11  ;;  %9095 = vmatpush3.bf16.msra.mxu1 %v10064_v62 }
 0x367   : > { %v3904_v52 = vmax.f32 %v3872_v14, 0.0  ;;  %v3873_v54 = vadd.f32 %v11103_v30, %v3834_v36  ;;  %9096 = vmatprep.subr.bf16.mxu1 %v10065_v32  ;;  %v4394_v58 = vld [vmem:[#allocation3 + $0x90] sm:$0xff] }
 0x368   : > { %3993 = vst [vmem:[#allocation3 + $0xc1] sm:$0xff] %v3906_v37  ;;  %v3907_v60 = vmax.f32 %v3875_v46, 0.0  ;;  %v4392_v21 = vld [vmem:[#allocation3 + $0x78] sm:$0xff] }
 0x369   : > { %3991 = vst [vmem:[#allocation3 + $0xa9] sm:$0xff] %v3904_v52  ;;  %v3905_v3 = vmax.f32 %v3873_v54, 0.0  ;;  %v8994_v47 = vpop.f32.mrb[16].mxu0  ;;  %v4395_v5 = vld [vmem:[#allocation3 + $0x98] sm:$0xff] }
 0x36a   : > { %3994 = vst [vmem:[#allocation3 + $0xc9] sm:$0xff] %v3907_v60  ;;  %v3839_v10 = vmul.f32 %v8994_v47, %v11098_v17  ;;  %v3655_v20 = vpop.f32.mrb[17].mxu0  ;;  %v4393_v61 = vld [vmem:[#allocation3 + $0x80] sm:$0xff]  ;;  %9097 = vmatpush3.bf16.msra.mxu1 %v10065_v32  ;;  %v11163_v22 = vpack.c.bf16 %v3907_v60, %v3906_v37  ;;  %v11172_v19 = vpack.c.bf16 %v4395_v5, %v4394_v58 }
 0x36b   : > { %3992 = vst [vmem:[#allocation3 + $0xb1] sm:$0xff] %v3905_v3  ;;  %v3837_v23 = vmul.f32 %v11098_v17, %v3655_v20  ;;  %v8995_v41 = vpop.f32.mrb[18].mxu0  ;;  %v11166_v42 = vpack.c.bf16 %v4393_v61, %v4392_v21  ;;  %9098 = vmatprep.subr.bf16.mxu1 %v10066_v53  ;;  %v11168_v1 = vpack.c.bf16 %v3905_v3, %v3904_v52 }
 0x36c   : > { %v3878_v6 = vadd.f32 %v11103_v30, %v3839_v10  ;;  %v3840_v12 = vmul.f32 %v8995_v41, %v11098_v17  ;;  %v3658_v13 = vpop.f32.mrb[19].mxu0 }
 0x36d   : > { %v3876_v27 = vadd.f32 %v11103_v30, %v3837_v23  ;;  %v3838_v29 = vmul.f32 %v11098_v17, %v3658_v13  ;;  %9067 = vmatmul.mubr.bf16.gmra.mrb[24].mxu1 %v11166_v42 }
 0x36e   : > { %v3910_v34 = vmax.f32 %v3878_v6, 0.0  ;;  %v3879_v24 = vadd.f32 %v11103_v30, %v3840_v12  ;;  %9070 = vmatprep.mubr.bf16.mxu1 %v11172_v19  ;;  %9099 = vmatpush3.bf16.msra.mxu1 %v10066_v53  ;;  %v11198_v53 = vld [vmem:[#allocation6 + $0x80] sm:$0xff]  }
 0x36f   : > { %v3908_v33 = vmax.f32 %v3876_v27, 0.0  ;;  %v3877_v35 = vadd.f32 %v11103_v30, %v3838_v29  ;;  %9100 = vmatprep.subr.bf16.mxu1 %v10067_v0  ;;  %v4398_v2 = vld [vmem:[#allocation3 + $0xc0] sm:$0xff] }
 0x370   : > { %3997 = vst [vmem:[#allocation3 + $0xf1] sm:$0xff] %v3910_v34  ;;  %v3911_v48 = vmax.f32 %v3879_v24, 0.0  ;;  %v4396_v9 = vld [vmem:[#allocation3 + $0xa8] sm:$0xff] }
 0x371   : > { %3995 = vst [vmem:[#allocation3 + $0xd9] sm:$0xff] %v3908_v33  ;;  %v3909_v55 = vmax.f32 %v3877_v35, 0.0  ;;  %v8998_v56 = vpop.f32.mrb[20].mxu0  ;;  %v4399_v62 = vld [vmem:[#allocation3 + $0xc8] sm:$0xff] }
 0x372   : > { %3998 = vst [vmem:[#allocation3 + $0xf9] sm:$0xff] %v3911_v48  ;;  %v3843_v63 = vmul.f32 %v8998_v56, %v11098_v17  ;;  %v3671_v8 = vpop.f32.mrb[21].mxu0  ;;  %v4397_v26 = vld [vmem:[#allocation3 + $0xb0] sm:$0xff]  ;;  %9101 = vmatpush3.bf16.msra.mxu1 %v10067_v0  ;;  %v11181_v38 = vpack.c.bf16 %v3911_v48, %v3910_v34  ;;  %v11190_v59 = vpack.c.bf16 %v4399_v62, %v4398_v2 }
 0x373   : > { %3996 = vst [vmem:[#allocation3 + $0xe1] sm:$0xff] %v3909_v55  ;;  %v3841_v39 = vmul.f32 %v11098_v17, %v3671_v8  ;;  %v8999_v43 = vpop.f32.mrb[22].mxu0  ;;  %v11184_v51 = vpack.c.bf16 %v4397_v26, %v4396_v9  ;;  %9102 = vmatprep.subr.bf16.mxu1 %v10068_v40  ;;  %v11186_v31 = vpack.c.bf16 %v3909_v55, %v3908_v33 }
 0x374   : > { %v3882_v32 = vadd.f32 %v11103_v30, %v3843_v63  ;;  %v3844_v45 = vmul.f32 %v8999_v43, %v11098_v17  ;;  %v3674_v57 = vpop.f32.mrb[23].mxu0 }
 0x375   : > { %v3880_v14 = vadd.f32 %v11103_v30, %v3841_v39  ;;  %v3842_v36 = vmul.f32 %v11098_v17, %v3674_v57  ;;  %9071 = vmatmul.mubr.bf16.gmra.mrb[28].mxu1 %v11184_v51 }
 0x376   : > { %v3914_v37 = vmax.f32 %v3882_v32, 0.0  ;;  %v3883_v46 = vadd.f32 %v11103_v30, %v3844_v45  ;;  %9074 = vmatprep.mubr.bf16.mxu1 %v11190_v59  ;;  %9103 = vmatpush3.bf16.msra.mxu1 %v10068_v40 }
 0x377   : > { %v3912_v52 = vmax.f32 %v3880_v14, 0.0  ;;  %v3881_v54 = vadd.f32 %v11103_v30, %v3842_v36  ;;  %9104 = vmatprep.subr.bf16.mxu1 %v10069_v15  ;;  %v4402_v6 = vld [vmem:[#allocation3 + $0xf0] sm:$0xff] }
 0x378   : > { %4001 = vst [vmem:[#allocation3 + $0x121] sm:$0xff] %v3914_v37  ;;  %v3915_v60 = vmax.f32 %v3883_v46, 0.0  ;;  %v4400_v21 = vld [vmem:[#allocation3 + $0xd8] sm:$0xff] }
 0x379   : > { %3999 = vst [vmem:[#allocation3 + $0x109] sm:$0xff] %v3912_v52  ;;  %v3913_v3 = vmax.f32 %v3881_v54, 0.0  ;;  %v9002_v47 = vpop.f32.mrb[24].mxu0  ;;  %v4403_v5 = vld [vmem:[#allocation3 + $0xf8] sm:$0xff] }
 0x37a   : > { %4002 = vst [vmem:[#allocation3 + $0x129] sm:$0xff] %v3915_v60  ;;  %v3847_v10 = vmul.f32 %v9002_v47, %v11098_v17  ;;  %v3687_v20 = vpop.f32.mrb[25].mxu0  ;;  %v4401_v61 = vld [vmem:[#allocation3 + $0xe0] sm:$0xff]  ;;  %9105 = vmatpush3.bf16.msra.mxu1 %v10069_v15  ;;  %v11201_v23 = vpack.c.bf16 %v3915_v60, %v3914_v37  ;;  %v11211_v34 = vpack.c.bf16 %v4403_v5, %v4402_v6  ;;  %v11240_v5 = vpop.f32.mrb[0].mxu1 }
 0x37b   : > { %4000 = vst [vmem:[#allocation3 + $0x111] sm:$0xff] %v3913_v3  ;;  %v3845_v41 = vmul.f32 %v11098_v17, %v3687_v20  ;;  %v9003_v58 = vpop.f32.mrb[26].mxu0  ;;  %v11204_v0 = vpack.c.bf16 %v4401_v61, %v4400_v21  ;;  %9138 = vmatprep.subr.bf16.mxu1 %v11198_v53  ;;  %v11207_v12 = vpack.c.bf16 %v3913_v3, %v3912_v52 }
 0x37c   : > { %v3886_v13 = vadd.f32 %v11103_v30, %v3847_v10  ;;  %v3848_v27 = vmul.f32 %v9003_v58, %v11098_v17  ;;  %v3690_v29 = vpop.f32.mrb[27].mxu0 }
 0x37d   : > { %v3884_v24 = vadd.f32 %v11103_v30, %v3845_v41  ;;  %v3846_v33 = vmul.f32 %v11098_v17, %v3690_v29  ;;  %9075 = vmatmul.mubr.bf16.gmra.mrb[32].mxu1 %v11204_v0 }
 0x37e   : > { %v3918_v35 = vmax.f32 %v3886_v13, 0.0  ;;  %v3887_v40 = vadd.f32 %v11103_v30, %v3848_v27  ;;  %9078 = vmatprep.mubr.bf16.mxu1 %v11211_v34 }
 0x37f   : > { %v3916_v48 = vmax.f32 %v3884_v24, 0.0  ;;  %v3885_v55 = vadd.f32 %v11103_v30, %v3846_v33  ;;  %v4406_v57 = vld [vmem:[#allocation3 + $0x120] sm:$0xff] }
 0x380   : > { %4005 = vst [vmem:[#allocation3 + $0x151] sm:$0xff] %v3918_v35  ;;  %v3919_v56 = vmax.f32 %v3887_v40, 0.0  ;;  %v4404_v39 = vld [vmem:[#allocation3 + $0x108] sm:$0xff] }
 0x381   : > { %4003 = vst [vmem:[#allocation3 + $0x139] sm:$0xff] %v3916_v48  ;;  %v11219_v62 = vmax.f32 %v3885_v55, 0.0  ;;  %v9006_v63 = vpop.f32.mrb[28].mxu0  ;;  %v4407_v8 = vld [vmem:[#allocation3 + $0x128] sm:$0xff] }
 0x382   : > { %4006 = vst [vmem:[#allocation3 + $0x159] sm:$0xff] %v3919_v56  ;;  %v3851_v9 = vmul.f32 %v9006_v63, %v11098_v17  ;;  %v3703_v26 = vpop.f32.mrb[29].mxu0  ;;  %v4405_v43 = vld [vmem:[#allocation3 + $0x110] sm:$0xff]  ;;  %v11222_v2 = vpack.c.bf16 %v3919_v56, %v3918_v35  ;;  %v11233_v52 = vpack.c.bf16 %v4407_v8, %v4406_v57  ;;  %v4751_v35 = vld [vmem:[#allocation3 + $0x1] sm:$0xff] }
 0x383   : > { %4004 = vst [vmem:[#allocation3 + $0x141] sm:$0xff] %v11219_v62  ;;  %v3849_v15 = vmul.f32 %v11098_v17, %v3703_v26  ;;  %v9007_v32 = vpop.f32.mrb[30].mxu0  ;;  %v11226_v45 = vpack.c.bf16 %v4405_v43, %v4404_v39  ;;  %v11229_v14 = vpack.c.bf16 %v11219_v62, %v3916_v48  ;;  %v4752_v40 = vld [vmem:[#allocation3 + $0x9] sm:$0xff] }
 0x384   : > { %v3890_v36 = vadd.f32 %v11103_v30, %v3851_v9  ;;  %v3852_v37 = vmul.f32 %v9007_v32, %v11098_v17  ;;  %v3706_v46 = vpop.f32.mrb[31].mxu0  ;;  %v4815_v8 = vpack.c.bf16 %v4752_v40, %v4751_v35  ;;  %v10082_v40 = vld [vmem:[#allocation6 + $0xe0] sm:$0xff]  }
 0x385   : > { %v3888_v54 = vadd.f32 %v11103_v30, %v3849_v15  ;;  %v3850_v60 = vmul.f32 %v11098_v17, %v3706_v46  ;;  %9079 = vmatmul.mubr.bf16.gmra.mrb[36].mxu1 %v11226_v45  ;;  %v10071_v15 = vld [vmem:[#allocation6 + $0x88] sm:$0xff]  }
 0x386   : > { %v3922_v3 = vmax.f32 %v3890_v36, 0.0  ;;  %v3891_v47 = vadd.f32 %v11103_v30, %v3852_v37  ;;  %9082 = vmatprep.mubr.bf16.mxu1 %v11233_v52  ;;  %v10072_v36 = vld [vmem:[#allocation6 + $0x90] sm:$0xff]  }
 0x387   : > { %v3920_v10 = vmax.f32 %v3888_v54, 0.0  ;;  %v3889_v20 = vadd.f32 %v11103_v30, %v3850_v60  ;;  %v4410_v27 = vld [vmem:[#allocation3 + $0x150] sm:$0xff]  ;;  %v11252_v30 = vpop.f32.mrb[1].mxu1  ;;  %v10073_v54 = vld [vmem:[#allocation6 + $0x98] sm:$0xff]  }
 0x388   : > { %4009 = vst [vmem:[#allocation3 + $0x181] sm:$0xff] %v3922_v3  ;;  %v3923_v21 = vmax.f32 %v3891_v47, 0.0  ;;  %v4408_v58 = vld [vmem:[#allocation3 + $0x138] sm:$0xff]  ;;  %v11255_v33 = vpop.f32.mrb[2].mxu1 }
 0x389   : > { %4007 = vst [vmem:[#allocation3 + $0x169] sm:$0xff] %v3920_v10  ;;  %v3921_v61 = vmax.f32 %v3889_v20, 0.0  ;;  %v4411_v41 = vld [vmem:[#allocation3 + $0x158] sm:$0xff]  ;;  %v11257_v48 = vpop.f32.mrb[3].mxu1  ;;  %v5124_v20 = vld [vmem:[#allocation3 + $0x22] sm:$0xff] }
 0x38a   : > { %4010 = vst [vmem:[#allocation3 + $0x189] sm:$0xff] %v3923_v21  ;;  %v4409_v17 = vld [vmem:[#allocation3 + $0x140] sm:$0xff]  ;;  %v11243_v6 = vpack.c.bf16 %v3923_v21, %v3922_v3  ;;  %v11249_v24 = vpack.c.bf16 %v4411_v41, %v4410_v27  ;;  %v11259_v55 = vpop.f32.mrb[4].mxu1  ;;  %v10075_v47 = vld [vmem:[#allocation6 + $0xa8] sm:$0xff]   ;;  %v10081_v27 = vld [vmem:[#allocation6 + $0xd8] sm:$0xff]  }
 0x38b   : > { %4008 = vst [vmem:[#allocation3 + $0x171] sm:$0xff] %v3921_v61  ;;  %v11245_v13 = vpack.c.bf16 %v4409_v17, %v4408_v58  ;;  %v11247_v29 = vpack.c.bf16 %v3921_v61, %v3920_v10  ;;  %v11264_v26 = vpop.f32.mrb[5].mxu1  ;;  %v10078_v10 = vld [vmem:[#allocation6 + $0xc0] sm:$0xff]   ;;  %v5129_v41 = vld [vmem:[#allocation3 + $0x62] sm:$0xff] }
 0x38c   : > { %v11266_v39 = vpop.f32.mrb[6].mxu1  ;;  %v5125_v21 = vld [vmem:[#allocation3 + $0x32] sm:$0xff]  ;;  %v5130_v58 = vld [vmem:[#allocation3 + $0x6a] sm:$0xff] }
 0x38d   : > { %9083 = vmatmul.mubr.bf16.gmra.mrb[40].mxu1 %v11245_v13  ;;  %v11268_v43 = vpop.f32.mrb[7].mxu1  ;;  %v11310_v35 = vpack.c.bf16 %v5130_v58, %v5129_v41  ;;  %v5143_v41 = vld [vmem:[#allocation3 + $0x10a] sm:$0xff]  ;;  %v5144_v58 = vld [vmem:[#allocation3 + $0x112] sm:$0xff] }
 0x38e   : > { %9086 = vmatprep.mubr.bf16.mxu1 %v11249_v24  ;;  %v11271_v32 = vpop.f32.mrb[8].mxu1 }
 0x38f   : > { %v11275_v57 = vpop.f32.mrb[9].mxu1 }
 0x390   : > { %v4412_v56 = vld [vmem:[#allocation3 + $0x168] sm:$0xff]  ;;  %v11277_v37 = vpop.f32.mrb[10].mxu1 }
 0x391   : > { %v11279_v46 = vpop.f32.mrb[11].mxu1 }
 0x392   : > { %v4413_v63 = vld [vmem:[#allocation3 + $0x170] sm:$0xff] }
 0x393   : > { %v11261_v9 = vpack.c.bf16 %v4413_v63, %v4412_v56  ;;  %v5131_v56 = vld [vmem:[#allocation3 + $0x7a] sm:$0xff]  ;;  %v5132_v63 = vld [vmem:[#allocation3 + $0x82] sm:$0xff] }
 0x395   : > { %9087 = vmatmul.mubr.bf16.gmra.mrb[44].mxu1 %v11261_v9 }
 0x396   : > { %9106 = vmatprep.mubr.bf16.mxu1 %v4815_v8  ;;  %v5133_v8 = vld [vmem:[#allocation3 + $0x92] sm:$0xff] }
 0x39d   : > { %9107 = vmatmul.mubr.bf16.vlgmr.msra.gmra.mrb[16].mxu1 %v11117_v4  ;;  %v11283_v4 = vpop.f32.mrb[12].mxu1 }
 0x39e   : > { %9139 = vmatpush3.bf16.msra.mxu1 %v11198_v53  ;;  %9110 = vmatprep.mubr.bf16.mxu1 %v11114_v50  ;;  %v10074_v50 = vld [vmem:[#allocation6 + $0xa0] sm:$0xff]   ;;  %v11285_v53 = vpop.f32.mrb[13].mxu1 }
 0x39f   : > { %9140 = vmatprep.subr.bf16.mxu1 %v10071_v15  ;;  %v11287_v60 = vpop.f32.mrb[14].mxu1 }
 0x3a0   : > { %v11289_v3 = vpop.f32.mrb[15].mxu1 }
 0x3a2   : > { %9141 = vmatpush3.bf16.msra.mxu1 %v10071_v15  ;;  %v5134_v15 = vld [vmem:[#allocation3 + $0x9a] sm:$0xff] }
 0x3a3   : > { %9142 = vmatprep.subr.bf16.mxu1 %v10072_v36 }
 0x3a5   : > { %9111 = vmatmul.mubr.bf16.gmra.mrb[20].mxu1 %v11131_v28  ;;  %v10077_v28 = vld [vmem:[#allocation6 + $0xb8] sm:$0xff]  }
 0x3a6   : > { %9114 = vmatprep.mubr.bf16.mxu1 %v11126_v7  ;;  %9143 = vmatpush3.bf16.msra.mxu1 %v10072_v36  ;;  %v10076_v7 = vld [vmem:[#allocation6 + $0xb0] sm:$0xff]   ;;  %v11314_v36 = vpack.c.bf16 %v5132_v63, %v5131_v56  ;;  %v11332_v56 = vpack.c.bf16 %v5144_v58, %v5143_v41  ;;  %v5863_v41 = vld [vmem:[#allocation3 + $0x31] sm:$0xff] }
 0x3a7   : > { %9144 = vmatprep.subr.bf16.mxu1 %v10073_v54  ;;  %v10095_v58 = vld [vmem:[#allocation6 + $0x148] sm:$0xff]  }
 0x3aa   : > { %9145 = vmatpush3.bf16.msra.mxu1 %v10073_v54  ;;  %v10083_v54 = vld [vmem:[#allocation6 + $0xe8] sm:$0xff]  }
 0x3ab   : > { %9146 = vmatprep.subr.bf16.mxu1 %v10074_v50 }
 0x3ad   : > { %9115 = vmatmul.mubr.bf16.gmra.mrb[24].mxu1 %v11150_v44  ;;  %v5122_v44 = vld [vmem:[#allocation3 + $0xa] sm:$0xff] }
 0x3ae   : > { %9118 = vmatprep.mubr.bf16.mxu1 %v11145_v16  ;;  %9147 = vmatpush3.bf16.msra.mxu1 %v10074_v50  ;;  %v5121_v16 = vld [vmem:[#allocation3 + $0x2] sm:$0xff]  ;;  %v11316_v50 = vpack.c.bf16 %v5134_v15, %v5133_v8  ;;  %v5147_v8 = vld [vmem:[#allocation3 + $0x13a] sm:$0xff] }
 0x3af   : > { %9148 = vmatprep.subr.bf16.mxu1 %v10075_v47  ;;  %v5148_v15 = vld [vmem:[#allocation3 + $0x142] sm:$0xff] }
 0x3b2   : > { %9149 = vmatpush3.bf16.msra.mxu1 %v10075_v47  ;;  %v10084_v47 = vld [vmem:[#allocation6 + $0xf0] sm:$0xff]  }
 0x3b3   : > { %9150 = vmatprep.subr.bf16.mxu1 %v10076_v7 }
 0x3b5   : > { %9119 = vmatmul.mubr.bf16.gmra.mrb[28].mxu1 %v11168_v1  ;;  %v5123_v1 = vld [vmem:[#allocation3 + $0x1a] sm:$0xff] }
 0x3b6   : > { %9122 = vmatprep.mubr.bf16.mxu1 %v11163_v22  ;;  %9151 = vmatpush3.bf16.msra.mxu1 %v10076_v7  ;;  %v5185_v22 = vpack.c.bf16 %v5122_v44, %v5121_v16  ;;  %v11302_v61 = vpack.c.bf16 %v5124_v20, %v5123_v1  ;;  %v5135_v7 = vld [vmem:[#allocation3 + $0xaa] sm:$0xff] }
 0x3b7   : > { %9152 = vmatprep.subr.bf16.mxu1 %v10077_v28  ;;  %v5138_v16 = vld [vmem:[#allocation3 + $0xca] sm:$0xff] }
 0x3b8   : > { %v10086_v20 = vld [vmem:[#allocation6 + $0x100] sm:$0xff]  }
 0x3ba   : > { %9153 = vmatpush3.bf16.msra.mxu1 %v10077_v28  ;;  %v5136_v28 = vld [vmem:[#allocation3 + $0xb2] sm:$0xff] }
 0x3bb   : > { %9186 = vmatprep.subr.bf16.mxu1 %v10078_v10  ;;  %v11320_v44 = vpack.c.bf16 %v5136_v28, %v5135_v7  ;;  %v11338_v7 = vpack.c.bf16 %v5148_v15, %v5147_v8  ;;  %v5867_v8 = vld [vmem:[#allocation3 + $0x61] sm:$0xff] }
 0x3bd   : > { %9123 = vmatmul.mubr.bf16.gmra.mrb[32].mxu1 %v11186_v31  ;;  %v5126_v31 = vld [vmem:[#allocation3 + $0x3a] sm:$0xff] }
 0x3be   : > { %9126 = vmatprep.mubr.bf16.mxu1 %v11181_v38  ;;  %v10079_v38 = vld [vmem:[#allocation6 + $0xc8] sm:$0xff]  }
 0x3c5   : > { %9127 = vmatmul.mubr.bf16.gmra.mrb[36].mxu1 %v11207_v12  ;;  %v11304_v12 = vpack.c.bf16 %v5126_v31, %v5125_v21  ;;  %v5139_v21 = vld [vmem:[#allocation3 + $0xda] sm:$0xff]  ;;  %v5140_v31 = vld [vmem:[#allocation3 + $0xe2] sm:$0xff] }
 0x3c6   : > { %9130 = vmatprep.mubr.bf16.mxu1 %v11201_v23  ;;  %v10080_v23 = vld [vmem:[#allocation6 + $0xd0] sm:$0xff]  }
 0x3cd   : > { %9131 = vmatmul.mubr.bf16.gmra.mrb[40].mxu1 %v11229_v14  ;;  %v5128_v14 = vld [vmem:[#allocation3 + $0x52] sm:$0xff] }
 0x3ce   : > { %9134 = vmatprep.mubr.bf16.mxu1 %v11222_v2  ;;  %v5127_v2 = vld [vmem:[#allocation3 + $0x4a] sm:$0xff] }
 0x3cf   : > { %v11308_v17 = vpack.c.bf16 %v5128_v14, %v5127_v2  ;;  %v11326_v2 = vpack.c.bf16 %v5140_v31, %v5139_v21  ;;  %v10087_v21 = vld [vmem:[#allocation6 + $0x108] sm:$0xff]   ;;  %v10088_v31 = vld [vmem:[#allocation6 + $0x110] sm:$0xff]  }
 0x3d5   : > { %9135 = vmatmul.mubr.bf16.gmra.mrb[44].mxu1 %v11247_v29 }
 0x3d6   : > { %9154 = vmatprep.mubr.bf16.mxu1 %v5185_v22  ;;  %v10085_v22 = vld [vmem:[#allocation6 + $0xf8] sm:$0xff]  }
 0x3dd   : > { %9155 = vmatmul.mubr.bf16.vlgmr.msra.gmra.mrb[16].mxu1 %v11302_v61 }
 0x3de   : > { %9187 = vmatpush3.bf16.msra.mxu1 %v10078_v10  ;;  %9158 = vmatprep.mubr.bf16.mxu1 %v11304_v12  ;;  %v5137_v10 = vld [vmem:[#allocation3 + $0xc2] sm:$0xff] }
 0x3df   : > { %9188 = vmatprep.subr.bf16.mxu1 %v10079_v38  ;;  %v11322_v1 = vpack.c.bf16 %v5138_v16, %v5137_v10  ;;  %v5151_v10 = vld [vmem:[#allocation3 + $0x16a] sm:$0xff]  ;;  %v5152_v16 = vld [vmem:[#allocation3 + $0x172] sm:$0xff] }
 0x3e2   : > { %9189 = vmatpush3.bf16.msra.mxu1 %v10079_v38  ;;  %v5141_v38 = vld [vmem:[#allocation3 + $0xf2] sm:$0xff] }
 0x3e3   : > { %9190 = vmatprep.subr.bf16.mxu1 %v10080_v23 }
 0x3e5   : > { %9159 = vmatmul.mubr.bf16.gmra.mrb[20].mxu1 %v11308_v17 }
 0x3e6   : > { %9162 = vmatprep.mubr.bf16.mxu1 %v11310_v35  ;;  %9191 = vmatpush3.bf16.msra.mxu1 %v10080_v23  ;;  %v5142_v23 = vld [vmem:[#allocation3 + $0xfa] sm:$0xff] }
 0x3e7   : > { %9192 = vmatprep.subr.bf16.mxu1 %v10081_v27  ;;  %v11328_v14 = vpack.c.bf16 %v5142_v23, %v5141_v38  ;;  %v10089_v38 = vld [vmem:[#allocation6 + $0x118] sm:$0xff]   ;;  %v10090_v23 = vld [vmem:[#allocation6 + $0x120] sm:$0xff]  }
 0x3ea   : > { %9193 = vmatpush3.bf16.msra.mxu1 %v10081_v27  ;;  %v5145_v27 = vld [vmem:[#allocation3 + $0x122] sm:$0xff] }
 0x3eb   : > { %9194 = vmatprep.subr.bf16.mxu1 %v10082_v40 }
 0x3ed   : > { %9163 = vmatmul.mubr.bf16.gmra.mrb[24].mxu1 %v11314_v36 }
 0x3ee   : > { %9166 = vmatprep.mubr.bf16.mxu1 %v11316_v50  ;;  %9195 = vmatpush3.bf16.msra.mxu1 %v10082_v40  ;;  %v5146_v40 = vld [vmem:[#allocation3 + $0x12a] sm:$0xff] }
 0x3ef   : > { %9196 = vmatprep.subr.bf16.mxu1 %v10083_v54  ;;  %v11334_v63 = vpack.c.bf16 %v5146_v40, %v5145_v27  ;;  %v5868_v27 = vld [vmem:[#allocation3 + $0x69] sm:$0xff]  ;;  %v5870_v40 = vld [vmem:[#allocation3 + $0x81] sm:$0xff] }
 0x3f0   : > { %v11371_v15 = vpack.c.bf16 %v5868_v27, %v5867_v8 }
 0x3f2   : > { %9197 = vmatpush3.bf16.msra.mxu1 %v10083_v54  ;;  %v5149_v54 = vld [vmem:[#allocation3 + $0x152] sm:$0xff] }
 0x3f3   : > { %9198 = vmatprep.subr.bf16.mxu1 %v10084_v47 }
 0x3f5   : > { %9167 = vmatmul.mubr.bf16.gmra.mrb[28].mxu1 %v11320_v44 }
 0x3f6   : > { %9170 = vmatprep.mubr.bf16.mxu1 %v11322_v1  ;;  %9199 = vmatpush3.bf16.msra.mxu1 %v10084_v47  ;;  %v5150_v47 = vld [vmem:[#allocation3 + $0x15a] sm:$0xff] }
 0x3f7   : > { %9200 = vmatprep.subr.bf16.mxu1 %v10085_v22  ;;  %v11340_v28 = vpack.c.bf16 %v5150_v47, %v5149_v54  ;;  %v5869_v54 = vld [vmem:[#allocation3 + $0x79] sm:$0xff]  ;;  %v10097_v47 = vld [vmem:[#allocation6 + $0x158] sm:$0xff]  }
 0x3fa   : > { %9201 = vmatpush3.bf16.msra.mxu1 %v10085_v22  ;;  %v11344_v22 = vpack.c.bf16 %v5152_v16, %v5151_v10  ;;  %v11373_v10 = vpack.c.bf16 %v5870_v40, %v5869_v54  ;;  %v10098_v16 = vld [vmem:[#allocation6 + $0x160] sm:$0xff]  }
 0x3fb   : > { %9234 = vmatprep.subr.bf16.mxu1 %v10086_v20  ;;  %v5881_v40 = vld [vmem:[#allocation3 + $0x109] sm:$0xff] }
 0x3fc   : > { %v5884_v54 = vld [vmem:[#allocation3 + $0x129] sm:$0xff] }
 0x3fd   : > { %9171 = vmatmul.mubr.bf16.gmra.mrb[32].mxu1 %v11326_v2 }
 0x3fe   : > { %9174 = vmatprep.mubr.bf16.mxu1 %v11328_v14 }
 0x405   : > { %9175 = vmatmul.mubr.bf16.gmra.mrb[36].mxu1 %v11332_v56 }
 0x406   : > { %9178 = vmatprep.mubr.bf16.mxu1 %v11334_v63 }
 0x40d   : > { %9179 = vmatmul.mubr.bf16.gmra.mrb[40].mxu1 %v11338_v7 }
 0x40e   : > { %9182 = vmatprep.mubr.bf16.mxu1 %v11340_v28 }
 0x415   : > { %9183 = vmatmul.mubr.bf16.gmra.mrb[44].mxu1 %v11344_v22 }
 0x416   : > { %9202 = vmatprep.mubr.bf16.mxu1 %v11129_v18  ;;  %v10091_v18 = vld [vmem:[#allocation6 + $0x128] sm:$0xff]  }
 0x41d   : > { %9203 = vmatmul.mubr.bf16.vlgmr.msra.gmra.mrb[16].mxu1 %v11135_v25  ;;  %v10092_v25 = vld [vmem:[#allocation6 + $0x130] sm:$0xff]  }
 0x41e   : > { %9235 = vmatpush3.bf16.msra.mxu1 %v10086_v20  ;;  %9206 = vmatprep.mubr.bf16.mxu1 %v11148_v49  ;;  %v10093_v49 = vld [vmem:[#allocation6 + $0x138] sm:$0xff]  }
 0x41f   : > { %9236 = vmatprep.subr.bf16.mxu1 %v10087_v21 }
 0x422   : > { %9237 = vmatpush3.bf16.msra.mxu1 %v10087_v21  ;;  %v5872_v21 = vld [vmem:[#allocation3 + $0x99] sm:$0xff] }
 0x423   : > { %9238 = vmatprep.subr.bf16.mxu1 %v10088_v31 }
 0x425   : > { %9207 = vmatmul.mubr.bf16.gmra.mrb[20].mxu1 %v11154_v11  ;;  %v10094_v11 = vld [vmem:[#allocation6 + $0x140] sm:$0xff]  }
 0x426   : > { %9210 = vmatprep.mubr.bf16.mxu1 %v11166_v42  ;;  %9239 = vmatpush3.bf16.msra.mxu1 %v10088_v31  ;;  %v5522_v42 = vld [vmem:[#allocation3 + $0x188] sm:$0xff]  ;;  %v5874_v31 = vld [vmem:[#allocation3 + $0xb1] sm:$0xff] }
 0x427   : > { %9240 = vmatprep.subr.bf16.mxu1 %v10089_v38 }
 0x42a   : > { %9241 = vmatpush3.bf16.msra.mxu1 %v10089_v38  ;;  %v5871_v38 = vld [vmem:[#allocation3 + $0x91] sm:$0xff] }
 0x42b   : > { %9242 = vmatprep.subr.bf16.mxu1 %v10090_v23 }
 0x42d   : > { %9211 = vmatmul.mubr.bf16.gmra.mrb[24].mxu1 %v11172_v19  ;;  %v5862_v19 = vld [vmem:[#allocation3 + $0x21] sm:$0xff] }
 0x42e   : > { %9214 = vmatprep.mubr.bf16.mxu1 %v11184_v51  ;;  %9243 = vmatpush3.bf16.msra.mxu1 %v10090_v23  ;;  %v5521_v51 = vld [vmem:[#allocation3 + $0x180] sm:$0xff]  ;;  %v11377_v23 = vpack.c.bf16 %v5872_v21, %v5871_v38 }
 0x42f   : > { %9244 = vmatprep.subr.bf16.mxu1 %v10091_v18  ;;  %v5888_v38 = vld [vmem:[#allocation3 + $0x159] sm:$0xff] }
 0x432   : > { %9245 = vmatpush3.bf16.msra.mxu1 %v10091_v18  ;;  %v5873_v18 = vld [vmem:[#allocation3 + $0xa9] sm:$0xff] }
 0x433   : > { %9246 = vmatprep.subr.bf16.mxu1 %v10092_v25 }
 0x435   : > { %9215 = vmatmul.mubr.bf16.gmra.mrb[28].mxu1 %v11190_v59  ;;  %v11362_v59 = vpack.c.bf16 %v5522_v42, %v5521_v51  ;;  %v5876_v42 = vld [vmem:[#allocation3 + $0xc9] sm:$0xff]  ;;  %v5875_v51 = vld [vmem:[#allocation3 + $0xc1] sm:$0xff] }
 0x436   : > { %9218 = vmatprep.mubr.bf16.mxu1 %v11204_v0  ;;  %9247 = vmatpush3.bf16.msra.mxu1 %v10092_v25  ;;  %v5861_v0 = vld [vmem:[#allocation3 + $0x19] sm:$0xff] }
 0x437   : > { %9248 = vmatprep.subr.bf16.mxu1 %v10093_v49  ;;  %v5925_v20 = vpack.c.bf16 %v5862_v19, %v5861_v0  ;;  %v10099_v25 = vld [vmem:[#allocation6 + $0x168] sm:$0xff]   ;;  %v5878_v19 = vld [vmem:[#allocation3 + $0xe1] sm:$0xff]  ;;  %v11383_v0 = vpack.c.bf16 %v5876_v42, %v5875_v51 }
 0x438   : > { %v10105_v42 = vld [vmem:[#allocation6 + $0x198] sm:$0xff]   ;;  %v10111_v51 = vld [vmem:[#allocation6 + $0x1c8] sm:$0xff]  }
 0x43a   : > { %9249 = vmatpush3.bf16.msra.mxu1 %v10093_v49  ;;  %v11379_v49 = vpack.c.bf16 %v5874_v31, %v5873_v18  ;;  %v5887_v18 = vld [vmem:[#allocation3 + $0x151] sm:$0xff] }
 0x43b   : > { %9282 = vmatprep.subr.bf16.mxu1 %v10094_v11 }
 0x43d   : > { %9219 = vmatmul.mubr.bf16.gmra.mrb[32].mxu1 %v11211_v34  ;;  %v5864_v34 = vld [vmem:[#allocation3 + $0x39] sm:$0xff] }
 0x43e   : > { %9222 = vmatprep.mubr.bf16.mxu1 %v11226_v45  ;;  %v5866_v45 = vld [vmem:[#allocation3 + $0x51] sm:$0xff] }
 0x445   : > { %9223 = vmatmul.mubr.bf16.gmra.mrb[36].mxu1 %v11233_v52  ;;  %v11365_v52 = vpack.c.bf16 %v5864_v34, %v5863_v41  ;;  %v10101_v34 = vld [vmem:[#allocation6 + $0x178] sm:$0xff]   ;;  %v10102_v41 = vld [vmem:[#allocation6 + $0x180] sm:$0xff]  }
 0x446   : > { %9226 = vmatprep.mubr.bf16.mxu1 %v11245_v13  ;;  %v5865_v13 = vld [vmem:[#allocation3 + $0x49] sm:$0xff] }
 0x44d   : > { %9227 = vmatmul.mubr.bf16.gmra.mrb[40].mxu1 %v11249_v24  ;;  %v11367_v24 = vpack.c.bf16 %v5866_v45, %v5865_v13  ;;  %v5880_v13 = vld [vmem:[#allocation3 + $0xf9] sm:$0xff] }
 0x44e   : > { %9230 = vmatprep.mubr.bf16.mxu1 %v11261_v9  ;;  %v10096_v9 = vld [vmem:[#allocation6 + $0x150] sm:$0xff]  }
 0x455   : > { %9231 = vmatmul.mubr.bf16.gmra.mrb[44].mxu1 %v11362_v59 }
 0x456   : > { %9250 = vmatprep.mubr.bf16.mxu1 %v5925_v20  ;;  %v5877_v20 = vld [vmem:[#allocation3 + $0xd9] sm:$0xff] }
 0x457   : > { %v11385_v45 = vpack.c.bf16 %v5878_v19, %v5877_v20  ;;  %v6606_v19 = vld [vmem:[#allocation3 + $0x60] sm:$0xff] }
 0x45d   : > { %9251 = vmatmul.mubr.bf16.vlgmr.msra.gmra.mrb[16].mxu1 %v11365_v52 }
 0x45e   : > { %9283 = vmatpush3.bf16.msra.mxu1 %v10094_v11  ;;  %9254 = vmatprep.mubr.bf16.mxu1 %v11367_v24  ;;  %v10100_v11 = vld [vmem:[#allocation6 + $0x170] sm:$0xff]  }
 0x45f   : > { %9284 = vmatprep.subr.bf16.mxu1 %v10095_v58 }
 0x462   : > { %9285 = vmatpush3.bf16.msra.mxu1 %v10095_v58  ;;  %v5882_v58 = vld [vmem:[#allocation3 + $0x111] sm:$0xff] }
 0x463   : > { %9286 = vmatprep.subr.bf16.mxu1 %v10096_v9  ;;  %v11391_v8 = vpack.c.bf16 %v5882_v58, %v5881_v40  ;;  %v6609_v58 = vld [vmem:[#allocation3 + $0x80] sm:$0xff]  ;;  %v6608_v40 = vld [vmem:[#allocation3 + $0x78] sm:$0xff] }
 0x465   : > { %9255 = vmatmul.mubr.bf16.gmra.mrb[20].mxu1 %v11371_v15 }
 0x466   : > { %9258 = vmatprep.mubr.bf16.mxu1 %v11373_v10  ;;  %9287 = vmatpush3.bf16.msra.mxu1 %v10096_v9  ;;  %v5879_v9 = vld [vmem:[#allocation3 + $0xf1] sm:$0xff] }
 0x467   : > { %9288 = vmatprep.subr.bf16.mxu1 %v10097_v47  ;;  %v11389_v27 = vpack.c.bf16 %v5880_v13, %v5879_v9  ;;  %v10112_v13 = vld [vmem:[#allocation6 + $0x1d0] sm:$0xff]   ;;  %v6611_v9 = vld [vmem:[#allocation3 + $0x98] sm:$0xff] }
 0x46a   : > { %9289 = vmatpush3.bf16.msra.mxu1 %v10097_v47  ;;  %v11395_v47 = vld [vmem:[#allocation3 + $0x139] sm:$0xff] }
 0x46b   : > { %9290 = vmatprep.subr.bf16.mxu1 %v10098_v16  ;;  %v5937_v31 = vpack.c.bf16 %v11219_v62, %v11395_v47  ;;  %v10104_v62 = vld [vmem:[#allocation6 + $0x190] sm:$0xff]  }
 0x46d   : > { %9259 = vmatmul.mubr.bf16.gmra.mrb[24].mxu1 %v11377_v23 }
 0x46e   : > { %9262 = vmatprep.mubr.bf16.mxu1 %v11379_v49  ;;  %9291 = vmatpush3.bf16.msra.mxu1 %v10098_v16  ;;  %v5883_v16 = vld [vmem:[#allocation3 + $0x121] sm:$0xff] }
 0x46f   : > { %9292 = vmatprep.subr.bf16.mxu1 %v10099_v25  ;;  %v11397_v21 = vpack.c.bf16 %v5884_v54, %v5883_v16  ;;  %v6669_v54 = vpack.c.bf16 %v6609_v58, %v6608_v40  ;;  %v6610_v16 = vld [vmem:[#allocation3 + $0x90] sm:$0xff]  ;;  %v6627_v40 = vld [vmem:[#allocation3 + $0x158] sm:$0xff] }
 0x472   : > { %9293 = vmatpush3.bf16.msra.mxu1 %v10099_v25  ;;  %v11402_v25 = vpack.c.bf16 %v5888_v38, %v5887_v18  ;;  %v6670_v38 = vpack.c.bf16 %v6611_v9, %v6610_v16  ;;  %v10150_v18 = vld [vmem:[%s10565_s20 + $0x20] sm:$0xff]   ;;  %v6625_v9 = vld [vmem:[#allocation3 + $0x140] sm:$0xff] }
 0x473   : > { %9294 = vmatprep.subr.bf16.mxu1 %v10100_v11 }
 0x475   : > { %9263 = vmatmul.mubr.bf16.gmra.mrb[28].mxu1 %v11383_v0 }
 0x476   : > { %9266 = vmatprep.mubr.bf16.mxu1 %v11385_v45  ;;  %9295 = vmatpush3.bf16.msra.mxu1 %v10100_v11  ;;  %v10103_v11 = vld [vmem:[#allocation6 + $0x188] sm:$0xff]  }
 0x477   : > { %9296 = vmatprep.subr.bf16.mxu1 %v10101_v34 }
 0x47a   : > { %9297 = vmatpush3.bf16.msra.mxu1 %v10101_v34  ;;  %v10148_v34 = vld [vmem:[%s10565_s20 + $0x10] sm:$0xff]  }
 0x47b   : > { %9330 = vmatprep.subr.bf16.mxu1 %v10102_v41 }
 0x47d   : > { %9267 = vmatmul.mubr.bf16.gmra.mrb[32].mxu1 %v11389_v27 }
 0x47e   : > { %9270 = vmatprep.mubr.bf16.mxu1 %v11391_v8 }
 0x485   : > { %9271 = vmatmul.mubr.bf16.gmra.mrb[36].mxu1 %v11397_v21 }
 0x486   : > { %9274 = vmatprep.mubr.bf16.mxu1 %v5937_v31  ;;  %v10113_v31 = vld [vmem:[#allocation6 + $0x1d8] sm:$0xff]  }
 0x48d   : > { %9275 = vmatmul.mubr.bf16.gmra.mrb[40].mxu1 %v11402_v25 }
 0x48e   : > { %9278 = vmatprep.mubr.bf16.mxu1 %v11247_v29  ;;  %v10107_v29 = vld [vmem:[#allocation6 + $0x1a8] sm:$0xff]  }
 0x495   : > { %9279 = vmatmul.mubr.bf16.gmra.mrb[44].mxu1 %v11243_v6  ;;  %v10106_v6 = vld [vmem:[#allocation6 + $0x1a0] sm:$0xff]  }
 0x496   : > { %9298 = vmatprep.mubr.bf16.mxu1 %v11302_v61  ;;  %v10108_v61 = vld [vmem:[#allocation6 + $0x1b0] sm:$0xff]  }
 0x49d   : > { %9299 = vmatmul.mubr.bf16.vlgmr.msra.gmra.mrb[16].mxu1 %v11304_v12  ;;  %v10109_v12 = vld [vmem:[#allocation6 + $0x1b8] sm:$0xff]  }
 0x49e   : > { %9331 = vmatpush3.bf16.msra.mxu1 %v10102_v41  ;;  %9302 = vmatprep.mubr.bf16.mxu1 %v11308_v17  ;;  %v10110_v17 = vld [vmem:[#allocation6 + $0x1c0] sm:$0xff]   ;;  %v10149_v41 = vld [vmem:[%s10565_s20 + $0x18] sm:$0xff]  }
 0x49f   : > { %9332 = vmatprep.subr.bf16.mxu1 %v10103_v11 }
 0x4a2   : > { %9333 = vmatpush3.bf16.msra.mxu1 %v10103_v11  ;;  %v10151_v11 = vld [vmem:[%s10565_s20 + $0x28] sm:$0xff]  }
 0x4a3   : > { %9334 = vmatprep.subr.bf16.mxu1 %v10104_v62 }
 0x4a5   : > { %9303 = vmatmul.mubr.bf16.gmra.mrb[20].mxu1 %v11310_v35  ;;  %v6261_v35 = vld [vmem:[#allocation3 + $0x182] sm:$0xff] }
 0x4a6   : > { %9306 = vmatprep.mubr.bf16.mxu1 %v11314_v36  ;;  %9335 = vmatpush3.bf16.msra.mxu1 %v10104_v62  ;;  %v6262_v36 = vld [vmem:[#allocation3 + $0x18a] sm:$0xff] }
 0x4a7   : > { %9336 = vmatprep.subr.bf16.mxu1 %v10105_v42  ;;  %v10114_v62 = vld [vmem:[#allocation6 + $0x1e0] sm:$0xff]  }
 0x4aa   : > { %9337 = vmatpush3.bf16.msra.mxu1 %v10105_v42  ;;  %v6613_v42 = vld [vmem:[#allocation3 + $0xb0] sm:$0xff] }
 0x4ab   : > { %9338 = vmatprep.subr.bf16.mxu1 %v10106_v6 }
 0x4ad   : > { %9307 = vmatmul.mubr.bf16.gmra.mrb[24].mxu1 %v11316_v50  ;;  %v6603_v50 = vld [vmem:[#allocation3 + $0x38] sm:$0xff] }
 0x4ae   : > { %9310 = vmatprep.mubr.bf16.mxu1 %v11320_v44  ;;  %9339 = vmatpush3.bf16.msra.mxu1 %v10106_v6  ;;  %v11422_v44 = vpack.c.bf16 %v6262_v36, %v6261_v35  ;;  %v6615_v6 = vld [vmem:[#allocation3 + $0xc8] sm:$0xff]  ;;  %v10152_v36 = vld [vmem:[%s10565_s20 + $0x30] sm:$0xff]  }
 0x4af   : > { %9340 = vmatprep.subr.bf16.mxu1 %v10107_v29 }
 0x4b2   : > { %9341 = vmatpush3.bf16.msra.mxu1 %v10107_v29  ;;  %v6612_v29 = vld [vmem:[#allocation3 + $0xa8] sm:$0xff] }
 0x4b3   : > { %9342 = vmatprep.subr.bf16.mxu1 %v10108_v61 }
 0x4b5   : > { %9311 = vmatmul.mubr.bf16.gmra.mrb[28].mxu1 %v11322_v1  ;;  %v6602_v1 = vld [vmem:[#allocation3 + $0x30] sm:$0xff] }
 0x4b6   : > { %9314 = vmatprep.mubr.bf16.mxu1 %v11326_v2  ;;  %9343 = vmatpush3.bf16.msra.mxu1 %v10108_v61  ;;  %v6666_v2 = vpack.c.bf16 %v6603_v50, %v6602_v1  ;;  %v6671_v61 = vpack.c.bf16 %v6613_v42, %v6612_v29  ;;  %v10153_v50 = vld [vmem:[%s10565_s20 + $0x38] sm:$0xff]   ;;  %v10116_v1 = vld [vmem:[#allocation6 + $0x1f0] sm:$0xff]   ;;  %v10119_v29 = vld [vmem:[#allocation6 + $0x208] sm:$0xff]  }
 0x4b7   : > { %9344 = vmatprep.subr.bf16.mxu1 %v10109_v12  ;;  %v10154_v42 = vld [vmem:[#allocation3] sm:$0xff] }
 0x4ba   : > { %9345 = vmatpush3.bf16.msra.mxu1 %v10109_v12  ;;  %v6614_v12 = vld [vmem:[#allocation3 + $0xc0] sm:$0xff] }
 0x4bb   : > { %9378 = vmatprep.subr.bf16.mxu1 %v10110_v17  ;;  %v6672_v35 = vpack.c.bf16 %v6615_v6, %v6614_v12  ;;  %v6681_v6 = vpack.c.bf16 %v10154_v42, %v10154_v42  ;;  %v10121_v12 = vld [vmem:[#allocation6 + $0x218] sm:$0xff]  }
 0x4bc   : > { %v7360_v42 = vld [vmem:[#allocation3 + $0x10a] sm:$0xff] }
 0x4bd   : > { %9315 = vmatmul.mubr.bf16.gmra.mrb[32].mxu1 %v11328_v14  ;;  %v10146_v14 = vld [vmem:[%s10565_s20] sm:$0xff]  }
 0x4be   : > { %9318 = vmatprep.mubr.bf16.mxu1 %v11332_v56  ;;  %v10147_v56 = vld [vmem:[%s10565_s20 + $0x8] sm:$0xff]   ;;  %9010 = vmatprep.mubr.msk.bf16.mxu0 %vm374_vm0, %v10146_v14  ;;  %s8315_s20 = sshll.u32 %s10334_s17, 12  ;;  %s11692_s17 = scalar_lea.sflag [#allocation8], %s365_s11 }
 0x4bf   : > { %9011 = vmatmul.mubr.msk.bf16.vlgmr.msra.gmra.mrb[32].mxu0 %vm374_vm0, %v10147_v56  ;;  %v6619_v14 = vld [vmem:[#allocation3 + $0xf8] sm:$0xff]  ;;  %s11683_s27 = scalar_lea.hbm %s11743_s10, %s8315_s20 }
 0x4c0   : > { %9014 = vmatprep.mubr.msk.bf16.mxu0 %vm374_vm0, %v10148_v34  ;;  %v6616_v56 = vld [vmem:[#allocation3 + $0xd8] sm:$0xff]  ;;  %v6620_v34 = vld [vmem:[#allocation3 + $0x108] sm:$0xff] }
 0x4c5   : > { %9319 = vmatmul.mubr.bf16.gmra.mrb[36].mxu1 %v11334_v63  ;;  %v6605_v63 = vld [vmem:[#allocation3 + $0x50] sm:$0xff] }
 0x4c6   : > { %9322 = vmatprep.mubr.bf16.mxu1 %v11338_v7  ;;  %v6607_v7 = vld [vmem:[#allocation3 + $0x68] sm:$0xff] }
 0x4c7   : > { %v6668_v20 = vpack.c.bf16 %v6607_v7, %v6606_v19  ;;  %9015 = vmatmul.mubr.msk.bf16.gmra.mrb[36].mxu0 %vm374_vm0, %v10149_v41  ;;  %v6618_v7 = vld [vmem:[#allocation3 + $0xf0] sm:$0xff] }
 0x4c8   : > { %9018 = vmatprep.mubr.msk.bf16.mxu0 %vm374_vm0, %v10150_v18  ;;  %v10118_v19 = vld [vmem:[#allocation6 + $0x200] sm:$0xff]  }
 0x4c9   : > { %v6629_v18 = vld [vmem:[#allocation3 + $0x170] sm:$0xff] }
 0x4cd   : > { %9323 = vmatmul.mubr.bf16.gmra.mrb[40].mxu1 %v11340_v28  ;;  %v6604_v28 = vld [vmem:[#allocation3 + $0x48] sm:$0xff] }
 0x4ce   : > { %9326 = vmatprep.mubr.bf16.mxu1 %v11344_v22  ;;  %v6667_v22 = vpack.c.bf16 %v6605_v63, %v6604_v28  ;;  %v10117_v28 = vld [vmem:[#allocation6 + $0x1f8] sm:$0xff]  }
 0x4cf   : > { %9019 = vmatmul.mubr.msk.bf16.gmra.mrb[40].mxu0 %vm374_vm0, %v10151_v11  ;;  %v6628_v11 = vld [vmem:[#allocation3 + $0x168] sm:$0xff] }
 0x4d0   : > { %9022 = vmatprep.mubr.msk.bf16.mxu0 %vm374_vm0, %v10152_v36 }
 0x4d5   : > { %9327 = vmatmul.mubr.bf16.gmra.mrb[44].mxu1 %v11422_v44 }
 0x4d6   : > { %9346 = vmatprep.mubr.bf16.mxu1 %v6666_v2  ;;  %v6617_v2 = vld [vmem:[#allocation3 + $0xe0] sm:$0xff] }
 0x4d7   : > { %9023 = vmatmul.mubr.msk.bf16.gmra.mrb[44].mxu0 %vm374_vm0, %v10153_v50  ;;  %v6673_v63 = vpack.c.bf16 %v6617_v2, %v6616_v56  ;;  %v7003_v50 = vld [vmem:[#allocation3 + $0x1a1] sm:$0xff] }
 0x4d8   : > { %v7343_v2 = vld [vmem:[#allocation3 + $0x3a] sm:$0xff]  ;;  %v7346_v56 = vld [vmem:[#allocation3 + $0x62] sm:$0xff] }
 0x4dd   : > { %9347 = vmatmul.mubr.bf16.vlgmr.msra.gmra.mrb[16].mxu1 %v6667_v22  ;;  %v6674_v22 = vpack.c.bf16 %v6619_v14, %v6618_v7  ;;  %v7345_v14 = vld [vmem:[#allocation3 + $0x52] sm:$0xff] }
 0x4de   : > { %9379 = vmatpush3.bf16.msra.mxu1 %v10110_v17  ;;  %9350 = vmatprep.mubr.bf16.mxu1 %v6668_v20  ;;  %v10115_v17 = vld [vmem:[#allocation6 + $0x1e8] sm:$0xff]   ;;  %v6623_v20 = vld [vmem:[#allocation3 + $0x128] sm:$0xff] }
 0x4df   : > { %9380 = vmatprep.subr.bf16.mxu1 %v10111_v51 }
 0x4e2   : > { %9381 = vmatpush3.bf16.msra.mxu1 %v10111_v51  ;;  %v6621_v51 = vld [vmem:[#allocation3 + $0x110] sm:$0xff] }
 0x4e3   : > { %9382 = vmatprep.subr.bf16.mxu1 %v10112_v13  ;;  %v6675_v41 = vpack.c.bf16 %v6621_v51, %v6620_v34  ;;  %v7351_v51 = vld [vmem:[#allocation3 + $0x9a] sm:$0xff] }
 0x4e5   : > { %9351 = vmatmul.mubr.bf16.gmra.mrb[20].mxu1 %v6669_v54  ;;  %v6624_v54 = vld [vmem:[#allocation3 + $0x138] sm:$0xff] }
 0x4e6   : > { %9354 = vmatprep.mubr.bf16.mxu1 %v6670_v38  ;;  %9383 = vmatpush3.bf16.msra.mxu1 %v10112_v13  ;;  %v6622_v13 = vld [vmem:[#allocation3 + $0x120] sm:$0xff]  ;;  %v6677_v16 = vpack.c.bf16 %v6625_v9, %v6624_v54  ;;  %v7355_v9 = vld [vmem:[#allocation3 + $0xca] sm:$0xff] }
 0x4e7   : > { %9384 = vmatprep.subr.bf16.mxu1 %v10113_v31  ;;  %v6676_v58 = vpack.c.bf16 %v6623_v20, %v6622_v13  ;;  %v7353_v13 = vld [vmem:[#allocation3 + $0xb2] sm:$0xff] }
 0x4ea   : > { %9385 = vmatpush3.bf16.msra.mxu1 %v10113_v31  ;;  %v6626_v31 = vld [vmem:[#allocation3 + $0x150] sm:$0xff] }
 0x4eb   : > { %9386 = vmatprep.subr.bf16.mxu1 %v10114_v62  ;;  %v6678_v38 = vpack.c.bf16 %v6627_v40, %v6626_v31  ;;  %v7357_v31 = vld [vmem:[#allocation3 + $0xe2] sm:$0xff] }
 0x4ed   : > { %9355 = vmatmul.mubr.bf16.gmra.mrb[24].mxu1 %v6671_v61  ;;  %v10120_v61 = vld [vmem:[#allocation6 + $0x210] sm:$0xff]  }
 0x4ee   : > { %9358 = vmatprep.mubr.bf16.mxu1 %v6672_v35  ;;  %9387 = vmatpush3.bf16.msra.mxu1 %v10114_v62  ;;  %v6679_v62 = vpack.c.bf16 %v6629_v18, %v6628_v11  ;;  %v7359_v18 = vld [vmem:[#allocation3 + $0xfa] sm:$0xff] }
 0x4ef   : > { %9388 = vmatprep.subr.bf16.mxu1 %v10115_v17 }
 0x4f2   : > { %9389 = vmatpush3.bf16.msra.mxu1 %v10115_v17  ;;  %v6998_v17 = vld [vmem:[#allocation3 + $0x169] sm:$0xff] }
 0x4f3   : > { %9390 = vmatprep.subr.bf16.mxu1 %v10116_v1 }
 0x4f5   : > { %9359 = vmatmul.mubr.bf16.gmra.mrb[28].mxu1 %v6673_v63 }
 0x4f6   : > { %9362 = vmatprep.mubr.bf16.mxu1 %v6674_v22  ;;  %9391 = vmatpush3.bf16.msra.mxu1 %v10116_v1  ;;  %v7349_v22 = vld [vmem:[#allocation3 + $0x82] sm:$0xff] }
 0x4f7   : > { %9392 = vmatprep.subr.bf16.mxu1 %v10117_v28 }
 0x4fa   : > { %9393 = vmatpush3.bf16.msra.mxu1 %v10117_v28  ;;  %v7348_v28 = vld [vmem:[#allocation3 + $0x7a] sm:$0xff] }
 0x4fb   : > { %9426 = vmatprep.subr.bf16.mxu1 %v10118_v19  ;;  %v7409_v20 = vpack.c.bf16 %v7349_v22, %v7348_v28 }
 0x4fd   : > { %9363 = vmatmul.mubr.bf16.gmra.mrb[32].mxu1 %v6675_v41  ;;  %v7352_v41 = vld [vmem:[#allocation3 + $0xaa] sm:$0xff] }
 0x4fe   : > { %9366 = vmatprep.mubr.bf16.mxu1 %v6676_v58  ;;  %v7354_v58 = vld [vmem:[#allocation3 + $0xc2] sm:$0xff]  ;;  %v7411_v40 = vpack.c.bf16 %v7353_v13, %v7352_v41  ;;  %v11481_v41 = vld [vmem:[%s11739_s6] ss:$0 sm:$0xff] }
 0x4ff   : > { %v7412_v54 = vpack.c.bf16 %v7355_v9, %v7354_v58  ;;  %v11488_v9 = vld [vmem:[%s11742_s9] ss:$0 sm:$0xff] }
 0x505   : > { %9367 = vmatmul.mubr.bf16.gmra.mrb[36].mxu1 %v6677_v16  ;;  %v7356_v16 = vld [vmem:[#allocation3 + $0xda] sm:$0xff] }
 0x506   : > { %9370 = vmatprep.mubr.bf16.mxu1 %v6678_v38  ;;  %v7358_v38 = vld [vmem:[#allocation3 + $0xf2] sm:$0xff]  ;;  %v7413_v11 = vpack.c.bf16 %v7357_v31, %v7356_v16 }
 0x50d   : > { %9371 = vmatmul.mubr.bf16.gmra.mrb[40].mxu1 %v6679_v62  ;;  %v7414_v62 = vpack.c.bf16 %v7359_v18, %v7358_v38 }
 0x50e   : > { %9374 = vmatprep.mubr.bf16.mxu1 %v11362_v59  ;;  %v10122_v59 = vld [vmem:[#allocation6 + $0x220] sm:$0xff]  }
 0x515   : > { %9375 = vmatmul.mubr.bf16.gmra.mrb[44].mxu1 %v6681_v6  ;;  %v7361_v6 = vld [vmem:[#allocation3 + $0x112] sm:$0xff] }
 0x516   : > { %9394 = vmatprep.mubr.bf16.mxu1 %v11365_v52  ;;  %v10123_v52 = vld [vmem:[#allocation6 + $0x228] sm:$0xff]  }
 0x51d   : > { %9395 = vmatmul.mubr.bf16.vlgmr.msra.gmra.mrb[16].mxu1 %v11367_v24  ;;  %v10124_v24 = vld [vmem:[#allocation6 + $0x230] sm:$0xff]  }
 0x51e   : > { %9427 = vmatpush3.bf16.msra.mxu1 %v10118_v19  ;;  %9398 = vmatprep.mubr.bf16.mxu1 %v11371_v15  ;;  %v10125_v15 = vld [vmem:[#allocation6 + $0x238] sm:$0xff]   ;;  %v7350_v19 = vld [vmem:[#allocation3 + $0x92] sm:$0xff] }
 0x51f   : > { %9428 = vmatprep.subr.bf16.mxu1 %v10119_v29  ;;  %v7410_v34 = vpack.c.bf16 %v7351_v51, %v7350_v19 }
 0x522   : > { %9429 = vmatpush3.bf16.msra.mxu1 %v10119_v29  ;;  %v7362_v29 = vld [vmem:[#allocation3 + $0x122] sm:$0xff] }
 0x523   : > { %9430 = vmatprep.subr.bf16.mxu1 %v10120_v61 }
 0x525   : > { %9399 = vmatmul.mubr.bf16.gmra.mrb[20].mxu1 %v11373_v10  ;;  %v6995_v10 = vld [vmem:[#allocation3 + $0x141] sm:$0xff] }
 0x526   : > { %9402 = vmatprep.mubr.bf16.mxu1 %v11377_v23  ;;  %9431 = vmatpush3.bf16.msra.mxu1 %v10120_v61  ;;  %v7047_v23 = vpack.c.bf16 %v6995_v10, %v11395_v47  ;;  %v7344_v47 = vld [vmem:[#allocation3 + $0x4a] sm:$0xff]  ;;  %v7367_v10 = vld [vmem:[#allocation3 + $0x15a] sm:$0xff] }
 0x527   : > { %9432 = vmatprep.subr.bf16.mxu1 %v10121_v12  ;;  %v7407_v63 = vpack.c.bf16 %v7345_v14, %v7344_v47  ;;  %v7363_v61 = vld [vmem:[#allocation3 + $0x12a] sm:$0xff] }
 0x52a   : > { %9433 = vmatpush3.bf16.msra.mxu1 %v10121_v12  ;;  %v7415_v12 = vpack.c.bf16 %v7361_v6, %v7360_v42 }
 0x52b   : > { %9434 = vmatprep.subr.bf16.mxu1 %v10122_v59 }
 0x52d   : > { %9403 = vmatmul.mubr.bf16.gmra.mrb[24].mxu1 %v11379_v49  ;;  %v6999_v49 = vld [vmem:[#allocation3 + $0x171] sm:$0xff] }
 0x52e   : > { %9406 = vmatprep.mubr.bf16.mxu1 %v11383_v0  ;;  %9435 = vmatpush3.bf16.msra.mxu1 %v10122_v59  ;;  %v7001_v0 = vld [vmem:[#allocation3 + $0x189] sm:$0xff]  ;;  %v7049_v35 = vpack.c.bf16 %v6999_v49, %v6998_v17  ;;  %v7416_v59 = vpack.c.bf16 %v7363_v61, %v7362_v29  ;;  %v7369_v17 = vld [vmem:[#allocation3 + $0x172] sm:$0xff] }
 0x52f   : > { %9436 = vmatprep.subr.bf16.mxu1 %v10123_v52 }
 0x532   : > { %9437 = vmatpush3.bf16.msra.mxu1 %v10123_v52  ;;  %v7364_v52 = vld [vmem:[#allocation3 + $0x13a] sm:$0xff] }
 0x533   : > { %9438 = vmatprep.subr.bf16.mxu1 %v10124_v24 }
 0x535   : > { %9407 = vmatmul.mubr.bf16.gmra.mrb[28].mxu1 %v11385_v45  ;;  %v7000_v45 = vld [vmem:[#allocation3 + $0x181] sm:$0xff] }
 0x536   : > { %9410 = vmatprep.mubr.bf16.mxu1 %v11389_v27  ;;  %9439 = vmatpush3.bf16.msra.mxu1 %v10124_v24  ;;  %v7050_v36 = vpack.c.bf16 %v7001_v0, %v7000_v45  ;;  %v7002_v27 = vld [vmem:[#allocation3 + $0x199] sm:$0xff]  ;;  %v7365_v24 = vld [vmem:[#allocation3 + $0x142] sm:$0xff]  ;;  %v7368_v0 = vld [vmem:[#allocation3 + $0x16a] sm:$0xff] }
 0x537   : > { %9440 = vmatprep.subr.bf16.mxu1 %v10125_v15  ;;  %v7051_v1 = vpack.c.bf16 %v7003_v50, %v7002_v27  ;;  %v7372_v45 = vld [vmem:[#allocation3 + $0x19a] sm:$0xff] }
 0x53a   : > { %9441 = vmatpush3.bf16.msra.mxu1 %v10125_v15  ;;  %v7366_v15 = vld [vmem:[#allocation3 + $0x152] sm:$0xff] }
 0x53b   : > { %v7418_v49 = vpack.c.bf16 %v7367_v10, %v7366_v15 }
 0x53d   : > { %9411 = vmatmul.mubr.bf16.gmra.mrb[32].mxu1 %v11391_v8  ;;  %v7342_v8 = vld [vmem:[#allocation3 + $0x32] sm:$0xff] }
 0x53e   : > { %9414 = vmatprep.mubr.bf16.mxu1 %v11397_v21  ;;  %v7406_v21 = vpack.c.bf16 %v7343_v2, %v7342_v8 }
 0x545   : > { %9415 = vmatmul.mubr.bf16.gmra.mrb[36].mxu1 %v7047_v23  ;;  %v7417_v23 = vpack.c.bf16 %v7365_v24, %v7364_v52 }
 0x546   : > { %9418 = vmatprep.mubr.bf16.mxu1 %v11402_v25  ;;  %v7347_v25 = vld [vmem:[#allocation3 + $0x6a] sm:$0xff] }
 0x547   : > { %v7408_v7 = vpack.c.bf16 %v7347_v25, %v7346_v56 }
 0x54d   : > { %9419 = vmatmul.mubr.bf16.gmra.mrb[40].mxu1 %v7049_v35  ;;  %v7419_v35 = vpack.c.bf16 %v7369_v17, %v7368_v0 }
 0x54e   : > { %9422 = vmatprep.mubr.bf16.mxu1 %v7050_v36  ;;  %v7373_v36 = vld [vmem:[#allocation3 + $0x1a2] sm:$0xff] }
 0x54f   : > { %v7421_v27 = vpack.c.bf16 %v7373_v36, %v7372_v45 }
 0x555   : > { %9423 = vmatmul.mubr.bf16.gmra.mrb[44].mxu1 %v7051_v1 }
 0x556   : > { %9442 = vmatprep.mubr.bf16.mxu1 %v7406_v21 }
 0x55d   : > { %9443 = vmatmul.mubr.bf16.vlgmr.msra.gmra.mrb[16].mxu1 %v7407_v63 }
 0x55e   : > { %9446 = vmatprep.mubr.bf16.mxu1 %v7408_v7 }
 0x565   : > { %9447 = vmatmul.mubr.bf16.gmra.mrb[20].mxu1 %v7409_v20  ;;  %v11475_v20 = vld [vmem:[%s11741_s8] ss:$0 sm:$0xff] }
 0x566   : > { %9450 = vmatprep.mubr.bf16.mxu1 %v7410_v34 }
 0x56d   : > { %9451 = vmatmul.mubr.bf16.gmra.mrb[24].mxu1 %v7411_v40 }
 0x56e   : > { %9454 = vmatprep.mubr.bf16.mxu1 %v7412_v54  ;;  %v11494_v54 = vld [vmem:[%s11740_s7] ss:$0 sm:$0xff] }
 0x575   : > { %9455 = vmatmul.mubr.bf16.gmra.mrb[28].mxu1 %v7413_v11 }
 0x576   : > { %9458 = vmatprep.mubr.bf16.mxu1 %v7414_v62 }
 0x57d   : > { %9459 = vmatmul.mubr.bf16.gmra.mrb[32].mxu1 %v7415_v12 }
 0x57e   : > { %9462 = vmatprep.mubr.bf16.mxu1 %v7416_v59 }
 0x585   : > { %9463 = vmatmul.mubr.bf16.gmra.mrb[36].mxu1 %v7417_v23 }
 0x586   : > { %9466 = vmatprep.mubr.bf16.mxu1 %v7418_v49 }
 0x58d   : > { %9467 = vmatmul.mubr.bf16.gmra.mrb[40].mxu1 %v7419_v35 }
 0x58e   : > { %9470 = vmatprep.mubr.bf16.mxu1 %v11422_v44 }
 0x592   : > { %v9012_v50 = vpop.f32.mrb[32].mxu0 }
 0x593   : > { %v4113_v1 = vpop.f32.mrb[33].mxu0  ;;  %v4249_v34 = vmul.f32 %v9012_v50, %v11475_v20 }
 0x594   : > { %v9013_v8 = vpop.f32.mrb[34].mxu0  ;;  %v4247_v13 = vmul.f32 %v11475_v20, %v4113_v1 }
 0x595   : > { %9471 = vmatmul.mubr.bf16.gmra.mrb[44].mxu1 %v7421_v27  ;;  %v4116_v2 = vpop.f32.mrb[35].mxu0  ;;  %v4250_v58 = vmul.f32 %v9013_v8, %v11475_v20  ;;  %v4288_v31 = vadd.f32 %v11488_v9, %v4249_v34 }
 0x596   : > { %v4248_v16 = vmul.f32 %v11475_v20, %v4116_v2  ;;  %v4286_v11 = vadd.f32 %v11488_v9, %v4247_v13 }
 0x597   : > { %v4289_v29 = vadd.f32 %v11488_v9, %v4250_v58 }
 0x598   : > { %v4287_v52 = vadd.f32 %v11488_v9, %v4248_v16 }
 0x59a   : > { %v9016_v21 = vpop.f32.mrb[36].mxu0 }
 0x59b   : > { %v4129_v47 = vpop.f32.mrb[37].mxu0  ;;  %v4253_v23 = vmul.f32 %v9016_v21, %v11475_v20 }
 0x59c   : > { %v9017_v14 = vpop.f32.mrb[38].mxu0  ;;  %v4251_v17 = vmul.f32 %v11475_v20, %v4129_v47 }
 0x59d   : > { %v4132_v56 = vpop.f32.mrb[39].mxu0  ;;  %v4254_v36 = vmul.f32 %v9017_v14, %v11475_v20  ;;  %v4292_v21 = vadd.f32 %v11488_v9, %v4253_v23 }
 0x59e   : > { %v4252_v8 = vmul.f32 %v11475_v20, %v4132_v56  ;;  %v4290_v13 = vadd.f32 %v11488_v9, %v4251_v17 }
 0x59f   : > { %v4293_v16 = vadd.f32 %v11488_v9, %v4254_v36 }
 0x5a2   : > { %v11456_v25 = vpop.f32.mrb[40].mxu0 }
 0x5a3   : > { %v11458_v63 = vpop.f32.mrb[41].mxu0 }
 0x5a4   : > { %v11460_v7 = vpop.f32.mrb[42].mxu0 }
 0x5a5   : > { %v11462_v44 = vpop.f32.mrb[43].mxu0 }
 0x5aa   : > { %v11464_v28 = vpop.f32.mrb[44].mxu0 }
 0x5ab   : > { %v11466_v22 = vpop.f32.mrb[45].mxu0 }
 0x5ac   : > { %v11468_v19 = vpop.f32.mrb[46].mxu0 }
 0x5ad   : > { %v11470_v51 = vpop.f32.mrb[47].mxu0 }
 0x630   : > { %v9444_v40 = vpop.f32.mrb[16].mxu1 }
 0x631   : > { %v7753_v38 = vmul.f32 %v9444_v40, %v11481_v41  ;;  %v7521_v18 = vpop.f32.mrb[17].mxu1 }
 0x632   : > { %v7751_v62 = vmul.f32 %v11481_v41, %v7521_v18  ;;  %v9445_v42 = vpop.f32.mrb[18].mxu1 }
 0x633   : > { %v7792_v6 = vadd.f32 %v11494_v54, %v7753_v38  ;;  %v7754_v61 = vmul.f32 %v9445_v42, %v11481_v41  ;;  %v7524_v12 = vpop.f32.mrb[19].mxu1 }
 0x634   : > { %v7790_v59 = vadd.f32 %v11494_v54, %v7751_v62  ;;  %v7752_v24 = vmul.f32 %v11481_v41, %v7524_v12 }
 0x635   : > { %v7856_v15 = vadd.f32 %v7792_v6, %v4288_v31  ;;  %v7793_v10 = vadd.f32 %v11494_v54, %v7754_v61 }
 0x636   : > { %v7854_v49 = vadd.f32 %v7790_v59, %v4286_v11  ;;  %v7791_v0 = vadd.f32 %v11494_v54, %v7752_v24  ;;  %v4291_v11 = vadd.f32 %v11488_v9, %v4252_v8  ;;  %v4255_v59 = vmul.f32 %v11475_v20, %v11458_v63 }
 0x637   : > { %v7888_v35 = vmax.f32 %v7856_v15, 0.0  ;;  %v7857_v45 = vadd.f32 %v7793_v10, %v4289_v29  ;;  %v4257_v29 = vmul.f32 %v11456_v25, %v11475_v20  ;;  %v4258_v15 = vmul.f32 %v11460_v7, %v11475_v20 }
 0x638   : > { %v7886_v27 = vmax.f32 %v7854_v49, 0.0  ;;  %v7855_v50 = vadd.f32 %v7791_v0, %v4287_v52  ;;  %v9448_v1 = vpop.f32.mrb[20].mxu1  ;;  %v4256_v0 = vmul.f32 %v11475_v20, %v11462_v44  ;;  %v4294_v36 = vadd.f32 %v11488_v9, %v4255_v59 }
 0x639   : > { %7920 = vst [vmem:[%s11515_s30 + $0x10] sm:$0xff] %v7888_v35  ;;  %v7889_v2 = vmax.f32 %v7857_v45, 0.0  ;;  %v7757_v47 = vmul.f32 %v9448_v1, %v11481_v41  ;;  %v7537_v34 = vpop.f32.mrb[21].mxu1  ;;  %v4296_v17 = vadd.f32 %v11488_v9, %v4257_v29  ;;  %v4297_v44 = vadd.f32 %v11488_v9, %v4258_v15 }
 0x63a   : > { %7918 = vst [vmem:[%s11515_s30] sm:$0xff] %v7886_v27  ;;  %v7887_v14 = vmax.f32 %v7855_v50, 0.0  ;;  %v7755_v58 = vmul.f32 %v11481_v41, %v7537_v34  ;;  %v9449_v56 = vpop.f32.mrb[22].mxu1 }
 0x63b   : > { %7921 = vst [vmem:[%s11515_s30 + $0x18] sm:$0xff] %v7889_v2  ;;  %v7796_v40 = vadd.f32 %v11494_v54, %v7757_v47  ;;  %v7758_v31 = vmul.f32 %v9449_v56, %v11481_v41  ;;  %v7540_v38 = vpop.f32.mrb[23].mxu1 }
 0x63c   : > { %7919 = vst [vmem:[%s11515_s30 + $0x8] sm:$0xff] %v7887_v14  ;;  %v7794_v18 = vadd.f32 %v11494_v54, %v7755_v58  ;;  %v7756_v62 = vmul.f32 %v11481_v41, %v7540_v38  ;;  %v4262_v38 = vmul.f32 %v11468_v19, %v11475_v20 }
 0x63d   : > { %v7860_v42 = vadd.f32 %v7796_v40, %v4292_v21  ;;  %v7797_v6 = vadd.f32 %v11494_v54, %v7758_v31  ;;  %v4295_v21 = vadd.f32 %v11488_v9, %v4256_v0  ;;  %v4259_v40 = vmul.f32 %v11475_v20, %v11466_v22 }
 0x63e   : > { %v7858_v61 = vadd.f32 %v7794_v18, %v4290_v13  ;;  %v7795_v12 = vadd.f32 %v11494_v54, %v7756_v62  ;;  %v4261_v13 = vmul.f32 %v11464_v28, %v11475_v20 }
 0x63f   : > { %v7892_v52 = vmax.f32 %v7860_v42, 0.0  ;;  %v7861_v24 = vadd.f32 %v7797_v6, %v4293_v16  ;;  %v4260_v42 = vmul.f32 %v11475_v20, %v11470_v51  ;;  %v4301_v51 = vadd.f32 %v11488_v9, %v4262_v38 }
 0x640   : > { %v7890_v10 = vmax.f32 %v7858_v61, 0.0  ;;  %v7859_v23 = vadd.f32 %v7795_v12, %v4291_v11  ;;  %v9452_v49 = vpop.f32.mrb[24].mxu1  ;;  %v4300_v6 = vadd.f32 %v11488_v9, %v4261_v13  ;;  %v4298_v12 = vadd.f32 %v11488_v9, %v4259_v40 }
 0x641   : > { %7924 = vst [vmem:[%s11515_s30 + $0x30] sm:$0xff] %v7892_v52  ;;  %v7893_v25 = vmax.f32 %v7861_v24, 0.0  ;;  %v7761_v35 = vmul.f32 %v9452_v49, %v11481_v41  ;;  %v7553_v63 = vpop.f32.mrb[25].mxu1 }
 0x642   : > { %7922 = vst [vmem:[%s11515_s30 + $0x20] sm:$0xff] %v7890_v10  ;;  %v7891_v45 = vmax.f32 %v7859_v23, 0.0  ;;  %v7759_v7 = vmul.f32 %v11481_v41, %v7553_v63  ;;  %v9453_v27 = vpop.f32.mrb[26].mxu1  ;;  %v4299_v23 = vadd.f32 %v11488_v9, %v4260_v42  ;;  %v4265_v63 = vmul.f32 %v11240_v5, %v11475_v20 }
 0x643   : > { %7925 = vst [vmem:[%s11515_s30 + $0x38] sm:$0xff] %v7893_v25  ;;  %v7800_v50 = vadd.f32 %v11494_v54, %v7761_v35  ;;  %v7762_v1 = vmul.f32 %v9453_v27, %v11481_v41  ;;  %v7556_v8 = vpop.f32.mrb[27].mxu1  ;;  %v4264_v5 = vmul.f32 %v11475_v20, %v11257_v48  ;;  %v4269_v42 = vmul.f32 %v11259_v55, %v11475_v20 }
 0x644   : > { %7923 = vst [vmem:[%s11515_s30 + $0x28] sm:$0xff] %v7891_v45  ;;  %v7798_v2 = vadd.f32 %v11494_v54, %v7759_v7  ;;  %v7760_v47 = vmul.f32 %v11481_v41, %v7556_v8  ;;  %v4263_v7 = vmul.f32 %v11475_v20, %v11252_v30  ;;  %v4268_v55 = vmul.f32 %v11475_v20, %v11268_v43 }
 0x645   : > { %v7864_v34 = vadd.f32 %v7800_v50, %v4296_v17  ;;  %v7801_v14 = vadd.f32 %v11494_v54, %v7762_v1  ;;  %v4266_v1 = vmul.f32 %v11255_v33, %v11475_v20 }
 0x646   : > { %v7862_v58 = vadd.f32 %v7798_v2, %v4294_v36  ;;  %v7799_v56 = vadd.f32 %v11494_v54, %v7760_v47 }
 0x647   : > { %v7896_v16 = vmax.f32 %v7864_v34, 0.0  ;;  %v7865_v31 = vadd.f32 %v7801_v14, %v4297_v44  ;;  %v4304_v14 = vadd.f32 %v11488_v9, %v4265_v63 }
 0x648   : > { %v7894_v18 = vmax.f32 %v7862_v58, 0.0  ;;  %v7863_v11 = vadd.f32 %v7799_v56, %v4295_v21  ;;  %v9456_v62 = vpop.f32.mrb[28].mxu1  ;;  %v4302_v56 = vadd.f32 %v11488_v9, %v4263_v7 }
 0x649   : > { %7928 = vst [vmem:[%s11515_s30 + $0x50] sm:$0xff] %v7896_v16  ;;  %v7897_v28 = vmax.f32 %v7865_v31, 0.0  ;;  %v7765_v29 = vmul.f32 %v9456_v62, %v11481_v41  ;;  %v7569_v22 = vpop.f32.mrb[29].mxu1  ;;  %v4305_v16 = vadd.f32 %v11488_v9, %v4266_v1  ;;  %v4271_v1 = vmul.f32 %v11475_v20, %v11275_v57 }
 0x64a   : > { %7926 = vst [vmem:[%s11515_s30 + $0x40] sm:$0xff] %v7894_v18  ;;  %v7895_v61 = vmax.f32 %v7863_v11, 0.0  ;;  %v7763_v19 = vmul.f32 %v11481_v41, %v7569_v22  ;;  %v9457_v59 = vpop.f32.mrb[30].mxu1  ;;  %v4303_v18 = vadd.f32 %v11488_v9, %v4264_v5  ;;  %v4274_v5 = vmul.f32 %v11277_v37, %v11475_v20 }
 0x64b   : > { %7929 = vst [vmem:[%s11515_s30 + $0x58] sm:$0xff] %v7897_v28  ;;  %v7804_v52 = vadd.f32 %v11494_v54, %v7765_v29  ;;  %v7766_v24 = vmul.f32 %v9457_v59, %v11481_v41  ;;  %v7572_v15 = vpop.f32.mrb[31].mxu1  ;;  %v4267_v29 = vmul.f32 %v11475_v20, %v11264_v26 }
 0x64c   : > { %7927 = vst [vmem:[%s11515_s30 + $0x48] sm:$0xff] %v7895_v61  ;;  %v7802_v10 = vadd.f32 %v11494_v54, %v7763_v19  ;;  %v7764_v49 = vmul.f32 %v11481_v41, %v7572_v15  ;;  %v4270_v19 = vmul.f32 %v11266_v39, %v11475_v20 }
 0x64d   : > { %v7868_v0 = vadd.f32 %v7804_v52, %v4300_v6  ;;  %v7805_v25 = vadd.f32 %v11494_v54, %v7766_v24 }
 0x64e   : > { %v7866_v17 = vadd.f32 %v7802_v10, %v4298_v12  ;;  %v7803_v35 = vadd.f32 %v11494_v54, %v7764_v49  ;;  %v4308_v10 = vadd.f32 %v11488_v9, %v4269_v42  ;;  %v4277_v42 = vmul.f32 %v11283_v4, %v11475_v20 }
 0x64f   : > { %v7900_v45 = vmax.f32 %v7868_v0, 0.0  ;;  %v7869_v36 = vadd.f32 %v7805_v25, %v4301_v51  ;;  %v4306_v0 = vadd.f32 %v11488_v9, %v4267_v29  ;;  %v4275_v29 = vmul.f32 %v11475_v20, %v11285_v53 }
 0x650   : > { %v7898_v27 = vmax.f32 %v7866_v17, 0.0  ;;  %v7867_v50 = vadd.f32 %v7803_v35, %v4299_v23  ;;  %v9460_v44 = vpop.f32.mrb[32].mxu1  ;;  %v4309_v17 = vadd.f32 %v11488_v9, %v4270_v19  ;;  %v4278_v19 = vmul.f32 %v11287_v60, %v11475_v20 }
 0x651   : > { %7932 = vst [vmem:[%s11515_s30 + $0x70] sm:$0xff] %v7900_v45  ;;  %v7901_v8 = vmax.f32 %v7869_v36, 0.0  ;;  %v7769_v2 = vmul.f32 %v9460_v44, %v11481_v41  ;;  %v7585_v21 = vpop.f32.mrb[33].mxu1  ;;  %v4307_v45 = vadd.f32 %v11488_v9, %v4268_v55  ;;  %v4276_v4 = vmul.f32 %v11475_v20, %v11289_v3 }
 0x652   : > { %7930 = vst [vmem:[%s11515_s30 + $0x60] sm:$0xff] %v7898_v27  ;;  %v7899_v47 = vmax.f32 %v7867_v50, 0.0  ;;  %v7767_v34 = vmul.f32 %v11481_v41, %v7585_v21  ;;  %v9461_v30 = vpop.f32.mrb[34].mxu1  ;;  %v4273_v27 = vmul.f32 %v11271_v32, %v11475_v20  ;;  %v4272_v32 = vmul.f32 %v11475_v20, %v11279_v46 }
 0x653   : > { %7933 = vst [vmem:[%s11515_s30 + $0x78] sm:$0xff] %v7901_v8  ;;  %v7808_v13 = vadd.f32 %v11494_v54, %v7769_v2  ;;  %v7770_v33 = vmul.f32 %v9461_v30, %v11481_v41  ;;  %v7588_v58 = vpop.f32.mrb[35].mxu1 }
 0x654   : > { %7931 = vst [vmem:[%s11515_s30 + $0x68] sm:$0xff] %v7899_v47  ;;  %v7806_v40 = vadd.f32 %v11494_v54, %v7767_v34  ;;  %v7768_v48 = vmul.f32 %v11481_v41, %v7588_v58 }
 0x655   : > { %v7872_v31 = vadd.f32 %v7808_v13, %v4304_v14  ;;  %v7809_v38 = vadd.f32 %v11494_v54, %v7770_v33  ;;  %v4312_v33 = vadd.f32 %v11488_v9, %v4273_v27 }
 0x656   : > { %v7870_v11 = vadd.f32 %v7806_v40, %v4302_v56  ;;  %v7807_v62 = vadd.f32 %v11494_v54, %v7768_v48  ;;  %v4310_v40 = vadd.f32 %v11488_v9, %v4271_v1 }
 0x657   : > { %v7904_v28 = vmax.f32 %v7872_v31, 0.0  ;;  %v7873_v6 = vadd.f32 %v7809_v38, %v4305_v16  ;;  %v4313_v16 = vadd.f32 %v11488_v9, %v4274_v5 }
 0x658   : > { %v7902_v22 = vmax.f32 %v7870_v11, 0.0  ;;  %v7871_v61 = vadd.f32 %v7807_v62, %v4303_v18  ;;  %v9464_v12 = vpop.f32.mrb[36].mxu1  ;;  %v4311_v18 = vadd.f32 %v11488_v9, %v4272_v32 }
 0x659   : > { %7936 = vst [vmem:[%s11515_s30 + $0x90] sm:$0xff] %v7904_v28  ;;  %v7905_v59 = vmax.f32 %v7873_v6, 0.0  ;;  %v7773_v52 = vmul.f32 %v9464_v12, %v11481_v41  ;;  %v7601_v51 = vpop.f32.mrb[37].mxu1 }
 0x65a   : > { %7934 = vst [vmem:[%s11515_s30 + $0x80] sm:$0xff] %v7902_v22  ;;  %v7903_v24 = vmax.f32 %v7871_v61, 0.0  ;;  %v7771_v15 = vmul.f32 %v11481_v41, %v7601_v51  ;;  %v9465_v26 = vpop.f32.mrb[38].mxu1 }
 0x65b   : > { %7937 = vst [vmem:[%s11515_s30 + $0x98] sm:$0xff] %v7905_v59  ;;  %v7812_v23 = vadd.f32 %v11494_v54, %v7773_v52  ;;  %v7774_v39 = vmul.f32 %v9465_v26, %v11481_v41  ;;  %v7604_v49 = vpop.f32.mrb[39].mxu1 }
 0x65c   : > { %7935 = vst [vmem:[%s11515_s30 + $0x88] sm:$0xff] %v7903_v24  ;;  %v7810_v25 = vadd.f32 %v11494_v54, %v7771_v15  ;;  %v7772_v43 = vmul.f32 %v11481_v41, %v7604_v49  ;;  %v4316_v15 = vadd.f32 %v11488_v9, %v4277_v42 }
 0x65d   : > { %v7876_v35 = vadd.f32 %v7812_v23, %v4308_v10  ;;  %v7813_v63 = vadd.f32 %v11494_v54, %v7774_v39  ;;  %v4314_v23 = vadd.f32 %v11488_v9, %v4275_v29  ;;  %v4317_v39 = vadd.f32 %v11488_v9, %v4278_v19 }
 0x65e   : > { %v7874_v36 = vadd.f32 %v7810_v25, %v4306_v0  ;;  %v7811_v7 = vadd.f32 %v11494_v54, %v7772_v43  ;;  %v4315_v25 = vadd.f32 %v11488_v9, %v4276_v4 }
 0x65f   : > { %v7908_v50 = vmax.f32 %v7876_v35, 0.0  ;;  %v7877_v44 = vadd.f32 %v7813_v63, %v4309_v17 }
 0x660   : > { %v7906_v8 = vmax.f32 %v7874_v36, 0.0  ;;  %v7875_v2 = vadd.f32 %v7811_v7, %v4307_v45  ;;  %v9468_v21 = vpop.f32.mrb[40].mxu1 }
 0x661   : > { %7940 = vst [vmem:[%s11515_s30 + $0xb0] sm:$0xff] %v7908_v50  ;;  %v7909_v47 = vmax.f32 %v7877_v44, 0.0  ;;  %v7777_v34 = vmul.f32 %v9468_v21, %v11481_v41  ;;  %v7617_v30 = vpop.f32.mrb[41].mxu1 }
 0x662   : > { %7938 = vst [vmem:[%s11515_s30 + $0xa0] sm:$0xff] %v7906_v8  ;;  %v7907_v14 = vmax.f32 %v7875_v2, 0.0  ;;  %v7775_v13 = vmul.f32 %v11481_v41, %v7617_v30  ;;  %v9469_v57 = vpop.f32.mrb[42].mxu1 }
 0x663   : > { %7941 = vst [vmem:[%s11515_s30 + $0xb8] sm:$0xff] %v7909_v47  ;;  %v7816_v58 = vadd.f32 %v11494_v54, %v7777_v34  ;;  %v7778_v37 = vmul.f32 %v9469_v57, %v11481_v41  ;;  %v7620_v56 = vpop.f32.mrb[43].mxu1 }
 0x664   : > { %7939 = vst [vmem:[%s11515_s30 + $0xa8] sm:$0xff] %v7907_v14  ;;  %v7814_v48 = vadd.f32 %v11494_v54, %v7775_v13  ;;  %v7776_v46 = vmul.f32 %v11481_v41, %v7620_v56 }
 0x665   : > { %v7880_v31 = vadd.f32 %v7816_v58, %v4312_v33  ;;  %v7817_v38 = vadd.f32 %v11494_v54, %v7778_v37 }
 0x666   : > { %v7878_v11 = vadd.f32 %v7814_v48, %v4310_v40  ;;  %v7815_v62 = vadd.f32 %v11494_v54, %v7776_v46 }
 0x667   : > { %v7912_v28 = vmax.f32 %v7880_v31, 0.0  ;;  %v7881_v6 = vadd.f32 %v7817_v38, %v4313_v16 }
 0x668   : > { %v7910_v22 = vmax.f32 %v7878_v11, 0.0  ;;  %v7879_v61 = vadd.f32 %v7815_v62, %v4311_v18  ;;  %v9472_v12 = vpop.f32.mrb[44].mxu1 }
 0x669   : > { %7944 = vst [vmem:[%s11515_s30 + $0xd0] sm:$0xff] %v7912_v28  ;;  %v7913_v59 = vmax.f32 %v7881_v6, 0.0  ;;  %v7781_v52 = vmul.f32 %v9472_v12, %v11481_v41  ;;  %v7633_v51 = vpop.f32.mrb[45].mxu1 }
 0x66a   : > { %7942 = vst [vmem:[%s11515_s30 + $0xc0] sm:$0xff] %v7910_v22  ;;  %v7911_v55 = vmax.f32 %v7879_v61, 0.0  ;;  %v7779_v24 = vmul.f32 %v11481_v41, %v7633_v51  ;;  %v9473_v53 = vpop.f32.mrb[46].mxu1 }
 0x66b   : > { %7945 = vst [vmem:[%s11515_s30 + $0xd8] sm:$0xff] %v7913_v59  ;;  %v7820_v60 = vadd.f32 %v11494_v54, %v7781_v52  ;;  %v7782_v26 = vmul.f32 %v9473_v53, %v11481_v41  ;;  %v7636_v10 = vpop.f32.mrb[47].mxu1 }
 0x66c   : > { %7943 = vst [vmem:[%s11515_s30 + $0xc8] sm:$0xff] %v7911_v55  ;;  %v7818_v3 = vadd.f32 %v11494_v54, %v7779_v24  ;;  %v7780_v20 = vmul.f32 %v11481_v41, %v7636_v10 }
 0x66d   : > { %v7884_v49 = vadd.f32 %v7820_v60, %v4316_v15  ;;  %v7821_v0 = vadd.f32 %v11494_v54, %v7782_v26 }
 0x66e   : > { %v7882_v43 = vadd.f32 %v7818_v3, %v4314_v23  ;;  %v7819_v17 = vadd.f32 %v11494_v54, %v7780_v20 }
 0x66f   : > { %v7916_v35 = vmax.f32 %v7884_v49, 0.0  ;;  %v7885_v63 = vadd.f32 %v7821_v0, %v4317_v39 }
 0x670   : > { %v7914_v41 = vmax.f32 %v7882_v43, 0.0  ;;  %v7883_v45 = vadd.f32 %v7819_v17, %v4315_v25 }
 0x671   : > { %7948 = vst [vmem:[%s11515_s30 + $0xf0] sm:$0xff] %v7916_v35  ;;  %v7917_v36 = vmax.f32 %v7885_v63, 0.0 }
 0x672   : > { %7946 = vst [vmem:[%s11515_s30 + $0xe0] sm:$0xff] %v7914_v41  ;;  %v7915_v9 = vmax.f32 %v7883_v45, 0.0 }
 0x673   : > { %7949 = vst [vmem:[%s11515_s30 + $0xf8] sm:$0xff] %v7917_v36 }
 0x674   : > { %7947 = vst [vmem:[%s11515_s30 + $0xe8] sm:$0xff] %v7915_v9 }
 0x675   : > { %10196 = shalt.err (!%p10193_p7)
}
 0x676   : > { %s10197_s11 = scalar_lea.hbm %s11683_s27, 4096  ;;  %s10201_s18 = scalar_lea.hbm %s11743_s10, 8192 }
 0x677   : > { %p10198_p8 = scmp.ne.s32.totalorder %s11683_s27, %s10197_s11  ;;  %p10202_p1 = scmp.lt.u32.totalorder %s11683_s27, %s11743_s10 }
 0x678   : > { %p10203_p0 = scmp.lt.u32.totalorder %s10201_s18, %s10197_s11  ;;  %p10205_p6 = scmp.lt.u32.totalorder %s10197_s11, %s11683_s27 }
 0x679   : > { %p10199_p11 = pnand %p10198_p8, %p11754_p9 }
 0x67a   : > { %p10204_p5 = por %p10203_p0, %p10202_p1 }
 0x67b   : > { %p10200_p13 = pneg %p10199_p11 }
 0x67c   : > { %p10206_p10 = por %p10205_p6, %p10204_p5 }
 0x67e   : > { %p10207_p12 = pnand %p10206_p10, %p10200_p13 }
 0x680   : > { %10210 = shalt.err (!%p10207_p12)
}
 0x681   : > { %s10256_s28 = smov 128   ;;  %s10257_s26 = smov 8  }
 0x682   : > { %10003 = dma.vmem_to_hbm [thread:$0]  (%p11754_p9), %s11685_s12, 4096, %s11683_s27, %s11692_s17, %s10256_s28, %s10256_s28, %s10257_s26  }
 0x683 PF: > { %p10015_p2 = scmp.ge.s32.totalorder %s10249_s16, 2  ;;  %s7979_s29 = sand.u32 1, %s10237_s13  }
 0x684   : > { %p11755_p3 = scmp.ne.s32.totalorder %s11748_s24, 0  ;;  %s7980_s11 = scalar_lea.sflag [#allocation8], %s7979_s29 }
 0x686   : > { %p10010_p4 = pnand %p10015_p2, %p11755_p3 }
 0x688   : > { %10232 = dma.done.wait (!%p10010_p4), %s7980_s11, 4096  }
 0x689   : > { %10234 = vsyncadd (!%p10010_p4), %s7980_s11, 4294963200  ;;  %p21_p7 = scmp.ge.s32.totalorder %s10338_s19, 4   ;;  %s11756_s13 = smov %s10241_s14 }
 0x68a   : > { %s11757_s14 = smov %s10245_s15  ;;  %s11758_s15 = smov %s10349_s22 }
 0x68b   : > { %s11759_s16 = smov %s10338_s19  ;;  %23 = sbr.rel (!%p21_p7) target bundleno = 4 (0x4), region = 120 }
 0x692   :  { %7985 = vsyncpa [#allocation7], 1 }
 0x693   :  { %7987 = vsyncpa [#allocation7 + $0x1], 1 }
 0x694   :  { %7988 = vsyncpa [#allocation8], 1 }
 0x695   :  { %7990 = vsyncpa [#allocation8 + $0x1], 1 }

</bundles_post_ra>
